<compile_context>
chip_gen: v7x
topology: tpu7x:2x2x1
jax: 0.10.0
libtpu: 0.0.40
codegen_flags: <defaults>
</compile_context>

<pallas_src>
import math
from functools import partial

import jax
import jax.numpy as jnp
from jax import lax
from jax.experimental import pallas as pl
from jax.experimental.pallas import tpu as pltpu

NEG_SLOPE = 0.01                       # nn.LeakyReLU default negative slope
INV_SQRT2 = 1.0 / math.sqrt(2.0)

STREAM_DTYPE = jnp.bfloat16            # HBM stream dtype for activations / weights
VMEM_BLOCK_BUDGET = 24 * 1024 * 1024   # budget for the double-buffered in+out blocks
VMEM_LIMIT_BYTES = 48 * 1024 * 1024    # scoped VMEM limit (>= default, <= 64MiB on v7x)


def _round_up(x, m):
    return ((x + m - 1) // m) * m


# ------------------------------- Pallas kernels -------------------------------

def _conv3_leaky_kernel(w_ref, b_ref, x_ref, o_ref, *, hp_wp, wp, lblk):
    """3x3x3 conv (padding=1) + bias + LeakyReLU on one halo'd, flattened slab.

    x_ref: (1, Cin, ls_pad) -- padded (td+2, H+2, W+2) volume flattened per channel.
    w_ref: (27, Cout, Cin)  -- tap-major weights, tap index t = (kd*3 + kh)*3 + kw.
    o_ref: (1, Cout, lblk)  -- output in the same padded-stride flat layout (junk lanes
                               at padded h/w positions are sliced off in the wrapper).
    Each tap is a static lane-offset slice of the VMEM block feeding one MXU dot;
    accumulation is f32.  No im2col matrix ever touches HBM.
    """
    acc = None
    t = 0
    for kd in range(3):
        for kh in range(3):
            for kw in range(3):
                off = kd * hp_wp + kh * wp + kw
                xt = x_ref[0, :, off:off + lblk]
                p = jnp.dot(w_ref[t], xt, preferred_element_type=jnp.float32)
                acc = p if acc is None else acc + p
                t += 1
    y = acc + b_ref[...]
    o_ref[0] = jnp.maximum(y, NEG_SLOPE * y).astype(o_ref.dtype)


def _conv3_leaky_res_kernel(w_ref, b_ref, wr_ref, br_ref, x_ref, o_ref, *,
                            cmain, cres, hp_wp, wp, lblk):
    """conv2(3x3x3)+bias+LeakyReLU fused with the 1x1x1 residual conv and the add.

    x_ref rows [0, cmain)           : pooled conv1 output (conv2 input),
          rows [cmain, cmain+cres)  : pooled block input (residual input).
    1/sqrt(2) is already folded into the weights/biases host-side.
    """
    acc = None
    t = 0
    for kd in range(3):
        for kh in range(3):
            for kw in range(3):
                off = kd * hp_wp + kh * wp + kw
                xt = x_ref[0, :cmain, off:off + lblk]
                p = jnp.dot(w_ref[t], xt, preferred_element_type=jnp.float32)
                acc = p if acc is None else acc + p
                t += 1
    y = acc + b_ref[...]
    y = jnp.maximum(y, NEG_SLOPE * y)
    center = hp_wp + wp + 1                        # tap (1,1,1): the un-shifted input
    xr = x_ref[0, cmain:cmain + cres, center:center + lblk]
    r = jnp.dot(wr_ref[...], xr, preferred_element_type=jnp.float32) + br_ref[...]
    o_ref[0] = (y + r).astype(o_ref.dtype)


# --------------------------- tiling / layout helpers ---------------------------

def _slab_geometry(td, h, w):
    hp, wp = h + 2, w + 2
    lblk = _round_up(td * hp * wp, 128)                        # lane-dense output block
    ls_pad = _round_up(2 * hp * wp + 2 * wp + 2 + lblk, 128)   # fits every tap's slice
    return hp, wp, lblk, ls_pad


def _choose_td(d, h, w, c_slab, c_out, in_bytes, out_bytes):
    """Largest depth-tile dividing d whose double-buffered blocks fit the VMEM budget."""
    best = 1
    for td in range(1, d + 1):
        if d % td:
            continue
        _, _, lblk, ls_pad = _slab_geometry(td, h, w)
        need = 2 * (c_slab * ls_pad * in_bytes + c_out * lblk * out_bytes)
        if need <= VMEM_BLOCK_BUDGET:
            best = td
    return best


def _build_slab(x, td, ls_pad):
    """(N, C, D, H, W) -> (N * D//td, C, ls_pad) halo'd, flattened, zero-padded windows."""
    n, c, d, h, w = x.shape
    hp, wp = h + 2, w + 2
    nblk = d // td
    xp = jnp.pad(x, ((0, 0), (0, 0), (1, 1), (1, 1), (1, 1)))
    widx = jnp.arange(nblk)[:, None] * td + jnp.arange(td + 2)[None, :]
    xw = xp[:, :, widx]                                        # (N, C, nblk, td+2, hp, wp)
    xw = xw.transpose(0, 2, 1, 3, 4, 5).reshape(n * nblk, c, (td + 2) * hp * wp)
    xw = jnp.pad(xw, ((0, 0), (0, 0), (0, ls_pad - xw.shape[-1])))
    return xw.astype(STREAM_DTYPE)


def _extract(out_wins, n, cout, nblk, td, h, w):
    """(N*nblk, Cout, lblk) padded-stride flat blocks -> (N, Cout, D, H, W)."""
    hp, wp = h + 2, w + 2
    o = out_wins[:, :, :td * hp * wp].reshape(n, nblk, cout, td, hp, wp)
    o = o.transpose(0, 2, 1, 3, 4, 5).reshape(n, cout, nblk * td, hp, wp)
    return o[..., :h, :w]


def _tap_major(wt):
    """(Cout, Cin, 3, 3, 3) -> (27, Cout, Cin) with tap index t = (kd*3 + kh)*3 + kw."""
    cout, cin = wt.shape[:2]
    return wt.transpose(2, 3, 4, 0, 1).reshape(27, cout, cin)


def _compiler_params():
    return pltpu.CompilerParams(dimension_semantics=("parallel",),
                                vmem_limit_bytes=VMEM_LIMIT_BYTES)


# ------------------------------ pallas_call wrappers ---------------------------

def conv3_leaky(x, wt, b, td):
    """Conv3d(3x3x3, pad=1) + LeakyReLU.  x: (N, Cin, D, H, W) f32 -> f32."""
    n, cin, d, h, w = x.shape
    cout = wt.shape[0]
    hp, wp, lblk, ls_pad = _slab_geometry(td, h, w)
    nblk = d // td
    slab = _build_slab(x, td, ls_pad)
    kern = partial(_conv3_leaky_kernel, hp_wp=hp * wp, wp=wp, lblk=lblk)
    out = pl.pallas_call(
        kern,
        out_shape=jax.ShapeDtypeStruct((n * nblk, cout, lblk), jnp.float32),
        grid=(n * nblk,),
        in_specs=[pl.BlockSpec((27, cout, cin), lambda g: (0, 0, 0)),
                  pl.BlockSpec((cout, 1), lambda g: (0, 0)),
                  pl.BlockSpec((1, cin, ls_pad), lambda g: (g, 0, 0))],
        out_specs=pl.BlockSpec((1, cout, lblk), lambda g: (g, 0, 0)),
        compiler_params=_compiler_params(),
    )(_tap_major(wt).astype(STREAM_DTYPE),
      b.reshape(cout, 1).astype(jnp.float32),
      slab)
    return _extract(out, n, cout, nblk, td, h, w)


def conv3_leaky_residual(y_main, x_res, wt, b, wr, br, td):
    """Fused conv2 + LeakyReLU + residual 1x1x1 conv + add, scaled by 1/sqrt(2) via weights."""
    n, cmain, d, h, w = y_main.shape
    cres = x_res.shape[1]
    cout = wt.shape[0]
    hp, wp, lblk, ls_pad = _slab_geometry(td, h, w)
    nblk = d // td
    stacked = jnp.concatenate([y_main, x_res], axis=1)         # one DMA stream per tile
    slab = _build_slab(stacked, td, ls_pad)
    kern = partial(_conv3_leaky_res_kernel, cmain=cmain, cres=cres,
                   hp_wp=hp * wp, wp=wp, lblk=lblk)
    out = pl.pallas_call(
        kern,
        out_shape=jax.ShapeDtypeStruct((n * nblk, cout, lblk), jnp.float32),
        grid=(n * nblk,),
        in_specs=[pl.BlockSpec((27, cout, cmain), lambda g: (0, 0, 0)),
                  pl.BlockSpec((cout, 1), lambda g: (0, 0)),
                  pl.BlockSpec((cout, cres), lambda g: (0, 0)),
                  pl.BlockSpec((cout, 1), lambda g: (0, 0)),
                  pl.BlockSpec((1, cmain + cres, ls_pad), lambda g: (g, 0, 0))],
        out_specs=pl.BlockSpec((1, cout, lblk), lambda g: (g, 0, 0)),
        compiler_params=_compiler_params(),
    )((_tap_major(wt) * INV_SQRT2).astype(STREAM_DTYPE),
      (b * INV_SQRT2).reshape(cout, 1).astype(jnp.float32),
      (wr.reshape(cout, cres) * INV_SQRT2).astype(STREAM_DTYPE),
      (br * INV_SQRT2).reshape(cout, 1).astype(jnp.float32),
      slab)
    return _extract(out, n, cout, nblk, td, h, w)


def _avg_pool_222(v):
    n, c, d, h, w = v.shape
    return v.reshape(n, c, d // 2, 2, h // 2, 2, w // 2, 2).mean(axis=(3, 5, 7))


# ------------------------------- module forward --------------------------------

def res_block_down(x, params):
    """ResBlockDown forward.  x: (N, Cin, D, H, W) -> (N, Cout, D/2, H/2, W/2)."""
    w1, b1, w2, b2, wr, br = params
    n, cin, d, h, w = x.shape
    cout = w1.shape[0]
    assert d % 2 == 0 and h % 2 == 0 and w % 2 == 0
    x = x.astype(jnp.float32)
    sb = jnp.dtype(STREAM_DTYPE).itemsize

    # conv1 (3x3x3, pad 1) + LeakyReLU
    td1 = _choose_td(d, h, w, cin, cout, sb, 4)
    y1 = conv3_leaky(x, w1, b1, td1)                            # (N, Cout, D, H, W) f32

    # AvgPool3d(2) on both paths (pure bandwidth, left to XLA reshape+mean).
    # TODO(synk): fuse the pool into the conv1 epilogue (pool-cell-aligned depth tiles)
    # to avoid the full-resolution y1 HBM round trip.
    y1p = _avg_pool_222(y1)
    xpl = _avg_pool_222(x)

    # conv2 + LeakyReLU + residual 1x1x1 conv + add; 1/sqrt(2) folded into weights/biases
    # (valid because LeakyReLU is positively homogeneous: leaky(a*z) = a*leaky(z), a>0).
    d2, h2, w2d = d // 2, h // 2, w // 2
    td2 = _choose_td(d2, h2, w2d, cout + cin, cout, sb, 4)
    return conv3_leaky_residual(y1p, xpl, w2, b2, wr, br, td2)


# ------------------------------ pure-JAX reference ------------------------------

def ref_forward(x, params):
    w1, b1, w2, b2, wr, br = params

    def conv3d(v, wt, b, pad):
        y = lax.conv_general_dilated(
            v, wt, window_strides=(1, 1, 1), padding=[(pad, pad)] * 3,
            dimension_numbers=("NCDHW", "OIDHW", "NCDHW"))
        return y + b.reshape(1, -1, 1, 1, 1)

    leaky = lambda v: jnp.where(v >= 0, v, NEG_SLOPE * v)
    residual = conv3d(_avg_pool_222(x), wr, br, 0)
    y = leaky(conv3d(x, w1, b1, 1))
    y = _avg_pool_222(y)
    y = leaky(conv3d(y, w2, b2, 1))
    return (y + residual) * INV_SQRT2


# ------------------------------------ main --------------------------------------

if __name__ == "__main__":
    N, Cin, Cout, D = 2, 4, 8, 8            # x: (2, 4, 8, 8, 8) NCDHW

    key = jax.random.PRNGKey(0)
    ks = jax.random.split(key, 7)
    W1 = jax.random.normal(ks[0], (Cout, Cin, 3, 3, 3), jnp.float32) * 0.1
    b1 = jax.random.normal(ks[1], (Cout,), jnp.float32) * 0.1
    W2 = jax.random.normal(ks[2], (Cout, Cout, 3, 3, 3), jnp.float32) * 0.1
    b2 = jax.random.normal(ks[3], (Cout,), jnp.float32) * 0.1
    Wr = jax.random.normal(ks[4], (Cout, Cin, 1, 1, 1), jnp.float32) * 0.1
    br = jax.random.normal(ks[5], (Cout,), jnp.float32) * 0.1
    x = jax.random.normal(ks[6], (N, Cin, D, D, D), jnp.float32)
    params = (W1, b1, W2, b2, Wr, br)

    out = jax.block_until_ready(jax.jit(res_block_down)(x, params))
    ref = jax.block_until_ready(ref_forward(x, params))

    assert out.shape == (N, Cout, D // 2, D // 2, D // 2), out.shape
    # bf16 activation/weight streams (f32 accumulation) -> slightly loosened tolerance.
    if not jnp.allclose(out, ref, rtol=2e-2, atol=2e-2):
        raise AssertionError(
            f"mismatch vs reference, max abs err {jnp.max(jnp.abs(out - ref))}")

    print("KERNEL_OK")
</pallas_src>

<mosaic_0001>
module attributes {stable_mosaic.version = 11 : i64} {
  func.func @_conv3_leaky_kernel(%arg0: i32, %arg1: memref<27x8x4xbf16, #tpu.memory_space<vmem>>, %arg2: memref<8x1xf32, #tpu.memory_space<vmem>>, %arg3: memref<1x4x1152xbf16, #tpu.memory_space<vmem>>, %arg4: memref<1x8x896xf32, #tpu.memory_space<vmem>>) attributes {dimension_semantics = [#tpu.dimension_semantics<parallel>], iteration_bounds = array<i64: 2>, scalar_prefetch = 0 : i64, scratch_operands = 0 : i64, tpu.core_type = #tpu.core_type<tc>, window_params = [{pipeline_mode = #tpu.pipeline_mode<synchronous>, transform_indices = @transform_0, window_bounds = array<i64: 27, 8, 4>}, {pipeline_mode = #tpu.pipeline_mode<synchronous>, transform_indices = @transform_1, window_bounds = array<i64: 8, 1>}, {transform_indices = @transform_2, window_bounds = array<i64: 1, 4, 1152>}, {transform_indices = @transform_3, window_bounds = array<i64: 1, 8, 896>}]} {
    %c0 = arith.constant 0 : index
    %c0_0 = arith.constant 0 : index
    %c0_1 = arith.constant 0 : index
    %0 = vector.load %arg3[%c0, %c0_0, %c0_1] : memref<1x4x1152xbf16, #tpu.memory_space<vmem>>, vector<1x4x896xbf16>
    %1 = vector.shape_cast %0 : vector<1x4x896xbf16> to vector<4x896xbf16>
    %c0_2 = arith.constant 0 : index
    %c0_3 = arith.constant 0 : index
    %c0_4 = arith.constant 0 : index
    %2 = vector.load %arg1[%c0_2, %c0_3, %c0_4] : memref<27x8x4xbf16, #tpu.memory_space<vmem>>, vector<1x8x4xbf16>
    %3 = vector.shape_cast %2 : vector<1x8x4xbf16> to vector<8x4xbf16>
    %cst = arith.constant dense<0.000000e+00> : vector<8x896xf32>
    %4 = tpu.matmul %3, %1, %cst {dimension_numbers = #tpu.dot_dimension_numbers<[1], [0], [0], [1], [0, 0, 1, 1], [], []>} : vector<8x4xbf16>, vector<4x896xbf16>, vector<8x896xf32> -> vector<8x896xf32>
    %c0_5 = arith.constant 0 : index
    %c0_6 = arith.constant 0 : index
    %c1 = arith.constant 1 : index
    %5 = vector.load %arg3[%c0_5, %c0_6, %c1] : memref<1x4x1152xbf16, #tpu.memory_space<vmem>>, vector<1x4x896xbf16>
    %6 = vector.shape_cast %5 : vector<1x4x896xbf16> to vector<4x896xbf16>
    %c1_7 = arith.constant 1 : index
    %c0_8 = arith.constant 0 : index
    %c0_9 = arith.constant 0 : index
    %7 = vector.load %arg1[%c1_7, %c0_8, %c0_9] : memref<27x8x4xbf16, #tpu.memory_space<vmem>>, vector<1x8x4xbf16>
    %8 = vector.shape_cast %7 : vector<1x8x4xbf16> to vector<8x4xbf16>
    %cst_10 = arith.constant dense<0.000000e+00> : vector<8x896xf32>
    %9 = tpu.matmul %8, %6, %cst_10 {dimension_numbers = #tpu.dot_dimension_numbers<[1], [0], [0], [1], [0, 0, 1, 1], [], []>} : vector<8x4xbf16>, vector<4x896xbf16>, vector<8x896xf32> -> vector<8x896xf32>
    %10 = arith.addf %4, %9 : vector<8x896xf32>
    %c0_11 = arith.constant 0 : index
    %c0_12 = arith.constant 0 : index
    %c2 = arith.constant 2 : index
    %11 = vector.load %arg3[%c0_11, %c0_12, %c2] : memref<1x4x1152xbf16, #tpu.memory_space<vmem>>, vector<1x4x896xbf16>
    %12 = vector.shape_cast %11 : vector<1x4x896xbf16> to vector<4x896xbf16>
    %c2_13 = arith.constant 2 : index
    %c0_14 = arith.constant 0 : index
    %c0_15 = arith.constant 0 : index
    %13 = vector.load %arg1[%c2_13, %c0_14, %c0_15] : memref<27x8x4xbf16, #tpu.memory_space<vmem>>, vector<1x8x4xbf16>
    %14 = vector.shape_cast %13 : vector<1x8x4xbf16> to vector<8x4xbf16>
    %cst_16 = arith.constant dense<0.000000e+00> : vector<8x896xf32>
    %15 = tpu.matmul %14, %12, %cst_16 {dimension_numbers = #tpu.dot_dimension_numbers<[1], [0], [0], [1], [0, 0, 1, 1], [], []>} : vector<8x4xbf16>, vector<4x896xbf16>, vector<8x896xf32> -> vector<8x896xf32>
    %16 = arith.addf %10, %15 : vector<8x896xf32>
    %c0_17 = arith.constant 0 : index
    %c0_18 = arith.constant 0 : index
    %c10 = arith.constant 10 : index
    %17 = vector.load %arg3[%c0_17, %c0_18, %c10] : memref<1x4x1152xbf16, #tpu.memory_space<vmem>>, vector<1x4x896xbf16>
    %18 = vector.shape_cast %17 : vector<1x4x896xbf16> to vector<4x896xbf16>
    %c3 = arith.constant 3 : index
    %c0_19 = arith.constant 0 : index
    %c0_20 = arith.constant 0 : index
    %19 = vector.load %arg1[%c3, %c0_19, %c0_20] : memref<27x8x4xbf16, #tpu.memory_space<vmem>>, vector<1x8x4xbf16>
    %20 = vector.shape_cast %19 : vector<1x8x4xbf16> to vector<8x4xbf16>
    %cst_21 = arith.constant dense<0.000000e+00> : vector<8x896xf32>
    %21 = tpu.matmul %20, %18, %cst_21 {dimension_numbers = #tpu.dot_dimension_numbers<[1], [0], [0], [1], [0, 0, 1, 1], [], []>} : vector<8x4xbf16>, vector<4x896xbf16>, vector<8x896xf32> -> vector<8x896xf32>
    %22 = arith.addf %16, %21 : vector<8x896xf32>
    %c0_22 = arith.constant 0 : index
    %c0_23 = arith.constant 0 : index
    %c11 = arith.constant 11 : index
    %23 = vector.load %arg3[%c0_22, %c0_23, %c11] : memref<1x4x1152xbf16, #tpu.memory_space<vmem>>, vector<1x4x896xbf16>
    %24 = vector.shape_cast %23 : vector<1x4x896xbf16> to vector<4x896xbf16>
    %c4 = arith.constant 4 : index
    %c0_24 = arith.constant 0 : index
    %c0_25 = arith.constant 0 : index
    %25 = vector.load %arg1[%c4, %c0_24, %c0_25] : memref<27x8x4xbf16, #tpu.memory_space<vmem>>, vector<1x8x4xbf16>
    %26 = vector.shape_cast %25 : vector<1x8x4xbf16> to vector<8x4xbf16>
    %cst_26 = arith.constant dense<0.000000e+00> : vector<8x896xf32>
    %27 = tpu.matmul %26, %24, %cst_26 {dimension_numbers = #tpu.dot_dimension_numbers<[1], [0], [0], [1], [0, 0, 1, 1], [], []>} : vector<8x4xbf16>, vector<4x896xbf16>, vector<8x896xf32> -> vector<8x896xf32>
    %28 = arith.addf %22, %27 : vector<8x896xf32>
    %c0_27 = arith.constant 0 : index
    %c0_28 = arith.constant 0 : index
    %c12 = arith.constant 12 : index
    %29 = vector.load %arg3[%c0_27, %c0_28, %c12] : memref<1x4x1152xbf16, #tpu.memory_space<vmem>>, vector<1x4x896xbf16>
    %30 = vector.shape_cast %29 : vector<1x4x896xbf16> to vector<4x896xbf16>
    %c5 = arith.constant 5 : index
    %c0_29 = arith.constant 0 : index
    %c0_30 = arith.constant 0 : index
    %31 = vector.load %arg1[%c5, %c0_29, %c0_30] : memref<27x8x4xbf16, #tpu.memory_space<vmem>>, vector<1x8x4xbf16>
    %32 = vector.shape_cast %31 : vector<1x8x4xbf16> to vector<8x4xbf16>
    %cst_31 = arith.constant dense<0.000000e+00> : vector<8x896xf32>
    %33 = tpu.matmul %32, %30, %cst_31 {dimension_numbers = #tpu.dot_dimension_numbers<[1], [0], [0], [1], [0, 0, 1, 1], [], []>} : vector<8x4xbf16>, vector<4x896xbf16>, vector<8x896xf32> -> vector<8x896xf32>
    %34 = arith.addf %28, %33 : vector<8x896xf32>
    %c0_32 = arith.constant 0 : index
    %c0_33 = arith.constant 0 : index
    %c20 = arith.constant 20 : index
    %35 = vector.load %arg3[%c0_32, %c0_33, %c20] : memref<1x4x1152xbf16, #tpu.memory_space<vmem>>, vector<1x4x896xbf16>
    %36 = vector.shape_cast %35 : vector<1x4x896xbf16> to vector<4x896xbf16>
    %c6 = arith.constant 6 : index
    %c0_34 = arith.constant 0 : index
    %c0_35 = arith.constant 0 : index
    %37 = vector.load %arg1[%c6, %c0_34, %c0_35] : memref<27x8x4xbf16, #tpu.memory_space<vmem>>, vector<1x8x4xbf16>
    %38 = vector.shape_cast %37 : vector<1x8x4xbf16> to vector<8x4xbf16>
    %cst_36 = arith.constant dense<0.000000e+00> : vector<8x896xf32>
    %39 = tpu.matmul %38, %36, %cst_36 {dimension_numbers = #tpu.dot_dimension_numbers<[1], [0], [0], [1], [0, 0, 1, 1], [], []>} : vector<8x4xbf16>, vector<4x896xbf16>, vector<8x896xf32> -> vector<8x896xf32>
    %40 = arith.addf %34, %39 : vector<8x896xf32>
    %c0_37 = arith.constant 0 : index
    %c0_38 = arith.constant 0 : index
    %c21 = arith.constant 21 : index
    %41 = vector.load %arg3[%c0_37, %c0_38, %c21] : memref<1x4x1152xbf16, #tpu.memory_space<vmem>>, vector<1x4x896xbf16>
    %42 = vector.shape_cast %41 : vector<1x4x896xbf16> to vector<4x896xbf16>
    %c7 = arith.constant 7 : index
    %c0_39 = arith.constant 0 : index
    %c0_40 = arith.constant 0 : index
    %43 = vector.load %arg1[%c7, %c0_39, %c0_40] : memref<27x8x4xbf16, #tpu.memory_space<vmem>>, vector<1x8x4xbf16>
    %44 = vector.shape_cast %43 : vector<1x8x4xbf16> to vector<8x4xbf16>
    %cst_41 = arith.constant dense<0.000000e+00> : vector<8x896xf32>
    %45 = tpu.matmul %44, %42, %cst_41 {dimension_numbers = #tpu.dot_dimension_numbers<[1], [0], [0], [1], [0, 0, 1, 1], [], []>} : vector<8x4xbf16>, vector<4x896xbf16>, vector<8x896xf32> -> vector<8x896xf32>
    %46 = arith.addf %40, %45 : vector<8x896xf32>
    %c0_42 = arith.constant 0 : index
    %c0_43 = arith.constant 0 : index
    %c22 = arith.constant 22 : index
    %47 = vector.load %arg3[%c0_42, %c0_43, %c22] : memref<1x4x1152xbf16, #tpu.memory_space<vmem>>, vector<1x4x896xbf16>
    %48 = vector.shape_cast %47 : vector<1x4x896xbf16> to vector<4x896xbf16>
    %c8 = arith.constant 8 : index
    %c0_44 = arith.constant 0 : index
    %c0_45 = arith.constant 0 : index
    %49 = vector.load %arg1[%c8, %c0_44, %c0_45] : memref<27x8x4xbf16, #tpu.memory_space<vmem>>, vector<1x8x4xbf16>
    %50 = vector.shape_cast %49 : vector<1x8x4xbf16> to vector<8x4xbf16>
    %cst_46 = arith.constant dense<0.000000e+00> : vector<8x896xf32>
    %51 = tpu.matmul %50, %48, %cst_46 {dimension_numbers = #tpu.dot_dimension_numbers<[1], [0], [0], [1], [0, 0, 1, 1], [], []>} : vector<8x4xbf16>, vector<4x896xbf16>, vector<8x896xf32> -> vector<8x896xf32>
    %52 = arith.addf %46, %51 : vector<8x896xf32>
    %c0_47 = arith.constant 0 : index
    %c0_48 = arith.constant 0 : index
    %c100 = arith.constant 100 : index
    %53 = vector.load %arg3[%c0_47, %c0_48, %c100] : memref<1x4x1152xbf16, #tpu.memory_space<vmem>>, vector<1x4x896xbf16>
    %54 = vector.shape_cast %53 : vector<1x4x896xbf16> to vector<4x896xbf16>
    %c9 = arith.constant 9 : index
    %c0_49 = arith.constant 0 : index
    %c0_50 = arith.constant 0 : index
    %55 = vector.load %arg1[%c9, %c0_49, %c0_50] : memref<27x8x4xbf16, #tpu.memory_space<vmem>>, vector<1x8x4xbf16>
    %56 = vector.shape_cast %55 : vector<1x8x4xbf16> to vector<8x4xbf16>
    %cst_51 = arith.constant dense<0.000000e+00> : vector<8x896xf32>
    %57 = tpu.matmul %56, %54, %cst_51 {dimension_numbers = #tpu.dot_dimension_numbers<[1], [0], [0], [1], [0, 0, 1, 1], [], []>} : vector<8x4xbf16>, vector<4x896xbf16>, vector<8x896xf32> -> vector<8x896xf32>
    %58 = arith.addf %52, %57 : vector<8x896xf32>
    %c0_52 = arith.constant 0 : index
    %c0_53 = arith.constant 0 : index
    %c101 = arith.constant 101 : index
    %59 = vector.load %arg3[%c0_52, %c0_53, %c101] : memref<1x4x1152xbf16, #tpu.memory_space<vmem>>, vector<1x4x896xbf16>
    %60 = vector.shape_cast %59 : vector<1x4x896xbf16> to vector<4x896xbf16>
    %c10_54 = arith.constant 10 : index
    %c0_55 = arith.constant 0 : index
    %c0_56 = arith.constant 0 : index
    %61 = vector.load %arg1[%c10_54, %c0_55, %c0_56] : memref<27x8x4xbf16, #tpu.memory_space<vmem>>, vector<1x8x4xbf16>
    %62 = vector.shape_cast %61 : vector<1x8x4xbf16> to vector<8x4xbf16>
    %cst_57 = arith.constant dense<0.000000e+00> : vector<8x896xf32>
    %63 = tpu.matmul %62, %60, %cst_57 {dimension_numbers = #tpu.dot_dimension_numbers<[1], [0], [0], [1], [0, 0, 1, 1], [], []>} : vector<8x4xbf16>, vector<4x896xbf16>, vector<8x896xf32> -> vector<8x896xf32>
    %64 = arith.addf %58, %63 : vector<8x896xf32>
    %c0_58 = arith.constant 0 : index
    %c0_59 = arith.constant 0 : index
    %c102 = arith.constant 102 : index
    %65 = vector.load %arg3[%c0_58, %c0_59, %c102] : memref<1x4x1152xbf16, #tpu.memory_space<vmem>>, vector<1x4x896xbf16>
    %66 = vector.shape_cast %65 : vector<1x4x896xbf16> to vector<4x896xbf16>
    %c11_60 = arith.constant 11 : index
    %c0_61 = arith.constant 0 : index
    %c0_62 = arith.constant 0 : index
    %67 = vector.load %arg1[%c11_60, %c0_61, %c0_62] : memref<27x8x4xbf16, #tpu.memory_space<vmem>>, vector<1x8x4xbf16>
    %68 = vector.shape_cast %67 : vector<1x8x4xbf16> to vector<8x4xbf16>
    %cst_63 = arith.constant dense<0.000000e+00> : vector<8x896xf32>
    %69 = tpu.matmul %68, %66, %cst_63 {dimension_numbers = #tpu.dot_dimension_numbers<[1], [0], [0], [1], [0, 0, 1, 1], [], []>} : vector<8x4xbf16>, vector<4x896xbf16>, vector<8x896xf32> -> vector<8x896xf32>
    %70 = arith.addf %64, %69 : vector<8x896xf32>
    %c0_64 = arith.constant 0 : index
    %c0_65 = arith.constant 0 : index
    %c110 = arith.constant 110 : index
    %71 = vector.load %arg3[%c0_64, %c0_65, %c110] : memref<1x4x1152xbf16, #tpu.memory_space<vmem>>, vector<1x4x896xbf16>
    %72 = vector.shape_cast %71 : vector<1x4x896xbf16> to vector<4x896xbf16>
    %c12_66 = arith.constant 12 : index
    %c0_67 = arith.constant 0 : index
    %c0_68 = arith.constant 0 : index
    %73 = vector.load %arg1[%c12_66, %c0_67, %c0_68] : memref<27x8x4xbf16, #tpu.memory_space<vmem>>, vector<1x8x4xbf16>
    %74 = vector.shape_cast %73 : vector<1x8x4xbf16> to vector<8x4xbf16>
    %cst_69 = arith.constant dense<0.000000e+00> : vector<8x896xf32>
    %75 = tpu.matmul %74, %72, %cst_69 {dimension_numbers = #tpu.dot_dimension_numbers<[1], [0], [0], [1], [0, 0, 1, 1], [], []>} : vector<8x4xbf16>, vector<4x896xbf16>, vector<8x896xf32> -> vector<8x896xf32>
    %76 = arith.addf %70, %75 : vector<8x896xf32>
    %c0_70 = arith.constant 0 : index
    %c0_71 = arith.constant 0 : index
    %c111 = arith.constant 111 : index
    %77 = vector.load %arg3[%c0_70, %c0_71, %c111] : memref<1x4x1152xbf16, #tpu.memory_space<vmem>>, vector<1x4x896xbf16>
    %78 = vector.shape_cast %77 : vector<1x4x896xbf16> to vector<4x896xbf16>
    %c13 = arith.constant 13 : index
    %c0_72 = arith.constant 0 : index
    %c0_73 = arith.constant 0 : index
    %79 = vector.load %arg1[%c13, %c0_72, %c0_73] : memref<27x8x4xbf16, #tpu.memory_space<vmem>>, vector<1x8x4xbf16>
    %80 = vector.shape_cast %79 : vector<1x8x4xbf16> to vector<8x4xbf16>
    %cst_74 = arith.constant dense<0.000000e+00> : vector<8x896xf32>
    %81 = tpu.matmul %80, %78, %cst_74 {dimension_numbers = #tpu.dot_dimension_numbers<[1], [0], [0], [1], [0, 0, 1, 1], [], []>} : vector<8x4xbf16>, vector<4x896xbf16>, vector<8x896xf32> -> vector<8x896xf32>
    %82 = arith.addf %76, %81 : vector<8x896xf32>
    %c0_75 = arith.constant 0 : index
    %c0_76 = arith.constant 0 : index
    %c112 = arith.constant 112 : index
    %83 = vector.load %arg3[%c0_75, %c0_76, %c112] : memref<1x4x1152xbf16, #tpu.memory_space<vmem>>, vector<1x4x896xbf16>
    %84 = vector.shape_cast %83 : vector<1x4x896xbf16> to vector<4x896xbf16>
    %c14 = arith.constant 14 : index
    %c0_77 = arith.constant 0 : index
    %c0_78 = arith.constant 0 : index
    %85 = vector.load %arg1[%c14, %c0_77, %c0_78] : memref<27x8x4xbf16, #tpu.memory_space<vmem>>, vector<1x8x4xbf16>
    %86 = vector.shape_cast %85 : vector<1x8x4xbf16> to vector<8x4xbf16>
    %cst_79 = arith.constant dense<0.000000e+00> : vector<8x896xf32>
    %87 = tpu.matmul %86, %84, %cst_79 {dimension_numbers = #tpu.dot_dimension_numbers<[1], [0], [0], [1], [0, 0, 1, 1], [], []>} : vector<8x4xbf16>, vector<4x896xbf16>, vector<8x896xf32> -> vector<8x896xf32>
    %88 = arith.addf %82, %87 : vector<8x896xf32>
    %c0_80 = arith.constant 0 : index
    %c0_81 = arith.constant 0 : index
    %c120 = arith.constant 120 : index
    %89 = vector.load %arg3[%c0_80, %c0_81, %c120] : memref<1x4x1152xbf16, #tpu.memory_space<vmem>>, vector<1x4x896xbf16>
    %90 = vector.shape_cast %89 : vector<1x4x896xbf16> to vector<4x896xbf16>
    %c15 = arith.constant 15 : index
    %c0_82 = arith.constant 0 : index
    %c0_83 = arith.constant 0 : index
    %91 = vector.load %arg1[%c15, %c0_82, %c0_83] : memref<27x8x4xbf16, #tpu.memory_space<vmem>>, vector<1x8x4xbf16>
    %92 = vector.shape_cast %91 : vector<1x8x4xbf16> to vector<8x4xbf16>
    %cst_84 = arith.constant dense<0.000000e+00> : vector<8x896xf32>
    %93 = tpu.matmul %92, %90, %cst_84 {dimension_numbers = #tpu.dot_dimension_numbers<[1], [0], [0], [1], [0, 0, 1, 1], [], []>} : vector<8x4xbf16>, vector<4x896xbf16>, vector<8x896xf32> -> vector<8x896xf32>
    %94 = arith.addf %88, %93 : vector<8x896xf32>
    %c0_85 = arith.constant 0 : index
    %c0_86 = arith.constant 0 : index
    %c121 = arith.constant 121 : index
    %95 = vector.load %arg3[%c0_85, %c0_86, %c121] : memref<1x4x1152xbf16, #tpu.memory_space<vmem>>, vector<1x4x896xbf16>
    %96 = vector.shape_cast %95 : vector<1x4x896xbf16> to vector<4x896xbf16>
    %c16 = arith.constant 16 : index
    %c0_87 = arith.constant 0 : index
    %c0_88 = arith.constant 0 : index
    %97 = vector.load %arg1[%c16, %c0_87, %c0_88] : memref<27x8x4xbf16, #tpu.memory_space<vmem>>, vector<1x8x4xbf16>
    %98 = vector.shape_cast %97 : vector<1x8x4xbf16> to vector<8x4xbf16>
    %cst_89 = arith.constant dense<0.000000e+00> : vector<8x896xf32>
    %99 = tpu.matmul %98, %96, %cst_89 {dimension_numbers = #tpu.dot_dimension_numbers<[1], [0], [0], [1], [0, 0, 1, 1], [], []>} : vector<8x4xbf16>, vector<4x896xbf16>, vector<8x896xf32> -> vector<8x896xf32>
    %100 = arith.addf %94, %99 : vector<8x896xf32>
    %c0_90 = arith.constant 0 : index
    %c0_91 = arith.constant 0 : index
    %c122 = arith.constant 122 : index
    %101 = vector.load %arg3[%c0_90, %c0_91, %c122] : memref<1x4x1152xbf16, #tpu.memory_space<vmem>>, vector<1x4x896xbf16>
    %102 = vector.shape_cast %101 : vector<1x4x896xbf16> to vector<4x896xbf16>
    %c17 = arith.constant 17 : index
    %c0_92 = arith.constant 0 : index
    %c0_93 = arith.constant 0 : index
    %103 = vector.load %arg1[%c17, %c0_92, %c0_93] : memref<27x8x4xbf16, #tpu.memory_space<vmem>>, vector<1x8x4xbf16>
    %104 = vector.shape_cast %103 : vector<1x8x4xbf16> to vector<8x4xbf16>
    %cst_94 = arith.constant dense<0.000000e+00> : vector<8x896xf32>
    %105 = tpu.matmul %104, %102, %cst_94 {dimension_numbers = #tpu.dot_dimension_numbers<[1], [0], [0], [1], [0, 0, 1, 1], [], []>} : vector<8x4xbf16>, vector<4x896xbf16>, vector<8x896xf32> -> vector<8x896xf32>
    %106 = arith.addf %100, %105 : vector<8x896xf32>
    %c0_95 = arith.constant 0 : index
    %c0_96 = arith.constant 0 : index
    %c200 = arith.constant 200 : index
    %107 = vector.load %arg3[%c0_95, %c0_96, %c200] : memref<1x4x1152xbf16, #tpu.memory_space<vmem>>, vector<1x4x896xbf16>
    %108 = vector.shape_cast %107 : vector<1x4x896xbf16> to vector<4x896xbf16>
    %c18 = arith.constant 18 : index
    %c0_97 = arith.constant 0 : index
    %c0_98 = arith.constant 0 : index
    %109 = vector.load %arg1[%c18, %c0_97, %c0_98] : memref<27x8x4xbf16, #tpu.memory_space<vmem>>, vector<1x8x4xbf16>
    %110 = vector.shape_cast %109 : vector<1x8x4xbf16> to vector<8x4xbf16>
    %cst_99 = arith.constant dense<0.000000e+00> : vector<8x896xf32>
    %111 = tpu.matmul %110, %108, %cst_99 {dimension_numbers = #tpu.dot_dimension_numbers<[1], [0], [0], [1], [0, 0, 1, 1], [], []>} : vector<8x4xbf16>, vector<4x896xbf16>, vector<8x896xf32> -> vector<8x896xf32>
    %112 = arith.addf %106, %111 : vector<8x896xf32>
    %c0_100 = arith.constant 0 : index
    %c0_101 = arith.constant 0 : index
    %c201 = arith.constant 201 : index
    %113 = vector.load %arg3[%c0_100, %c0_101, %c201] : memref<1x4x1152xbf16, #tpu.memory_space<vmem>>, vector<1x4x896xbf16>
    %114 = vector.shape_cast %113 : vector<1x4x896xbf16> to vector<4x896xbf16>
    %c19 = arith.constant 19 : index
    %c0_102 = arith.constant 0 : index
    %c0_103 = arith.constant 0 : index
    %115 = vector.load %arg1[%c19, %c0_102, %c0_103] : memref<27x8x4xbf16, #tpu.memory_space<vmem>>, vector<1x8x4xbf16>
    %116 = vector.shape_cast %115 : vector<1x8x4xbf16> to vector<8x4xbf16>
    %cst_104 = arith.constant dense<0.000000e+00> : vector<8x896xf32>
    %117 = tpu.matmul %116, %114, %cst_104 {dimension_numbers = #tpu.dot_dimension_numbers<[1], [0], [0], [1], [0, 0, 1, 1], [], []>} : vector<8x4xbf16>, vector<4x896xbf16>, vector<8x896xf32> -> vector<8x896xf32>
    %118 = arith.addf %112, %117 : vector<8x896xf32>
    %c0_105 = arith.constant 0 : index
    %c0_106 = arith.constant 0 : index
    %c202 = arith.constant 202 : index
    %119 = vector.load %arg3[%c0_105, %c0_106, %c202] : memref<1x4x1152xbf16, #tpu.memory_space<vmem>>, vector<1x4x896xbf16>
    %120 = vector.shape_cast %119 : vector<1x4x896xbf16> to vector<4x896xbf16>
    %c20_107 = arith.constant 20 : index
    %c0_108 = arith.constant 0 : index
    %c0_109 = arith.constant 0 : index
    %121 = vector.load %arg1[%c20_107, %c0_108, %c0_109] : memref<27x8x4xbf16, #tpu.memory_space<vmem>>, vector<1x8x4xbf16>
    %122 = vector.shape_cast %121 : vector<1x8x4xbf16> to vector<8x4xbf16>
    %cst_110 = arith.constant dense<0.000000e+00> : vector<8x896xf32>
    %123 = tpu.matmul %122, %120, %cst_110 {dimension_numbers = #tpu.dot_dimension_numbers<[1], [0], [0], [1], [0, 0, 1, 1], [], []>} : vector<8x4xbf16>, vector<4x896xbf16>, vector<8x896xf32> -> vector<8x896xf32>
    %124 = arith.addf %118, %123 : vector<8x896xf32>
    %c0_111 = arith.constant 0 : index
    %c0_112 = arith.constant 0 : index
    %c210 = arith.constant 210 : index
    %125 = vector.load %arg3[%c0_111, %c0_112, %c210] : memref<1x4x1152xbf16, #tpu.memory_space<vmem>>, vector<1x4x896xbf16>
    %126 = vector.shape_cast %125 : vector<1x4x896xbf16> to vector<4x896xbf16>
    %c21_113 = arith.constant 21 : index
    %c0_114 = arith.constant 0 : index
    %c0_115 = arith.constant 0 : index
    %127 = vector.load %arg1[%c21_113, %c0_114, %c0_115] : memref<27x8x4xbf16, #tpu.memory_space<vmem>>, vector<1x8x4xbf16>
    %128 = vector.shape_cast %127 : vector<1x8x4xbf16> to vector<8x4xbf16>
    %cst_116 = arith.constant dense<0.000000e+00> : vector<8x896xf32>
    %129 = tpu.matmul %128, %126, %cst_116 {dimension_numbers = #tpu.dot_dimension_numbers<[1], [0], [0], [1], [0, 0, 1, 1], [], []>} : vector<8x4xbf16>, vector<4x896xbf16>, vector<8x896xf32> -> vector<8x896xf32>
    %130 = arith.addf %124, %129 : vector<8x896xf32>
    %c0_117 = arith.constant 0 : index
    %c0_118 = arith.constant 0 : index
    %c211 = arith.constant 211 : index
    %131 = vector.load %arg3[%c0_117, %c0_118, %c211] : memref<1x4x1152xbf16, #tpu.memory_space<vmem>>, vector<1x4x896xbf16>
    %132 = vector.shape_cast %131 : vector<1x4x896xbf16> to vector<4x896xbf16>
    %c22_119 = arith.constant 22 : index
    %c0_120 = arith.constant 0 : index
    %c0_121 = arith.constant 0 : index
    %133 = vector.load %arg1[%c22_119, %c0_120, %c0_121] : memref<27x8x4xbf16, #tpu.memory_space<vmem>>, vector<1x8x4xbf16>
    %134 = vector.shape_cast %133 : vector<1x8x4xbf16> to vector<8x4xbf16>
    %cst_122 = arith.constant dense<0.000000e+00> : vector<8x896xf32>
    %135 = tpu.matmul %134, %132, %cst_122 {dimension_numbers = #tpu.dot_dimension_numbers<[1], [0], [0], [1], [0, 0, 1, 1], [], []>} : vector<8x4xbf16>, vector<4x896xbf16>, vector<8x896xf32> -> vector<8x896xf32>
    %136 = arith.addf %130, %135 : vector<8x896xf32>
    %c0_123 = arith.constant 0 : index
    %c0_124 = arith.constant 0 : index
    %c212 = arith.constant 212 : index
    %137 = vector.load %arg3[%c0_123, %c0_124, %c212] : memref<1x4x1152xbf16, #tpu.memory_space<vmem>>, vector<1x4x896xbf16>
    %138 = vector.shape_cast %137 : vector<1x4x896xbf16> to vector<4x896xbf16>
    %c23 = arith.constant 23 : index
    %c0_125 = arith.constant 0 : index
    %c0_126 = arith.constant 0 : index
    %139 = vector.load %arg1[%c23, %c0_125, %c0_126] : memref<27x8x4xbf16, #tpu.memory_space<vmem>>, vector<1x8x4xbf16>
    %140 = vector.shape_cast %139 : vector<1x8x4xbf16> to vector<8x4xbf16>
    %cst_127 = arith.constant dense<0.000000e+00> : vector<8x896xf32>
    %141 = tpu.matmul %140, %138, %cst_127 {dimension_numbers = #tpu.dot_dimension_numbers<[1], [0], [0], [1], [0, 0, 1, 1], [], []>} : vector<8x4xbf16>, vector<4x896xbf16>, vector<8x896xf32> -> vector<8x896xf32>
    %142 = arith.addf %136, %141 : vector<8x896xf32>
    %c0_128 = arith.constant 0 : index
    %c0_129 = arith.constant 0 : index
    %c220 = arith.constant 220 : index
    %143 = vector.load %arg3[%c0_128, %c0_129, %c220] : memref<1x4x1152xbf16, #tpu.memory_space<vmem>>, vector<1x4x896xbf16>
    %144 = vector.shape_cast %143 : vector<1x4x896xbf16> to vector<4x896xbf16>
    %c24 = arith.constant 24 : index
    %c0_130 = arith.constant 0 : index
    %c0_131 = arith.constant 0 : index
    %145 = vector.load %arg1[%c24, %c0_130, %c0_131] : memref<27x8x4xbf16, #tpu.memory_space<vmem>>, vector<1x8x4xbf16>
    %146 = vector.shape_cast %145 : vector<1x8x4xbf16> to vector<8x4xbf16>
    %cst_132 = arith.constant dense<0.000000e+00> : vector<8x896xf32>
    %147 = tpu.matmul %146, %144, %cst_132 {dimension_numbers = #tpu.dot_dimension_numbers<[1], [0], [0], [1], [0, 0, 1, 1], [], []>} : vector<8x4xbf16>, vector<4x896xbf16>, vector<8x896xf32> -> vector<8x896xf32>
    %148 = arith.addf %142, %147 : vector<8x896xf32>
    %c0_133 = arith.constant 0 : index
    %c0_134 = arith.constant 0 : index
    %c221 = arith.constant 221 : index
    %149 = vector.load %arg3[%c0_133, %c0_134, %c221] : memref<1x4x1152xbf16, #tpu.memory_space<vmem>>, vector<1x4x896xbf16>
    %150 = vector.shape_cast %149 : vector<1x4x896xbf16> to vector<4x896xbf16>
    %c25 = arith.constant 25 : index
    %c0_135 = arith.constant 0 : index
    %c0_136 = arith.constant 0 : index
    %151 = vector.load %arg1[%c25, %c0_135, %c0_136] : memref<27x8x4xbf16, #tpu.memory_space<vmem>>, vector<1x8x4xbf16>
    %152 = vector.shape_cast %151 : vector<1x8x4xbf16> to vector<8x4xbf16>
    %cst_137 = arith.constant dense<0.000000e+00> : vector<8x896xf32>
    %153 = tpu.matmul %152, %150, %cst_137 {dimension_numbers = #tpu.dot_dimension_numbers<[1], [0], [0], [1], [0, 0, 1, 1], [], []>} : vector<8x4xbf16>, vector<4x896xbf16>, vector<8x896xf32> -> vector<8x896xf32>
    %154 = arith.addf %148, %153 : vector<8x896xf32>
    %c0_138 = arith.constant 0 : index
    %c0_139 = arith.constant 0 : index
    %c222 = arith.constant 222 : index
    %155 = vector.load %arg3[%c0_138, %c0_139, %c222] : memref<1x4x1152xbf16, #tpu.memory_space<vmem>>, vector<1x4x896xbf16>
    %156 = vector.shape_cast %155 : vector<1x4x896xbf16> to vector<4x896xbf16>
    %c26 = arith.constant 26 : index
    %c0_140 = arith.constant 0 : index
    %c0_141 = arith.constant 0 : index
    %157 = vector.load %arg1[%c26, %c0_140, %c0_141] : memref<27x8x4xbf16, #tpu.memory_space<vmem>>, vector<1x8x4xbf16>
    %158 = vector.shape_cast %157 : vector<1x8x4xbf16> to vector<8x4xbf16>
    %cst_142 = arith.constant dense<0.000000e+00> : vector<8x896xf32>
    %159 = tpu.matmul %158, %156, %cst_142 {dimension_numbers = #tpu.dot_dimension_numbers<[1], [0], [0], [1], [0, 0, 1, 1], [], []>} : vector<8x4xbf16>, vector<4x896xbf16>, vector<8x896xf32> -> vector<8x896xf32>
    %160 = arith.addf %154, %159 : vector<8x896xf32>
    %c0_143 = arith.constant 0 : index
    %c0_144 = arith.constant 0 : index
    %161 = vector.load %arg2[%c0_143, %c0_144] : memref<8x1xf32, #tpu.memory_space<vmem>>, vector<8x1xf32>
    %162 = vector.broadcast %161 : vector<8x1xf32> to vector<8x896xf32>
    %163 = arith.addf %160, %162 : vector<8x896xf32>
    %cst_145 = arith.constant 0.00999999977 : f32
    %164 = vector.broadcast %cst_145 : f32 to vector<8x896xf32>
    %165 = arith.mulf %164, %163 : vector<8x896xf32>
    %166 = arith.maximumf %163, %165 : vector<8x896xf32>
    %c0_146 = arith.constant 0 : index
    %c0_147 = arith.constant 0 : index
    %c0_148 = arith.constant 0 : index
    %167 = vector.load %arg4[%c0_146, %c0_147, %c0_148] : memref<1x8x896xf32, #tpu.memory_space<vmem>>, vector<1x8x896xf32>
    %168 = vector.shape_cast %167 : vector<1x8x896xf32> to vector<8x896xf32>
    %169 = vector.shape_cast %166 : vector<8x896xf32> to vector<1x8x896xf32>
    tpu.vector_store %arg4[%c0_146, %c0_147, %c0_148], %169 {strides = array<i32>} : memref<1x8x896xf32, #tpu.memory_space<vmem>>, vector<1x8x896xf32>,
    return
  }
  func.func @transform_0(%arg0: i32) -> (i32, i32, i32) {
    %c0_i32 = arith.constant 0 : i32
    %c0_i32_0 = arith.constant 0 : i32
    %c0_i32_1 = arith.constant 0 : i32
    %c0_i32_2 = arith.constant 0 : i32
    return %c0_i32, %c0_i32_0, %c0_i32_1 : i32, i32, i32
  }
  func.func @transform_1(%arg0: i32) -> (i32, i32) {
    %c0_i32 = arith.constant 0 : i32
    %c0_i32_0 = arith.constant 0 : i32
    %c0_i32_1 = arith.constant 0 : i32
    return %c0_i32, %c0_i32_0 : i32, i32
  }
  func.func @transform_2(%arg0: i32) -> (i32, i32, i32) {
    %c0_i32 = arith.constant 0 : i32
    %c0_i32_0 = arith.constant 0 : i32
    %c0_i32_1 = arith.constant 0 : i32
    return %arg0, %c0_i32, %c0_i32_0 : i32, i32, i32
  }
  func.func @transform_3(%arg0: i32) -> (i32, i32, i32) {
    %c0_i32 = arith.constant 0 : i32
    %c0_i32_0 = arith.constant 0 : i32
    %c0_i32_1 = arith.constant 0 : i32
    return %arg0, %c0_i32, %c0_i32_0 : i32, i32, i32
  }
}

module attributes {stable_mosaic.version = 11 : i64} {
  func.func @_conv3_leaky_res_kernel(%arg0: i32, %arg1: memref<27x8x8xbf16, #tpu.memory_space<vmem>>, %arg2: memref<8x1xf32, #tpu.memory_space<vmem>>, %arg3: memref<8x4xbf16, #tpu.memory_space<vmem>>, %arg4: memref<8x1xf32, #tpu.memory_space<vmem>>, %arg5: memref<1x12x384xbf16, #tpu.memory_space<vmem>>, %arg6: memref<1x8x256xf32, #tpu.memory_space<vmem>>) attributes {dimension_semantics = [#tpu.dimension_semantics<parallel>], iteration_bounds = array<i64: 2>, scalar_prefetch = 0 : i64, scratch_operands = 0 : i64, tpu.core_type = #tpu.core_type<tc>, window_params = [{pipeline_mode = #tpu.pipeline_mode<synchronous>, transform_indices = @transform_0, window_bounds = array<i64: 27, 8, 8>}, {pipeline_mode = #tpu.pipeline_mode<synchronous>, transform_indices = @transform_1, window_bounds = array<i64: 8, 1>}, {pipeline_mode = #tpu.pipeline_mode<synchronous>, transform_indices = @transform_2, window_bounds = array<i64: 8, 4>}, {pipeline_mode = #tpu.pipeline_mode<synchronous>, transform_indices = @transform_3, window_bounds = array<i64: 8, 1>}, {transform_indices = @transform_4, window_bounds = array<i64: 1, 12, 384>}, {transform_indices = @transform_5, window_bounds = array<i64: 1, 8, 256>}]} {
    %c0 = arith.constant 0 : index
    %c0_0 = arith.constant 0 : index
    %c0_1 = arith.constant 0 : index
    %0 = vector.load %arg5[%c0, %c0_0, %c0_1] : memref<1x12x384xbf16, #tpu.memory_space<vmem>>, vector<1x8x256xbf16>
    %1 = vector.shape_cast %0 : vector<1x8x256xbf16> to vector<8x256xbf16>
    %c0_2 = arith.constant 0 : index
    %c0_3 = arith.constant 0 : index
    %c0_4 = arith.constant 0 : index
    %2 = vector.load %arg1[%c0_2, %c0_3, %c0_4] : memref<27x8x8xbf16, #tpu.memory_space<vmem>>, vector<1x8x8xbf16>
    %3 = vector.shape_cast %2 : vector<1x8x8xbf16> to vector<8x8xbf16>
    %cst = arith.constant dense<0.000000e+00> : vector<8x256xf32>
    %4 = tpu.matmul %3, %1, %cst {dimension_numbers = #tpu.dot_dimension_numbers<[1], [0], [0], [1], [0, 0, 1, 1], [], []>} : vector<8x8xbf16>, vector<8x256xbf16>, vector<8x256xf32> -> vector<8x256xf32>
    %c0_5 = arith.constant 0 : index
    %c0_6 = arith.constant 0 : index
    %c1 = arith.constant 1 : index
    %5 = vector.load %arg5[%c0_5, %c0_6, %c1] : memref<1x12x384xbf16, #tpu.memory_space<vmem>>, vector<1x8x256xbf16>
    %6 = vector.shape_cast %5 : vector<1x8x256xbf16> to vector<8x256xbf16>
    %c1_7 = arith.constant 1 : index
    %c0_8 = arith.constant 0 : index
    %c0_9 = arith.constant 0 : index
    %7 = vector.load %arg1[%c1_7, %c0_8, %c0_9] : memref<27x8x8xbf16, #tpu.memory_space<vmem>>, vector<1x8x8xbf16>
    %8 = vector.shape_cast %7 : vector<1x8x8xbf16> to vector<8x8xbf16>
    %cst_10 = arith.constant dense<0.000000e+00> : vector<8x256xf32>
    %9 = tpu.matmul %8, %6, %cst_10 {dimension_numbers = #tpu.dot_dimension_numbers<[1], [0], [0], [1], [0, 0, 1, 1], [], []>} : vector<8x8xbf16>, vector<8x256xbf16>, vector<8x256xf32> -> vector<8x256xf32>
    %10 = arith.addf %4, %9 : vector<8x256xf32>
    %c0_11 = arith.constant 0 : index
    %c0_12 = arith.constant 0 : index
    %c2 = arith.constant 2 : index
    %11 = vector.load %arg5[%c0_11, %c0_12, %c2] : memref<1x12x384xbf16, #tpu.memory_space<vmem>>, vector<1x8x256xbf16>
    %12 = vector.shape_cast %11 : vector<1x8x256xbf16> to vector<8x256xbf16>
    %c2_13 = arith.constant 2 : index
    %c0_14 = arith.constant 0 : index
    %c0_15 = arith.constant 0 : index
    %13 = vector.load %arg1[%c2_13, %c0_14, %c0_15] : memref<27x8x8xbf16, #tpu.memory_space<vmem>>, vector<1x8x8xbf16>
    %14 = vector.shape_cast %13 : vector<1x8x8xbf16> to vector<8x8xbf16>
    %cst_16 = arith.constant dense<0.000000e+00> : vector<8x256xf32>
    %15 = tpu.matmul %14, %12, %cst_16 {dimension_numbers = #tpu.dot_dimension_numbers<[1], [0], [0], [1], [0, 0, 1, 1], [], []>} : vector<8x8xbf16>, vector<8x256xbf16>, vector<8x256xf32> -> vector<8x256xf32>
    %16 = arith.addf %10, %15 : vector<8x256xf32>
    %c0_17 = arith.constant 0 : index
    %c0_18 = arith.constant 0 : index
    %c6 = arith.constant 6 : index
    %17 = vector.load %arg5[%c0_17, %c0_18, %c6] : memref<1x12x384xbf16, #tpu.memory_space<vmem>>, vector<1x8x256xbf16>
    %18 = vector.shape_cast %17 : vector<1x8x256xbf16> to vector<8x256xbf16>
    %c3 = arith.constant 3 : index
    %c0_19 = arith.constant 0 : index
    %c0_20 = arith.constant 0 : index
    %19 = vector.load %arg1[%c3, %c0_19, %c0_20] : memref<27x8x8xbf16, #tpu.memory_space<vmem>>, vector<1x8x8xbf16>
    %20 = vector.shape_cast %19 : vector<1x8x8xbf16> to vector<8x8xbf16>
    %cst_21 = arith.constant dense<0.000000e+00> : vector<8x256xf32>
    %21 = tpu.matmul %20, %18, %cst_21 {dimension_numbers = #tpu.dot_dimension_numbers<[1], [0], [0], [1], [0, 0, 1, 1], [], []>} : vector<8x8xbf16>, vector<8x256xbf16>, vector<8x256xf32> -> vector<8x256xf32>
    %22 = arith.addf %16, %21 : vector<8x256xf32>
    %c0_22 = arith.constant 0 : index
    %c0_23 = arith.constant 0 : index
    %c7 = arith.constant 7 : index
    %23 = vector.load %arg5[%c0_22, %c0_23, %c7] : memref<1x12x384xbf16, #tpu.memory_space<vmem>>, vector<1x8x256xbf16>
    %24 = vector.shape_cast %23 : vector<1x8x256xbf16> to vector<8x256xbf16>
    %c4 = arith.constant 4 : index
    %c0_24 = arith.constant 0 : index
    %c0_25 = arith.constant 0 : index
    %25 = vector.load %arg1[%c4, %c0_24, %c0_25] : memref<27x8x8xbf16, #tpu.memory_space<vmem>>, vector<1x8x8xbf16>
    %26 = vector.shape_cast %25 : vector<1x8x8xbf16> to vector<8x8xbf16>
    %cst_26 = arith.constant dense<0.000000e+00> : vector<8x256xf32>
    %27 = tpu.matmul %26, %24, %cst_26 {dimension_numbers = #tpu.dot_dimension_numbers<[1], [0], [0], [1], [0, 0, 1, 1], [], []>} : vector<8x8xbf16>, vector<8x256xbf16>, vector<8x256xf32> -> vector<8x256xf32>
    %28 = arith.addf %22, %27 : vector<8x256xf32>
    %c0_27 = arith.constant 0 : index
    %c0_28 = arith.constant 0 : index
    %c8 = arith.constant 8 : index
    %29 = vector.load %arg5[%c0_27, %c0_28, %c8] : memref<1x12x384xbf16, #tpu.memory_space<vmem>>, vector<1x8x256xbf16>
    %30 = vector.shape_cast %29 : vector<1x8x256xbf16> to vector<8x256xbf16>
    %c5 = arith.constant 5 : index
    %c0_29 = arith.constant 0 : index
    %c0_30 = arith.constant 0 : index
    %31 = vector.load %arg1[%c5, %c0_29, %c0_30] : memref<27x8x8xbf16, #tpu.memory_space<vmem>>, vector<1x8x8xbf16>
    %32 = vector.shape_cast %31 : vector<1x8x8xbf16> to vector<8x8xbf16>
    %cst_31 = arith.constant dense<0.000000e+00> : vector<8x256xf32>
    %33 = tpu.matmul %32, %30, %cst_31 {dimension_numbers = #tpu.dot_dimension_numbers<[1], [0], [0], [1], [0, 0, 1, 1], [], []>} : vector<8x8xbf16>, vector<8x256xbf16>, vector<8x256xf32> -> vector<8x256xf32>
    %34 = arith.addf %28, %33 : vector<8x256xf32>
    %c0_32 = arith.constant 0 : index
    %c0_33 = arith.constant 0 : index
    %c12 = arith.constant 12 : index
    %35 = vector.load %arg5[%c0_32, %c0_33, %c12] : memref<1x12x384xbf16, #tpu.memory_space<vmem>>, vector<1x8x256xbf16>
    %36 = vector.shape_cast %35 : vector<1x8x256xbf16> to vector<8x256xbf16>
    %c6_34 = arith.constant 6 : index
    %c0_35 = arith.constant 0 : index
    %c0_36 = arith.constant 0 : index
    %37 = vector.load %arg1[%c6_34, %c0_35, %c0_36] : memref<27x8x8xbf16, #tpu.memory_space<vmem>>, vector<1x8x8xbf16>
    %38 = vector.shape_cast %37 : vector<1x8x8xbf16> to vector<8x8xbf16>
    %cst_37 = arith.constant dense<0.000000e+00> : vector<8x256xf32>
    %39 = tpu.matmul %38, %36, %cst_37 {dimension_numbers = #tpu.dot_dimension_numbers<[1], [0], [0], [1], [0, 0, 1, 1], [], []>} : vector<8x8xbf16>, vector<8x256xbf16>, vector<8x256xf32> -> vector<8x256xf32>
    %40 = arith.addf %34, %39 : vector<8x256xf32>
    %c0_38 = arith.constant 0 : index
    %c0_39 = arith.constant 0 : index
    %c13 = arith.constant 13 : index
    %41 = vector.load %arg5[%c0_38, %c0_39, %c13] : memref<1x12x384xbf16, #tpu.memory_space<vmem>>, vector<1x8x256xbf16>
    %42 = vector.shape_cast %41 : vector<1x8x256xbf16> to vector<8x256xbf16>
    %c7_40 = arith.constant 7 : index
    %c0_41 = arith.constant 0 : index
    %c0_42 = arith.constant 0 : index
    %43 = vector.load %arg1[%c7_40, %c0_41, %c0_42] : memref<27x8x8xbf16, #tpu.memory_space<vmem>>, vector<1x8x8xbf16>
    %44 = vector.shape_cast %43 : vector<1x8x8xbf16> to vector<8x8xbf16>
    %cst_43 = arith.constant dense<0.000000e+00> : vector<8x256xf32>
    %45 = tpu.matmul %44, %42, %cst_43 {dimension_numbers = #tpu.dot_dimension_numbers<[1], [0], [0], [1], [0, 0, 1, 1], [], []>} : vector<8x8xbf16>, vector<8x256xbf16>, vector<8x256xf32> -> vector<8x256xf32>
    %46 = arith.addf %40, %45 : vector<8x256xf32>
    %c0_44 = arith.constant 0 : index
    %c0_45 = arith.constant 0 : index
    %c14 = arith.constant 14 : index
    %47 = vector.load %arg5[%c0_44, %c0_45, %c14] : memref<1x12x384xbf16, #tpu.memory_space<vmem>>, vector<1x8x256xbf16>
    %48 = vector.shape_cast %47 : vector<1x8x256xbf16> to vector<8x256xbf16>
    %c8_46 = arith.constant 8 : index
    %c0_47 = arith.constant 0 : index
    %c0_48 = arith.constant 0 : index
    %49 = vector.load %arg1[%c8_46, %c0_47, %c0_48] : memref<27x8x8xbf16, #tpu.memory_space<vmem>>, vector<1x8x8xbf16>
    %50 = vector.shape_cast %49 : vector<1x8x8xbf16> to vector<8x8xbf16>
    %cst_49 = arith.constant dense<0.000000e+00> : vector<8x256xf32>
    %51 = tpu.matmul %50, %48, %cst_49 {dimension_numbers = #tpu.dot_dimension_numbers<[1], [0], [0], [1], [0, 0, 1, 1], [], []>} : vector<8x8xbf16>, vector<8x256xbf16>, vector<8x256xf32> -> vector<8x256xf32>
    %52 = arith.addf %46, %51 : vector<8x256xf32>
    %c0_50 = arith.constant 0 : index
    %c0_51 = arith.constant 0 : index
    %c36 = arith.constant 36 : index
    %53 = vector.load %arg5[%c0_50, %c0_51, %c36] : memref<1x12x384xbf16, #tpu.memory_space<vmem>>, vector<1x8x256xbf16>
    %54 = vector.shape_cast %53 : vector<1x8x256xbf16> to vector<8x256xbf16>
    %c9 = arith.constant 9 : index
    %c0_52 = arith.constant 0 : index
    %c0_53 = arith.constant 0 : index
    %55 = vector.load %arg1[%c9, %c0_52, %c0_53] : memref<27x8x8xbf16, #tpu.memory_space<vmem>>, vector<1x8x8xbf16>
    %56 = vector.shape_cast %55 : vector<1x8x8xbf16> to vector<8x8xbf16>
    %cst_54 = arith.constant dense<0.000000e+00> : vector<8x256xf32>
    %57 = tpu.matmul %56, %54, %cst_54 {dimension_numbers = #tpu.dot_dimension_numbers<[1], [0], [0], [1], [0, 0, 1, 1], [], []>} : vector<8x8xbf16>, vector<8x256xbf16>, vector<8x256xf32> -> vector<8x256xf32>
    %58 = arith.addf %52, %57 : vector<8x256xf32>
    %c0_55 = arith.constant 0 : index
    %c0_56 = arith.constant 0 : index
    %c37 = arith.constant 37 : index
    %59 = vector.load %arg5[%c0_55, %c0_56, %c37] : memref<1x12x384xbf16, #tpu.memory_space<vmem>>, vector<1x8x256xbf16>
    %60 = vector.shape_cast %59 : vector<1x8x256xbf16> to vector<8x256xbf16>
    %c10 = arith.constant 10 : index
    %c0_57 = arith.constant 0 : index
    %c0_58 = arith.constant 0 : index
    %61 = vector.load %arg1[%c10, %c0_57, %c0_58] : memref<27x8x8xbf16, #tpu.memory_space<vmem>>, vector<1x8x8xbf16>
    %62 = vector.shape_cast %61 : vector<1x8x8xbf16> to vector<8x8xbf16>
    %cst_59 = arith.constant dense<0.000000e+00> : vector<8x256xf32>
    %63 = tpu.matmul %62, %60, %cst_59 {dimension_numbers = #tpu.dot_dimension_numbers<[1], [0], [0], [1], [0, 0, 1, 1], [], []>} : vector<8x8xbf16>, vector<8x256xbf16>, vector<8x256xf32> -> vector<8x256xf32>
    %64 = arith.addf %58, %63 : vector<8x256xf32>
    %c0_60 = arith.constant 0 : index
    %c0_61 = arith.constant 0 : index
    %c38 = arith.constant 38 : index
    %65 = vector.load %arg5[%c0_60, %c0_61, %c38] : memref<1x12x384xbf16, #tpu.memory_space<vmem>>, vector<1x8x256xbf16>
    %66 = vector.shape_cast %65 : vector<1x8x256xbf16> to vector<8x256xbf16>
    %c11 = arith.constant 11 : index
    %c0_62 = arith.constant 0 : index
    %c0_63 = arith.constant 0 : index
    %67 = vector.load %arg1[%c11, %c0_62, %c0_63] : memref<27x8x8xbf16, #tpu.memory_space<vmem>>, vector<1x8x8xbf16>
    %68 = vector.shape_cast %67 : vector<1x8x8xbf16> to vector<8x8xbf16>
    %cst_64 = arith.constant dense<0.000000e+00> : vector<8x256xf32>
    %69 = tpu.matmul %68, %66, %cst_64 {dimension_numbers = #tpu.dot_dimension_numbers<[1], [0], [0], [1], [0, 0, 1, 1], [], []>} : vector<8x8xbf16>, vector<8x256xbf16>, vector<8x256xf32> -> vector<8x256xf32>
    %70 = arith.addf %64, %69 : vector<8x256xf32>
    %c0_65 = arith.constant 0 : index
    %c0_66 = arith.constant 0 : index
    %c42 = arith.constant 42 : index
    %71 = vector.load %arg5[%c0_65, %c0_66, %c42] : memref<1x12x384xbf16, #tpu.memory_space<vmem>>, vector<1x8x256xbf16>
    %72 = vector.shape_cast %71 : vector<1x8x256xbf16> to vector<8x256xbf16>
    %c12_67 = arith.constant 12 : index
    %c0_68 = arith.constant 0 : index
    %c0_69 = arith.constant 0 : index
    %73 = vector.load %arg1[%c12_67, %c0_68, %c0_69] : memref<27x8x8xbf16, #tpu.memory_space<vmem>>, vector<1x8x8xbf16>
    %74 = vector.shape_cast %73 : vector<1x8x8xbf16> to vector<8x8xbf16>
    %cst_70 = arith.constant dense<0.000000e+00> : vector<8x256xf32>
    %75 = tpu.matmul %74, %72, %cst_70 {dimension_numbers = #tpu.dot_dimension_numbers<[1], [0], [0], [1], [0, 0, 1, 1], [], []>} : vector<8x8xbf16>, vector<8x256xbf16>, vector<8x256xf32> -> vector<8x256xf32>
    %76 = arith.addf %70, %75 : vector<8x256xf32>
    %c0_71 = arith.constant 0 : index
    %c0_72 = arith.constant 0 : index
    %c43 = arith.constant 43 : index
    %77 = vector.load %arg5[%c0_71, %c0_72, %c43] : memref<1x12x384xbf16, #tpu.memory_space<vmem>>, vector<1x8x256xbf16>
    %78 = vector.shape_cast %77 : vector<1x8x256xbf16> to vector<8x256xbf16>
    %c13_73 = arith.constant 13 : index
    %c0_74 = arith.constant 0 : index
    %c0_75 = arith.constant 0 : index
    %79 = vector.load %arg1[%c13_73, %c0_74, %c0_75] : memref<27x8x8xbf16, #tpu.memory_space<vmem>>, vector<1x8x8xbf16>
    %80 = vector.shape_cast %79 : vector<1x8x8xbf16> to vector<8x8xbf16>
    %cst_76 = arith.constant dense<0.000000e+00> : vector<8x256xf32>
    %81 = tpu.matmul %80, %78, %cst_76 {dimension_numbers = #tpu.dot_dimension_numbers<[1], [0], [0], [1], [0, 0, 1, 1], [], []>} : vector<8x8xbf16>, vector<8x256xbf16>, vector<8x256xf32> -> vector<8x256xf32>
    %82 = arith.addf %76, %81 : vector<8x256xf32>
    %c0_77 = arith.constant 0 : index
    %c0_78 = arith.constant 0 : index
    %c44 = arith.constant 44 : index
    %83 = vector.load %arg5[%c0_77, %c0_78, %c44] : memref<1x12x384xbf16, #tpu.memory_space<vmem>>, vector<1x8x256xbf16>
    %84 = vector.shape_cast %83 : vector<1x8x256xbf16> to vector<8x256xbf16>
    %c14_79 = arith.constant 14 : index
    %c0_80 = arith.constant 0 : index
    %c0_81 = arith.constant 0 : index
    %85 = vector.load %arg1[%c14_79, %c0_80, %c0_81] : memref<27x8x8xbf16, #tpu.memory_space<vmem>>, vector<1x8x8xbf16>
    %86 = vector.shape_cast %85 : vector<1x8x8xbf16> to vector<8x8xbf16>
    %cst_82 = arith.constant dense<0.000000e+00> : vector<8x256xf32>
    %87 = tpu.matmul %86, %84, %cst_82 {dimension_numbers = #tpu.dot_dimension_numbers<[1], [0], [0], [1], [0, 0, 1, 1], [], []>} : vector<8x8xbf16>, vector<8x256xbf16>, vector<8x256xf32> -> vector<8x256xf32>
    %88 = arith.addf %82, %87 : vector<8x256xf32>
    %c0_83 = arith.constant 0 : index
    %c0_84 = arith.constant 0 : index
    %c48 = arith.constant 48 : index
    %89 = vector.load %arg5[%c0_83, %c0_84, %c48] : memref<1x12x384xbf16, #tpu.memory_space<vmem>>, vector<1x8x256xbf16>
    %90 = vector.shape_cast %89 : vector<1x8x256xbf16> to vector<8x256xbf16>
    %c15 = arith.constant 15 : index
    %c0_85 = arith.constant 0 : index
    %c0_86 = arith.constant 0 : index
    %91 = vector.load %arg1[%c15, %c0_85, %c0_86] : memref<27x8x8xbf16, #tpu.memory_space<vmem>>, vector<1x8x8xbf16>
    %92 = vector.shape_cast %91 : vector<1x8x8xbf16> to vector<8x8xbf16>
    %cst_87 = arith.constant dense<0.000000e+00> : vector<8x256xf32>
    %93 = tpu.matmul %92, %90, %cst_87 {dimension_numbers = #tpu.dot_dimension_numbers<[1], [0], [0], [1], [0, 0, 1, 1], [], []>} : vector<8x8xbf16>, vector<8x256xbf16>, vector<8x256xf32> -> vector<8x256xf32>
    %94 = arith.addf %88, %93 : vector<8x256xf32>
    %c0_88 = arith.constant 0 : index
    %c0_89 = arith.constant 0 : index
    %c49 = arith.constant 49 : index
    %95 = vector.load %arg5[%c0_88, %c0_89, %c49] : memref<1x12x384xbf16, #tpu.memory_space<vmem>>, vector<1x8x256xbf16>
    %96 = vector.shape_cast %95 : vector<1x8x256xbf16> to vector<8x256xbf16>
    %c16 = arith.constant 16 : index
    %c0_90 = arith.constant 0 : index
    %c0_91 = arith.constant 0 : index
    %97 = vector.load %arg1[%c16, %c0_90, %c0_91] : memref<27x8x8xbf16, #tpu.memory_space<vmem>>, vector<1x8x8xbf16>
    %98 = vector.shape_cast %97 : vector<1x8x8xbf16> to vector<8x8xbf16>
    %cst_92 = arith.constant dense<0.000000e+00> : vector<8x256xf32>
    %99 = tpu.matmul %98, %96, %cst_92 {dimension_numbers = #tpu.dot_dimension_numbers<[1], [0], [0], [1], [0, 0, 1, 1], [], []>} : vector<8x8xbf16>, vector<8x256xbf16>, vector<8x256xf32> -> vector<8x256xf32>
    %100 = arith.addf %94, %99 : vector<8x256xf32>
    %c0_93 = arith.constant 0 : index
    %c0_94 = arith.constant 0 : index
    %c50 = arith.constant 50 : index
    %101 = vector.load %arg5[%c0_93, %c0_94, %c50] : memref<1x12x384xbf16, #tpu.memory_space<vmem>>, vector<1x8x256xbf16>
    %102 = vector.shape_cast %101 : vector<1x8x256xbf16> to vector<8x256xbf16>
    %c17 = arith.constant 17 : index
    %c0_95 = arith.constant 0 : index
    %c0_96 = arith.constant 0 : index
    %103 = vector.load %arg1[%c17, %c0_95, %c0_96] : memref<27x8x8xbf16, #tpu.memory_space<vmem>>, vector<1x8x8xbf16>
    %104 = vector.shape_cast %103 : vector<1x8x8xbf16> to vector<8x8xbf16>
    %cst_97 = arith.constant dense<0.000000e+00> : vector<8x256xf32>
    %105 = tpu.matmul %104, %102, %cst_97 {dimension_numbers = #tpu.dot_dimension_numbers<[1], [0], [0], [1], [0, 0, 1, 1], [], []>} : vector<8x8xbf16>, vector<8x256xbf16>, vector<8x256xf32> -> vector<8x256xf32>
    %106 = arith.addf %100, %105 : vector<8x256xf32>
    %c0_98 = arith.constant 0 : index
    %c0_99 = arith.constant 0 : index
    %c72 = arith.constant 72 : index
    %107 = vector.load %arg5[%c0_98, %c0_99, %c72] : memref<1x12x384xbf16, #tpu.memory_space<vmem>>, vector<1x8x256xbf16>
    %108 = vector.shape_cast %107 : vector<1x8x256xbf16> to vector<8x256xbf16>
    %c18 = arith.constant 18 : index
    %c0_100 = arith.constant 0 : index
    %c0_101 = arith.constant 0 : index
    %109 = vector.load %arg1[%c18, %c0_100, %c0_101] : memref<27x8x8xbf16, #tpu.memory_space<vmem>>, vector<1x8x8xbf16>
    %110 = vector.shape_cast %109 : vector<1x8x8xbf16> to vector<8x8xbf16>
    %cst_102 = arith.constant dense<0.000000e+00> : vector<8x256xf32>
    %111 = tpu.matmul %110, %108, %cst_102 {dimension_numbers = #tpu.dot_dimension_numbers<[1], [0], [0], [1], [0, 0, 1, 1], [], []>} : vector<8x8xbf16>, vector<8x256xbf16>, vector<8x256xf32> -> vector<8x256xf32>
    %112 = arith.addf %106, %111 : vector<8x256xf32>
    %c0_103 = arith.constant 0 : index
    %c0_104 = arith.constant 0 : index
    %c73 = arith.constant 73 : index
    %113 = vector.load %arg5[%c0_103, %c0_104, %c73] : memref<1x12x384xbf16, #tpu.memory_space<vmem>>, vector<1x8x256xbf16>
    %114 = vector.shape_cast %113 : vector<1x8x256xbf16> to vector<8x256xbf16>
    %c19 = arith.constant 19 : index
    %c0_105 = arith.constant 0 : index
    %c0_106 = arith.constant 0 : index
    %115 = vector.load %arg1[%c19, %c0_105, %c0_106] : memref<27x8x8xbf16, #tpu.memory_space<vmem>>, vector<1x8x8xbf16>
    %116 = vector.shape_cast %115 : vector<1x8x8xbf16> to vector<8x8xbf16>
    %cst_107 = arith.constant dense<0.000000e+00> : vector<8x256xf32>
    %117 = tpu.matmul %116, %114, %cst_107 {dimension_numbers = #tpu.dot_dimension_numbers<[1], [0], [0], [1], [0, 0, 1, 1], [], []>} : vector<8x8xbf16>, vector<8x256xbf16>, vector<8x256xf32> -> vector<8x256xf32>
    %118 = arith.addf %112, %117 : vector<8x256xf32>
    %c0_108 = arith.constant 0 : index
    %c0_109 = arith.constant 0 : index
    %c74 = arith.constant 74 : index
    %119 = vector.load %arg5[%c0_108, %c0_109, %c74] : memref<1x12x384xbf16, #tpu.memory_space<vmem>>, vector<1x8x256xbf16>
    %120 = vector.shape_cast %119 : vector<1x8x256xbf16> to vector<8x256xbf16>
    %c20 = arith.constant 20 : index
    %c0_110 = arith.constant 0 : index
    %c0_111 = arith.constant 0 : index
    %121 = vector.load %arg1[%c20, %c0_110, %c0_111] : memref<27x8x8xbf16, #tpu.memory_space<vmem>>, vector<1x8x8xbf16>
    %122 = vector.shape_cast %121 : vector<1x8x8xbf16> to vector<8x8xbf16>
    %cst_112 = arith.constant dense<0.000000e+00> : vector<8x256xf32>
    %123 = tpu.matmul %122, %120, %cst_112 {dimension_numbers = #tpu.dot_dimension_numbers<[1], [0], [0], [1], [0, 0, 1, 1], [], []>} : vector<8x8xbf16>, vector<8x256xbf16>, vector<8x256xf32> -> vector<8x256xf32>
    %124 = arith.addf %118, %123 : vector<8x256xf32>
    %c0_113 = arith.constant 0 : index
    %c0_114 = arith.constant 0 : index
    %c78 = arith.constant 78 : index
    %125 = vector.load %arg5[%c0_113, %c0_114, %c78] : memref<1x12x384xbf16, #tpu.memory_space<vmem>>, vector<1x8x256xbf16>
    %126 = vector.shape_cast %125 : vector<1x8x256xbf16> to vector<8x256xbf16>
    %c21 = arith.constant 21 : index
    %c0_115 = arith.constant 0 : index
    %c0_116 = arith.constant 0 : index
    %127 = vector.load %arg1[%c21, %c0_115, %c0_116] : memref<27x8x8xbf16, #tpu.memory_space<vmem>>, vector<1x8x8xbf16>
    %128 = vector.shape_cast %127 : vector<1x8x8xbf16> to vector<8x8xbf16>
    %cst_117 = arith.constant dense<0.000000e+00> : vector<8x256xf32>
    %129 = tpu.matmul %128, %126, %cst_117 {dimension_numbers = #tpu.dot_dimension_numbers<[1], [0], [0], [1], [0, 0, 1, 1], [], []>} : vector<8x8xbf16>, vector<8x256xbf16>, vector<8x256xf32> -> vector<8x256xf32>
    %130 = arith.addf %124, %129 : vector<8x256xf32>
    %c0_118 = arith.constant 0 : index
    %c0_119 = arith.constant 0 : index
    %c79 = arith.constant 79 : index
    %131 = vector.load %arg5[%c0_118, %c0_119, %c79] : memref<1x12x384xbf16, #tpu.memory_space<vmem>>, vector<1x8x256xbf16>
    %132 = vector.shape_cast %131 : vector<1x8x256xbf16> to vector<8x256xbf16>
    %c22 = arith.constant 22 : index
    %c0_120 = arith.constant 0 : index
    %c0_121 = arith.constant 0 : index
    %133 = vector.load %arg1[%c22, %c0_120, %c0_121] : memref<27x8x8xbf16, #tpu.memory_space<vmem>>, vector<1x8x8xbf16>
    %134 = vector.shape_cast %133 : vector<1x8x8xbf16> to vector<8x8xbf16>
    %cst_122 = arith.constant dense<0.000000e+00> : vector<8x256xf32>
    %135 = tpu.matmul %134, %132, %cst_122 {dimension_numbers = #tpu.dot_dimension_numbers<[1], [0], [0], [1], [0, 0, 1, 1], [], []>} : vector<8x8xbf16>, vector<8x256xbf16>, vector<8x256xf32> -> vector<8x256xf32>
    %136 = arith.addf %130, %135 : vector<8x256xf32>
    %c0_123 = arith.constant 0 : index
    %c0_124 = arith.constant 0 : index
    %c80 = arith.constant 80 : index
    %137 = vector.load %arg5[%c0_123, %c0_124, %c80] : memref<1x12x384xbf16, #tpu.memory_space<vmem>>, vector<1x8x256xbf16>
    %138 = vector.shape_cast %137 : vector<1x8x256xbf16> to vector<8x256xbf16>
    %c23 = arith.constant 23 : index
    %c0_125 = arith.constant 0 : index
    %c0_126 = arith.constant 0 : index
    %139 = vector.load %arg1[%c23, %c0_125, %c0_126] : memref<27x8x8xbf16, #tpu.memory_space<vmem>>, vector<1x8x8xbf16>
    %140 = vector.shape_cast %139 : vector<1x8x8xbf16> to vector<8x8xbf16>
    %cst_127 = arith.constant dense<0.000000e+00> : vector<8x256xf32>
    %141 = tpu.matmul %140, %138, %cst_127 {dimension_numbers = #tpu.dot_dimension_numbers<[1], [0], [0], [1], [0, 0, 1, 1], [], []>} : vector<8x8xbf16>, vector<8x256xbf16>, vector<8x256xf32> -> vector<8x256xf32>
    %142 = arith.addf %136, %141 : vector<8x256xf32>
    %c0_128 = arith.constant 0 : index
    %c0_129 = arith.constant 0 : index
    %c84 = arith.constant 84 : index
    %143 = vector.load %arg5[%c0_128, %c0_129, %c84] : memref<1x12x384xbf16, #tpu.memory_space<vmem>>, vector<1x8x256xbf16>
    %144 = vector.shape_cast %143 : vector<1x8x256xbf16> to vector<8x256xbf16>
    %c24 = arith.constant 24 : index
    %c0_130 = arith.constant 0 : index
    %c0_131 = arith.constant 0 : index
    %145 = vector.load %arg1[%c24, %c0_130, %c0_131] : memref<27x8x8xbf16, #tpu.memory_space<vmem>>, vector<1x8x8xbf16>
    %146 = vector.shape_cast %145 : vector<1x8x8xbf16> to vector<8x8xbf16>
    %cst_132 = arith.constant dense<0.000000e+00> : vector<8x256xf32>
    %147 = tpu.matmul %146, %144, %cst_132 {dimension_numbers = #tpu.dot_dimension_numbers<[1], [0], [0], [1], [0, 0, 1, 1], [], []>} : vector<8x8xbf16>, vector<8x256xbf16>, vector<8x256xf32> -> vector<8x256xf32>
    %148 = arith.addf %142, %147 : vector<8x256xf32>
    %c0_133 = arith.constant 0 : index
    %c0_134 = arith.constant 0 : index
    %c85 = arith.constant 85 : index
    %149 = vector.load %arg5[%c0_133, %c0_134, %c85] : memref<1x12x384xbf16, #tpu.memory_space<vmem>>, vector<1x8x256xbf16>
    %150 = vector.shape_cast %149 : vector<1x8x256xbf16> to vector<8x256xbf16>
    %c25 = arith.constant 25 : index
    %c0_135 = arith.constant 0 : index
    %c0_136 = arith.constant 0 : index
    %151 = vector.load %arg1[%c25, %c0_135, %c0_136] : memref<27x8x8xbf16, #tpu.memory_space<vmem>>, vector<1x8x8xbf16>
    %152 = vector.shape_cast %151 : vector<1x8x8xbf16> to vector<8x8xbf16>
    %cst_137 = arith.constant dense<0.000000e+00> : vector<8x256xf32>
    %153 = tpu.matmul %152, %150, %cst_137 {dimension_numbers = #tpu.dot_dimension_numbers<[1], [0], [0], [1], [0, 0, 1, 1], [], []>} : vector<8x8xbf16>, vector<8x256xbf16>, vector<8x256xf32> -> vector<8x256xf32>
    %154 = arith.addf %148, %153 : vector<8x256xf32>
    %c0_138 = arith.constant 0 : index
    %c0_139 = arith.constant 0 : index
    %c86 = arith.constant 86 : index
    %155 = vector.load %arg5[%c0_138, %c0_139, %c86] : memref<1x12x384xbf16, #tpu.memory_space<vmem>>, vector<1x8x256xbf16>
    %156 = vector.shape_cast %155 : vector<1x8x256xbf16> to vector<8x256xbf16>
    %c26 = arith.constant 26 : index
    %c0_140 = arith.constant 0 : index
    %c0_141 = arith.constant 0 : index
    %157 = vector.load %arg1[%c26, %c0_140, %c0_141] : memref<27x8x8xbf16, #tpu.memory_space<vmem>>, vector<1x8x8xbf16>
    %158 = vector.shape_cast %157 : vector<1x8x8xbf16> to vector<8x8xbf16>
    %cst_142 = arith.constant dense<0.000000e+00> : vector<8x256xf32>
    %159 = tpu.matmul %158, %156, %cst_142 {dimension_numbers = #tpu.dot_dimension_numbers<[1], [0], [0], [1], [0, 0, 1, 1], [], []>} : vector<8x8xbf16>, vector<8x256xbf16>, vector<8x256xf32> -> vector<8x256xf32>
    %160 = arith.addf %154, %159 : vector<8x256xf32>
    %c0_143 = arith.constant 0 : index
    %c0_144 = arith.constant 0 : index
    %161 = vector.load %arg2[%c0_143, %c0_144] : memref<8x1xf32, #tpu.memory_space<vmem>>, vector<8x1xf32>
    %162 = vector.broadcast %161 : vector<8x1xf32> to vector<8x256xf32>
    %163 = arith.addf %160, %162 : vector<8x256xf32>
    %cst_145 = arith.constant 0.00999999977 : f32
    %164 = vector.broadcast %cst_145 : f32 to vector<8x256xf32>
    %165 = arith.mulf %164, %163 : vector<8x256xf32>
    %166 = arith.maximumf %163, %165 : vector<8x256xf32>
    %c0_146 = arith.constant 0 : index
    %c8_147 = arith.constant 8 : index
    %c43_148 = arith.constant 43 : index
    %167 = vector.load %arg5[%c0_146, %c8_147, %c43_148] : memref<1x12x384xbf16, #tpu.memory_space<vmem>>, vector<1x4x256xbf16>
    %168 = vector.shape_cast %167 : vector<1x4x256xbf16> to vector<4x256xbf16>
    %c0_149 = arith.constant 0 : index
    %c0_150 = arith.constant 0 : index
    %169 = vector.load %arg3[%c0_149, %c0_150] : memref<8x4xbf16, #tpu.memory_space<vmem>>, vector<8x4xbf16>
    %cst_151 = arith.constant dense<0.000000e+00> : vector<8x256xf32>
    %170 = tpu.matmul %169, %168, %cst_151 {dimension_numbers = #tpu.dot_dimension_numbers<[1], [0], [0], [1], [0, 0, 1, 1], [], []>} : vector<8x4xbf16>, vector<4x256xbf16>, vector<8x256xf32> -> vector<8x256xf32>
    %c0_152 = arith.constant 0 : index
    %c0_153 = arith.constant 0 : index
    %171 = vector.load %arg4[%c0_152, %c0_153] : memref<8x1xf32, #tpu.memory_space<vmem>>, vector<8x1xf32>
    %172 = vector.broadcast %171 : vector<8x1xf32> to vector<8x256xf32>
    %173 = arith.addf %170, %172 : vector<8x256xf32>
    %174 = arith.addf %166, %173 : vector<8x256xf32>
    %c0_154 = arith.constant 0 : index
    %c0_155 = arith.constant 0 : index
    %c0_156 = arith.constant 0 : index
    %175 = vector.load %arg6[%c0_154, %c0_155, %c0_156] : memref<1x8x256xf32, #tpu.memory_space<vmem>>, vector<1x8x256xf32>
    %176 = vector.shape_cast %175 : vector<1x8x256xf32> to vector<8x256xf32>
    %177 = vector.shape_cast %174 : vector<8x256xf32> to vector<1x8x256xf32>
    tpu.vector_store %arg6[%c0_154, %c0_155, %c0_156], %177 {strides = array<i32>} : memref<1x8x256xf32, #tpu.memory_space<vmem>>, vector<1x8x256xf32>,
    return
  }
  func.func @transform_0(%arg0: i32) -> (i32, i32, i32) {
    %c0_i32 = arith.constant 0 : i32
    %c0_i32_0 = arith.constant 0 : i32
    %c0_i32_1 = arith.constant 0 : i32
    %c0_i32_2 = arith.constant 0 : i32
    return %c0_i32, %c0_i32_0, %c0_i32_1 : i32, i32, i32
  }
  func.func @transform_1(%arg0: i32) -> (i32, i32) {
    %c0_i32 = arith.constant 0 : i32
    %c0_i32_0 = arith.constant 0 : i32
    %c0_i32_1 = arith.constant 0 : i32
    return %c0_i32, %c0_i32_0 : i32, i32
  }
  func.func @transform_2(%arg0: i32) -> (i32, i32) {
    %c0_i32 = arith.constant 0 : i32
    %c0_i32_0 = arith.constant 0 : i32
    %c0_i32_1 = arith.constant 0 : i32
    return %c0_i32, %c0_i32_0 : i32, i32
  }
  func.func @transform_3(%arg0: i32) -> (i32, i32) {
    %c0_i32 = arith.constant 0 : i32
    %c0_i32_0 = arith.constant 0 : i32
    %c0_i32_1 = arith.constant 0 : i32
    return %c0_i32, %c0_i32_0 : i32, i32
  }
  func.func @transform_4(%arg0: i32) -> (i32, i32, i32) {
    %c0_i32 = arith.constant 0 : i32
    %c0_i32_0 = arith.constant 0 : i32
    %c0_i32_1 = arith.constant 0 : i32
    return %arg0, %c0_i32, %c0_i32_0 : i32, i32, i32
  }
  func.func @transform_5(%arg0: i32) -> (i32, i32, i32) {
    %c0_i32 = arith.constant 0 : i32
    %c0_i32_0 = arith.constant 0 : i32
    %c0_i32_1 = arith.constant 0 : i32
    return %arg0, %c0_i32, %c0_i32_0 : i32, i32, i32
  }
}

</mosaic_0001>

<bundles_post_ra>
// kernel: res_block_down.2
= control target key start
LH: loop header
LB: loop body
LE: loop exit
PB: predicated region body
PF: predicated region fallthrough
CT: control target
= control target key end

     0   :  { %s7718_s12 = smov 0   ;;  %s9068_s0 = inlined_call_operand.vmem [shape: bf16[27,8,4], index: 0, kind: input, shape index: {}]   ;;  %s9069_s1 = inlined_call_operand.vmem [shape: f32[8,1], index: 1, kind: input, shape index: {}]   ;;  %s9070_s2 = inlined_call_operand.vmem [shape: bf16[2,4,1152], index: 2, kind: input, shape index: {}]   ;;  %s9071_s3 = inlined_call_operand.vmem [shape: f32[2,8,896], index: 3, kind: output, shape index: {}]  }
   0x1 LB: > { %s7170_s13 = sadd.s32 4294967295, %s7666_s12   ;;  %p7174_p0 = scmp.ge.s32.totalorder %s7666_s12, 1  ;;  %s7666_s12 = sphi %s7718_s12, %s13_s12  }
   0x2   : > { %p137_p1 = scmp.lt.s32.totalorder %s7666_s12, 3 }
   0x4   : > { %p138_p2 = pnand %p7174_p0, %p137_p1 }
   0x5   : > { %p161_p3 = scmp.lt.s32.totalorder (!%p138_p2), %s7170_s13, 1  ;;  %v184_v0 = vlaneseq (!%p138_p2)  ;;  %v7668_v1 = vmov (!%p138_p2), 1983009808   ;;  %v7669_v6 = vmov (!%p138_p2), 0   ;;  %s7670_s18 = smov (!%p138_p2), 127   ;;  %vm230_vm0 = vcmask (!%p138_p2), 1039360  }
   0x6   : > { %141 = sbr.rel (%p138_p2) target bundleno = 793 (0x319), region = 32  ;;  %v182_v2 = vunpack.c.l.s4 (!%p138_p2), %v7668_v1  ;;  %296 = vmatprep.mubr.bf16.mxu0 (!%p138_p2), %v7669_v6  ;;  %337 = vmatprep.mubr.bf16.mxu1 (!%p138_p2), %v7669_v6  ;;  %s7671_s19 = smov (!%p138_p2), 126   ;;  %vm242_vm1 = vcmask (!%p138_p2), 1041408   ;;  %v7177_v26 = vld [vmem:[%s9068_s0 + $0x4] sm:$0xf] (!%p138_p2)  ;;  %vm238_vm2 = vcmask (!%p138_p2), 31744  }
   0x7   : > { %v185_v3 = vshrl.u32 (!%p138_p2), %v184_v0, 7  ;;  %7650 = vset.pattern.permute.xlu0 (!%p138_p2), %v7669_v6  ;;  %s7672_s20 = smov (!%p138_p2), 118   ;;  %s7673_s21 = smov (!%p138_p2), 117   ;;  %v7678_v35 = vmov (!%p138_p2), 0.0   ;;  %vm7679_vm3 = vmmov (!%p138_p2), 0   ;;  %vm687_vm4 = vcmask (!%p138_p2), 1031168  }
   0x8   : > { %v183_v4 = vunpack.c.0.s8 (!%p138_p2), %v182_v2  ;;  %s7674_s22 = smov (!%p138_p2), 116   ;;  %s7675_s23 = smov (!%p138_p2), 108   ;;  %v174_v50 = vld [vmem:[%s9068_s0] sm:$0xf] (!%p138_p2)  ;;  %vm945_vm5 = vcmask (!%p138_p2), 965632   ;;  %vm1203_vm6 = vcmask (!%p138_p2), 957440  }
   0x9   : > { %s7676_s24 = smov (!%p138_p2), 107   ;;  %s7677_s25 = smov (!%p138_p2), 106   ;;  %vm1461_vm7 = vcmask (!%p138_p2), 949248   ;;  %vm1719_vm8 = vcmask (!%p138_p2), 883712   ;;  %vm1977_vm9 = vcmask (!%p138_p2), 875520   ;;  %vm2235_vm10 = vcmask (!%p138_p2), 867328  }
   0xa   : > { %v7729_v5 = vsub.s32 (!%p138_p2), %v183_v4, %v185_v3  ;;  %s7680_s28 = smov (!%p138_p2), 28   ;;  %s7681_s4 = smov (!%p138_p2), 27   ;;  %vm2493_vm11 = vcmask (!%p138_p2), 228352   ;;  %vm2751_vm12 = vcmask (!%p138_p2), 220160   ;;  %vm3009_vm13 = vcmask (!%p138_p2), 211968  }
   0xb   : > { %s7682_s7 = smov (!%p138_p2), 26   ;;  %s7683_s10 = smov (!%p138_p2), 18   ;;  %vm3267_vm14 = vcmask (!%p138_p2), 146432   ;;  %vm3525_vm15 = vcmask (!%p138_p2), 138240  }
   0xc   : > { %s7684_s15 = smov (!%p138_p2), 17  }
   0xd   : > { %s9073_s13 = smov (!%p161_p3, %s7170_s13), 1 }
   0xe   : > { %s7610_s14 = smul.u32 18, %s9073_s13 }
   0xf   : > { %s7611_s27 = smul.u32 56, %s9073_s13 }
  0x10   : > { %s7736_s17 = scalar_lea.vmem %s9070_s2, %s7610_s14 }
  0x11   : > { %v172_v7 = vld [vmem:[%s7736_s17] sm:$0xff]  ;;  %v175_v10 = vld [vmem:[%s7736_s17 + $0x8] sm:$0xff]  ;;  %s9056_s30 = scalar_lea.vmem %s9071_s3, %s7611_s27 }
  0x12   : > { %v7741_v8 = vrot.slane %v172_v7, %v7729_v5  ;;  %v180_v9 = vcombine.high %v172_v7, %v172_v7  ;;  %v7758_v14 = vrot.slane %v175_v10, %v7729_v5  ;;  %v197_v15 = vcombine.high %v175_v10, %v175_v10  ;;  %v173_v30 = vld [vmem:[%s7736_s17 + $0x8] sm:$0x3f] }
  0x13   : > { %v435_v36 = vrot.slane %v173_v30, %v7729_v5  ;;  %v428_v48 = vcombine.high %v173_v30, %v173_v30 }
  0x14   : > { %214 = vrot.lane.b32.xlu0 %v7741_v8, %s7670_s18  ;;  %v7746_v11 = vrot.slane %v180_v9, %v7729_v5  ;;  %v7750_v12 = vcombine.high %v7741_v8, %v7741_v8  ;;  %v7764_v16 = vcombine.high %v7758_v14, %v7758_v14  ;;  %v7767_v17 = vrot.slane %v197_v15, %v7729_v5  ;;  %v7192_v9 = vld [vmem:[%s9068_s0 + $0x8] sm:$0xf] }
  0x15   : > { %v448_v42 = vsel %vm242_vm1, %v7741_v8, 0  ;;  %v443_v44 = vcombine.high %v435_v36, %v435_v36  ;;  %v460_v51 = vsel %vm242_vm1, %v435_v36, 0  ;;  %v442_v52 = vrot.slane %v428_v48, %v7729_v5 }
  0x16   : > { %218 = vrot.lane.b32.xlu1 %v7746_v11, %s7670_s18  ;;  %v7755_v13 = vcombine.high %v7746_v11, %v7746_v11  ;;  %v7773_v18 = vcombine.high %v7767_v17, %v7767_v17  ;;  %v454_v46 = vsel %vm242_vm1, %v7746_v11, 0 }
  0x17   : > { %v466_v56 = vsel %vm242_vm1, %v442_v52, 0 }
  0x18   : > { %216 = vrot.lane.b32.xlu0 %v7750_v12, %s7670_s18 }
  0x1a   : > { %220 = vrot.lane.b32.xlu1 %v7755_v13, %s7670_s18 }
  0x1c   : > { %222 = vrot.lane.b32.xlu0 %v7758_v14, %s7670_s18 }
  0x1e   : > { %224 = vrot.lane.b32.xlu1 %v7764_v16, %s7670_s18 }
  0x20   : > { %226 = vrot.lane.b32.xlu0 %v7767_v17, %s7670_s18 }
  0x22   : > { %228 = vrot.lane.b32.xlu1 %v7773_v18, %s7670_s18 }
  0x24   : > { %671 = vrot.lane.b32.xlu0 %v7741_v8, %s7671_s19 }
  0x26   : > { %673 = vrot.lane.b32.xlu1 %v7750_v12, %s7671_s19 }
  0x28   : > { %675 = vrot.lane.b32.xlu0 %v7746_v11, %s7671_s19 }
  0x2a   : > { %677 = vrot.lane.b32.xlu1 %v7755_v13, %s7671_s19 }
  0x2c   : > { %679 = vrot.lane.b32.xlu0 %v7758_v14, %s7671_s19 }
  0x2e   : > { %681 = vrot.lane.b32.xlu1 %v7764_v16, %s7671_s19 }
  0x30   : > { %683 = vrot.lane.b32.xlu0 %v7767_v17, %s7671_s19 }
  0x32   : > { %685 = vrot.lane.b32.xlu1 %v7773_v18, %s7671_s19  ;;  %s7685_s19 = smov 16  }
  0x34   : > { %929 = vrot.lane.b32.xlu0 %v7741_v8, %s7672_s20 }
  0x36   : > { %931 = vrot.lane.b32.xlu1 %v7750_v12, %s7672_s20 }
  0x38   : > { %933 = vrot.lane.b32.xlu0 %v7746_v11, %s7672_s20 }
  0x3a   : > { %935 = vrot.lane.b32.xlu1 %v7755_v13, %s7672_s20 }
  0x3c   : > { %937 = vrot.lane.b32.xlu0 %v7758_v14, %s7672_s20 }
  0x3e   : > { %939 = vrot.lane.b32.xlu1 %v7764_v16, %s7672_s20 }
  0x40   : > { %941 = vrot.lane.b32.xlu0 %v7767_v17, %s7672_s20 }
  0x42   : > { %943 = vrot.lane.b32.xlu1 %v7773_v18, %s7672_s20 }
  0x44   : > { %1187 = vrot.lane.b32.xlu0 %v7741_v8, %s7673_s21 }
  0x46   : > { %1189 = vrot.lane.b32.xlu1 %v7750_v12, %s7673_s21 }
  0x48   : > { %1191 = vrot.lane.b32.xlu0 %v7746_v11, %s7673_s21 }
  0x4a   : > { %1193 = vrot.lane.b32.xlu1 %v7755_v13, %s7673_s21 }
  0x4c   : > { %1195 = vrot.lane.b32.xlu0 %v7758_v14, %s7673_s21 }
  0x4e   : > { %1197 = vrot.lane.b32.xlu1 %v7764_v16, %s7673_s21 }
  0x50   : > { %1199 = vrot.lane.b32.xlu0 %v7767_v17, %s7673_s21 }
  0x52   : > { %1201 = vrot.lane.b32.xlu1 %v7773_v18, %s7673_s21 }
  0x54   : > { %1445 = vrot.lane.b32.xlu0 %v7741_v8, %s7674_s22 }
  0x56   : > { %1447 = vrot.lane.b32.xlu1 %v7750_v12, %s7674_s22 }
  0x58   : > { %1449 = vrot.lane.b32.xlu0 %v7746_v11, %s7674_s22 }
  0x5a   : > { %1451 = vrot.lane.b32.xlu1 %v7755_v13, %s7674_s22 }
  0x5c   : > { %1453 = vrot.lane.b32.xlu0 %v7758_v14, %s7674_s22 }
  0x5e   : > { %1455 = vrot.lane.b32.xlu1 %v7764_v16, %s7674_s22 }
  0x60   : > { %1457 = vrot.lane.b32.xlu0 %v7767_v17, %s7674_s22 }
  0x62   : > { %1459 = vrot.lane.b32.xlu1 %v7773_v18, %s7674_s22  ;;  %s7686_s22 = smov 8  }
  0x64   : > { %1703 = vrot.lane.b32.xlu0 %v7741_v8, %s7675_s23 }
  0x66   : > { %1705 = vrot.lane.b32.xlu1 %v7750_v12, %s7675_s23 }
  0x68   : > { %1707 = vrot.lane.b32.xlu0 %v7746_v11, %s7675_s23 }
  0x6a   : > { %1709 = vrot.lane.b32.xlu1 %v7755_v13, %s7675_s23 }
  0x6c   : > { %1711 = vrot.lane.b32.xlu0 %v7758_v14, %s7675_s23 }
  0x6e   : > { %1713 = vrot.lane.b32.xlu1 %v7764_v16, %s7675_s23 }
  0x70   : > { %1715 = vrot.lane.b32.xlu0 %v7767_v17, %s7675_s23 }
  0x72   : > { %1717 = vrot.lane.b32.xlu1 %v7773_v18, %s7675_s23 }
  0x74   : > { %1961 = vrot.lane.b32.xlu0 %v7741_v8, %s7676_s24 }
  0x76   : > { %1963 = vrot.lane.b32.xlu1 %v7750_v12, %s7676_s24 }
  0x78   : > { %1965 = vrot.lane.b32.xlu0 %v7746_v11, %s7676_s24 }
  0x7a   : > { %1967 = vrot.lane.b32.xlu1 %v7755_v13, %s7676_s24 }
  0x7c   : > { %1969 = vrot.lane.b32.xlu0 %v7758_v14, %s7676_s24 }
  0x7e   : > { %1971 = vrot.lane.b32.xlu1 %v7764_v16, %s7676_s24 }
  0x80   : > { %1973 = vrot.lane.b32.xlu0 %v7767_v17, %s7676_s24 }
  0x82   : > { %1975 = vrot.lane.b32.xlu1 %v7773_v18, %s7676_s24 }
  0x84   : > { %2219 = vrot.lane.b32.xlu0 %v7741_v8, %s7677_s25 }
  0x86   : > { %v215_v19 = vpop.permute.xlu0 %214  ;;  %2221 = vrot.lane.b32.xlu1 %v7750_v12, %s7677_s25 }
  0x88   : > { %v219_v20 = vpop.permute.xlu1 %218  ;;  %2223 = vrot.lane.b32.xlu0 %v7746_v11, %s7677_s25 }
  0x8a   : > { %v217_v21 = vpop.permute.xlu0 %216  ;;  %2225 = vrot.lane.b32.xlu1 %v7755_v13, %s7677_s25 }
  0x8b   : > { %v232_v22 = vsel %vm230_vm0, %v217_v21, %v219_v20  ;;  %v231_v23 = vsel %vm230_vm0, %v215_v19, %v217_v21 }
  0x8c   : > { %7178 = vmatprep.subr.msk.bf16.mxu0 %vm242_vm1, %v232_v22  ;;  %v221_v24 = vpop.permute.xlu1 %220  ;;  %v244_v25 = vsel %vm242_vm1, %v231_v23, 0  ;;  %2227 = vrot.lane.b32.xlu0 %v7758_v14, %s7677_s25 }
  0x8d   : > { %265 = vmatpush1.bf16.msra.mxu0 %v244_v25  ;;  %v233_v27 = vsel %vm230_vm0, %v219_v20, %v221_v24 }
  0x8e   : > { %v223_v28 = vpop.permute.xlu0 %222  ;;  %2229 = vrot.lane.b32.xlu1 %v7764_v16, %s7677_s25  ;;  %v250_v32 = vsel %vm242_vm1, %v233_v27, 0 }
  0x8f   : > { %v234_v29 = vsel %vm230_vm0, %v221_v24, %v223_v28 }
  0x90   : > { %7179 = vmatmul.mubr.msk.bf16.vlgmr.msra.gmra.mrb[0].mxu0 %vm238_vm2, %v7177_v26  ;;  %7180 = vmatprep.subr.msk.bf16.mxu1 %vm242_vm1, %v234_v29  ;;  %v225_v31 = vpop.permute.xlu1 %224 }
  0x91   : > { %v235_v33 = vsel %vm230_vm0, %v223_v28, %v225_v31  ;;  %306 = vmatpush1.bf16.msra.mxu1 %v250_v32  ;;  %378 = vmatprep.mubr.bf16.mxu0 %v7669_v6 }
  0x92   : > { %v227_v34 = vpop.permute.xlu0 %226  ;;  %7448 = vmatprep.subr.bf16.mxu1 %v7678_v35  ;;  %2231 = vrot.lane.b32.xlu0 %v7767_v17, %s7677_s25  ;;  %v256_v39 = vsel %vm242_vm1, %v235_v33, 0 }
  0x93   : > { %v236_v37 = vsel %vm230_vm0, %v225_v31, %v227_v34  ;;  %2233 = vrot.lane.b32.xlu1 %v7773_v18, %s7677_s25  ;;  %s7687_s25 = smov 7  }
  0x94   : > { %7181 = vmatmul.mubr.msk.bf16.vlgmr.msra.gmra.mrb[0].mxu1 %vm238_vm2, %v7177_v26  ;;  %7182 = vmatprep.subr.msk.bf16.mxu0 %vm242_vm1, %v236_v37  ;;  %v229_v38 = vpop.permute.xlu1 %228  ;;  %v7200_v37 = vld [vmem:[%s9068_s0 + $0xc] sm:$0xf] }
  0x95   : > { %v237_v40 = vsel %vm230_vm0, %v227_v34, %v229_v38  ;;  %347 = vmatpush1.bf16.msra.mxu0 %v256_v39  ;;  %7450 = vmatprep.mubr.msk.bf16.mxu1 %vm7679_vm3, %v7678_v35  ;;  %vm3783_vm0 = vcmask 130048  }
  0x96   : > { %v262_v41 = vsel %vm242_vm1, %v237_v40, 0  ;;  %7185 = vmatprep.subr.msk.bf16.mxu0 %vm242_vm1, %v7750_v12  ;;  %2477 = vrot.lane.b32.xlu0 %v7741_v8, %s7680_s28  ;;  %v672_v43 = vpop.permute.xlu0 %671 }
  0x97   : > { %7449 = vmatpush3.bf16.msra.mxu1 %v262_v41  ;;  %2479 = vrot.lane.b32.xlu1 %v7750_v12, %s7680_s28 }
  0x98   : > { %7183 = vmatmul.mubr.msk.bf16.vlgmr.msra.gmra.mrb[4].mxu0 %vm238_vm2, %v7177_v26  ;;  %7187 = vmatprep.subr.msk.bf16.mxu1 %vm242_vm1, %v7755_v13  ;;  %v674_v45 = vpop.permute.xlu1 %673 }
  0x99   : > { %469 = vmatpush1.bf16.msra.mxu0 %v448_v42  ;;  %500 = vmatprep.mubr.bf16.mxu0 %v7669_v6  ;;  %v688_v58 = vsel %vm687_vm4, %v672_v43, %v674_v45 }
  0x9a   : > { %2481 = vrot.lane.b32.xlu0 %v7746_v11, %s7680_s28  ;;  %7189 = vmatprep.subr.msk.bf16.mxu0 %vm242_vm1, %v443_v44  ;;  %v676_v47 = vpop.permute.xlu0 %675  ;;  %v699_v61 = vsel %vm242_vm1, %v688_v58, 0 }
  0x9b   : > { %2483 = vrot.lane.b32.xlu1 %v7755_v13, %s7680_s28  ;;  %v689_v54 = vsel %vm687_vm4, %v674_v45, %v676_v47 }
  0x9c   : > { %7451 = vmatmul.mubr.msk.bf16.vlgmr.msra.gmra.mrb[4].mxu1 %vm238_vm2, %v7177_v26  ;;  %v678_v49 = vpop.permute.xlu1 %677 }
  0x9d   : > { %510 = vmatpush1.bf16.msra.mxu1 %v454_v46  ;;  %541 = vmatprep.mubr.bf16.mxu1 %v7669_v6  ;;  %v690_v63 = vsel %vm687_vm4, %v676_v47, %v678_v49 }
  0x9e   : > { %7454 = vmatprep.subr.bf16.mxu1 %v7678_v35  ;;  %2485 = vrot.lane.b32.xlu0 %v7758_v14, %s7680_s28  ;;  %v680_v53 = vpop.permute.xlu0 %679  ;;  %v705_v2 = vsel %vm242_vm1, %v690_v63, 0 }
  0x9f   : > { %2487 = vrot.lane.b32.xlu1 %v7764_v16, %s7680_s28  ;;  %v691_v59 = vsel %vm687_vm4, %v678_v49, %v680_v53 }
  0xa0   : > { %7186 = vmatmul.mubr.msk.bf16.vlgmr.msra.gmra.mrb[8].mxu0 %vm238_vm2, %v174_v50  ;;  %v682_v55 = vpop.permute.xlu1 %681 }
  0xa1   : > { %551 = vmatpush1.bf16.msra.mxu0 %v460_v51  ;;  %582 = vmatprep.mubr.bf16.mxu0 %v7669_v6  ;;  %v692_v4 = vsel %vm687_vm4, %v680_v53, %v682_v55 }
  0xa2   : > { %7193 = vmatprep.subr.msk.bf16.mxu0 %vm242_vm1, %v689_v54  ;;  %2489 = vrot.lane.b32.xlu0 %v7767_v17, %s7680_s28  ;;  %v684_v57 = vpop.permute.xlu0 %683  ;;  %v711_v10 = vsel %vm242_vm1, %v692_v4, 0 }
  0xa3   : > { %2491 = vrot.lane.b32.xlu1 %v7773_v18, %s7680_s28  ;;  %v693_v0 = vsel %vm687_vm4, %v682_v55, %v684_v57  ;;  %s7688_s28 = smov 6  }
  0xa4   : > { %7188 = vmatmul.mubr.msk.bf16.vlgmr.msra.gmra.mrb[8].mxu1 %vm238_vm2, %v174_v50  ;;  %v686_v60 = vpop.permute.xlu1 %685 }
  0xa5   : > { %7455 = vmatpush3.bf16.msra.mxu1 %v466_v56  ;;  %7456 = vmatprep.mubr.msk.bf16.mxu1 %vm7679_vm3, %v7678_v35  ;;  %v694_v19 = vsel %vm687_vm4, %v684_v57, %v686_v60  ;;  %v7208_v57 = vld [vmem:[%s9068_s0 + $0x10] sm:$0xf]  ;;  %vm4041_vm4 = vcmask 64512  }
  0xa6   : > { %7195 = vmatprep.subr.msk.bf16.mxu1 %vm242_vm1, %v691_v59  ;;  %2735 = vrot.lane.b32.xlu0 %v7741_v8, %s7681_s4  ;;  %v930_v62 = vpop.permute.xlu0 %929  ;;  %v717_v22 = vsel %vm242_vm1, %v694_v19, 0 }
  0xa7   : > { %2737 = vrot.lane.b32.xlu1 %v7750_v12, %s7681_s4 }
  0xa8   : > { %7190 = vmatmul.mubr.msk.bf16.vlgmr.msra.gmra.mrb[12].mxu0 %vm238_vm2, %v174_v50  ;;  %v932_v1 = vpop.permute.xlu1 %931 }
  0xa9   : > { %720 = vmatpush1.bf16.msra.mxu0 %v699_v61  ;;  %751 = vmatprep.mubr.bf16.mxu0 %v7669_v6  ;;  %v946_v24 = vsel %vm945_vm5, %v930_v62, %v932_v1 }
  0xaa   : > { %7197 = vmatprep.subr.msk.bf16.mxu0 %vm242_vm1, %v693_v0  ;;  %2739 = vrot.lane.b32.xlu0 %v7746_v11, %s7681_s4  ;;  %v934_v3 = vpop.permute.xlu0 %933  ;;  %v957_v27 = vsel %vm242_vm1, %v946_v24, 0 }
  0xab   : > { %2741 = vrot.lane.b32.xlu1 %v7755_v13, %s7681_s4  ;;  %v947_v20 = vsel %vm945_vm5, %v932_v1, %v934_v3 }
  0xac   : > { %7457 = vmatmul.mubr.msk.bf16.vlgmr.msra.gmra.mrb[12].mxu1 %vm238_vm2, %v174_v50  ;;  %v936_v7 = vpop.permute.xlu1 %935 }
  0xad   : > { %761 = vmatpush1.bf16.msra.mxu1 %v705_v2  ;;  %792 = vmatprep.mubr.bf16.mxu1 %v7669_v6  ;;  %v948_v29 = vsel %vm945_vm5, %v934_v3, %v936_v7 }
  0xae   : > { %7460 = vmatprep.subr.bf16.mxu1 %v7678_v35  ;;  %2743 = vrot.lane.b32.xlu0 %v7758_v14, %s7681_s4  ;;  %v938_v15 = vpop.permute.xlu0 %937  ;;  %v963_v32 = vsel %vm242_vm1, %v948_v29, 0 }
  0xaf   : > { %2745 = vrot.lane.b32.xlu1 %v7764_v16, %s7681_s4  ;;  %v949_v25 = vsel %vm945_vm5, %v936_v7, %v938_v15 }
  0xb0   : > { %7194 = vmatmul.mubr.msk.bf16.vlgmr.msra.gmra.mrb[16].mxu0 %vm238_vm2, %v7192_v9  ;;  %v940_v21 = vpop.permute.xlu1 %939 }
  0xb1   : > { %802 = vmatpush1.bf16.msra.mxu0 %v711_v10  ;;  %833 = vmatprep.mubr.bf16.mxu0 %v7669_v6  ;;  %v950_v34 = vsel %vm945_vm5, %v938_v15, %v940_v21 }
  0xb2   : > { %7201 = vmatprep.subr.msk.bf16.mxu0 %vm242_vm1, %v947_v20  ;;  %2747 = vrot.lane.b32.xlu0 %v7767_v17, %s7681_s4  ;;  %v942_v23 = vpop.permute.xlu0 %941  ;;  %v969_v38 = vsel %vm242_vm1, %v950_v34, 0 }
  0xb3   : > { %2749 = vrot.lane.b32.xlu1 %v7773_v18, %s7681_s4  ;;  %v951_v30 = vsel %vm945_vm5, %v940_v21, %v942_v23  ;;  %v7216_v21 = vld [vmem:[%s9068_s0 + $0x14] sm:$0xf]  ;;  %s7689_s4 = smov 56  }
  0xb4   : > { %7196 = vmatmul.mubr.msk.bf16.vlgmr.msra.gmra.mrb[16].mxu1 %vm238_vm2, %v7192_v9  ;;  %v944_v26 = vpop.permute.xlu1 %943 }
  0xb5   : > { %7461 = vmatpush3.bf16.msra.mxu1 %v717_v22  ;;  %7462 = vmatprep.mubr.msk.bf16.mxu1 %vm7679_vm3, %v7678_v35  ;;  %v952_v40 = vsel %vm945_vm5, %v942_v23, %v944_v26  ;;  %vm4299_vm5 = vcmask 56320  }
  0xb6   : > { %7203 = vmatprep.subr.msk.bf16.mxu1 %vm242_vm1, %v949_v25  ;;  %2993 = vrot.lane.b32.xlu0 %v7741_v8, %s7682_s7  ;;  %v1188_v28 = vpop.permute.xlu0 %1187  ;;  %v975_v43 = vsel %vm242_vm1, %v952_v40, 0 }
  0xb7   : > { %2995 = vrot.lane.b32.xlu1 %v7750_v12, %s7682_s7 }
  0xb8   : > { %7198 = vmatmul.mubr.msk.bf16.vlgmr.msra.gmra.mrb[20].mxu0 %vm238_vm2, %v7192_v9  ;;  %v1190_v31 = vpop.permute.xlu1 %1189 }
  0xb9   : > { %978 = vmatpush1.bf16.msra.mxu0 %v957_v27  ;;  %1009 = vmatprep.mubr.bf16.mxu0 %v7669_v6  ;;  %v1204_v45 = vsel %vm1203_vm6, %v1188_v28, %v1190_v31 }
  0xba   : > { %7205 = vmatprep.subr.msk.bf16.mxu0 %vm242_vm1, %v951_v30  ;;  %2997 = vrot.lane.b32.xlu0 %v7746_v11, %s7682_s7  ;;  %v1192_v33 = vpop.permute.xlu0 %1191  ;;  %v1215_v48 = vsel %vm242_vm1, %v1204_v45, 0 }
  0xbb   : > { %2999 = vrot.lane.b32.xlu1 %v7755_v13, %s7682_s7  ;;  %v1205_v41 = vsel %vm1203_vm6, %v1190_v31, %v1192_v33 }
  0xbc   : > { %7463 = vmatmul.mubr.msk.bf16.vlgmr.msra.gmra.mrb[20].mxu1 %vm238_vm2, %v7192_v9  ;;  %v1194_v36 = vpop.permute.xlu1 %1193 }
  0xbd   : > { %1019 = vmatpush1.bf16.msra.mxu1 %v963_v32  ;;  %1050 = vmatprep.mubr.bf16.mxu1 %v7669_v6  ;;  %v1206_v50 = vsel %vm1203_vm6, %v1192_v33, %v1194_v36  ;;  %v3728_v33 = vld [vmem:[%s7736_s17 + $0x8] sm:$0xff] }
  0xbe   : > { %7466 = vmatprep.subr.bf16.mxu1 %v7678_v35  ;;  %3001 = vrot.lane.b32.xlu0 %v7758_v14, %s7682_s7  ;;  %v1196_v39 = vpop.permute.xlu0 %1195  ;;  %v1221_v53 = vsel %vm242_vm1, %v1206_v50, 0  ;;  %v3750_v40 = vcombine.high %v3728_v33, %v3728_v33 }
  0xbf   : > { %3003 = vrot.lane.b32.xlu1 %v7764_v16, %s7682_s7  ;;  %v1207_v46 = vsel %vm1203_vm6, %v1194_v36, %v1196_v39 }
  0xc0   : > { %7202 = vmatmul.mubr.msk.bf16.vlgmr.msra.gmra.mrb[24].mxu0 %vm238_vm2, %v7200_v37  ;;  %v1198_v42 = vpop.permute.xlu1 %1197 }
  0xc1   : > { %1060 = vmatpush1.bf16.msra.mxu0 %v969_v38  ;;  %1091 = vmatprep.mubr.bf16.mxu0 %v7669_v6  ;;  %v1208_v55 = vsel %vm1203_vm6, %v1196_v39, %v1198_v42  ;;  %v8110_v39 = vrot.slane %v3728_v33, %v7729_v5 }
  0xc2   : > { %7209 = vmatprep.subr.msk.bf16.mxu0 %vm242_vm1, %v1205_v41  ;;  %3005 = vrot.lane.b32.xlu0 %v7767_v17, %s7682_s7  ;;  %v1200_v44 = vpop.permute.xlu0 %1199  ;;  %v1227_v58 = vsel %vm242_vm1, %v1208_v55, 0 }
  0xc3   : > { %3007 = vrot.lane.b32.xlu1 %v7773_v18, %s7682_s7  ;;  %v1209_v51 = vsel %vm1203_vm6, %v1198_v42, %v1200_v44  ;;  %s7690_s7 = smov 55  }
  0xc4   : > { %7204 = vmatmul.mubr.msk.bf16.vlgmr.msra.gmra.mrb[24].mxu1 %vm238_vm2, %v7200_v37  ;;  %v1202_v47 = vpop.permute.xlu1 %1201 }
  0xc5   : > { %7467 = vmatpush3.bf16.msra.mxu1 %v975_v43  ;;  %7468 = vmatprep.mubr.msk.bf16.mxu1 %vm7679_vm3, %v7678_v35  ;;  %v1210_v60 = vsel %vm1203_vm6, %v1200_v44, %v1202_v47  ;;  %v8121_v44 = vcombine.high %v8110_v39, %v8110_v39  ;;  %v8129_v47 = vrot.slane %v3750_v40, %v7729_v5  ;;  %vm4557_vm6 = vcmask 48128  }
  0xc6   : > { %7211 = vmatprep.subr.msk.bf16.mxu1 %vm242_vm1, %v1207_v46  ;;  %3251 = vrot.lane.b32.xlu0 %v7741_v8, %s7683_s10  ;;  %v1446_v49 = vpop.permute.xlu0 %1445  ;;  %v1233_v63 = vsel %vm242_vm1, %v1210_v60, 0  ;;  %v7224_v46 = vld [vmem:[%s9068_s0 + $0x18] sm:$0xf] }
  0xc7   : > { %3253 = vrot.lane.b32.xlu1 %v7750_v12, %s7683_s10 }
  0xc8   : > { %7206 = vmatmul.mubr.msk.bf16.vlgmr.msra.gmra.mrb[28].mxu0 %vm238_vm2, %v7200_v37  ;;  %v1448_v52 = vpop.permute.xlu1 %1447 }
  0xc9   : > { %1236 = vmatpush1.bf16.msra.mxu0 %v1215_v48  ;;  %1267 = vmatprep.mubr.bf16.mxu0 %v7669_v6  ;;  %v1462_v1 = vsel %vm1461_vm7, %v1446_v49, %v1448_v52 }
  0xca   : > { %7213 = vmatprep.subr.msk.bf16.mxu0 %vm242_vm1, %v1209_v51  ;;  %3255 = vrot.lane.b32.xlu0 %v7746_v11, %s7683_s10  ;;  %v1450_v54 = vpop.permute.xlu0 %1449  ;;  %v1473_v4 = vsel %vm242_vm1, %v1462_v1, 0 }
  0xcb   : > { %3257 = vrot.lane.b32.xlu1 %v7755_v13, %s7683_s10  ;;  %v1463_v61 = vsel %vm1461_vm7, %v1448_v52, %v1450_v54  ;;  %v8141_v52 = vcombine.high %v8129_v47, %v8129_v47 }
  0xcc   : > { %7469 = vmatmul.mubr.msk.bf16.vlgmr.msra.gmra.mrb[28].mxu1 %vm238_vm2, %v7200_v37  ;;  %v1452_v56 = vpop.permute.xlu1 %1451 }
  0xcd   : > { %1277 = vmatpush1.bf16.msra.mxu1 %v1221_v53  ;;  %1308 = vmatprep.mubr.bf16.mxu1 %v7669_v6  ;;  %v1464_v9 = vsel %vm1461_vm7, %v1450_v54, %v1452_v56 }
  0xce   : > { %7472 = vmatprep.subr.bf16.mxu1 %v7678_v35  ;;  %3259 = vrot.lane.b32.xlu0 %v7758_v14, %s7683_s10  ;;  %v1454_v59 = vpop.permute.xlu0 %1453  ;;  %v1479_v19 = vsel %vm242_vm1, %v1464_v9, 0 }
  0xcf   : > { %3261 = vrot.lane.b32.xlu1 %v7764_v16, %s7683_s10  ;;  %v1465_v2 = vsel %vm1461_vm7, %v1452_v56, %v1454_v59 }
  0xd0   : > { %7210 = vmatmul.mubr.msk.bf16.vlgmr.msra.gmra.mrb[32].mxu0 %vm238_vm2, %v7208_v57  ;;  %v1456_v62 = vpop.permute.xlu1 %1455 }
  0xd1   : > { %1318 = vmatpush1.bf16.msra.mxu0 %v1227_v58  ;;  %1349 = vmatprep.mubr.bf16.mxu0 %v7669_v6  ;;  %v1466_v20 = vsel %vm1461_vm7, %v1454_v59, %v1456_v62 }
  0xd2   : > { %7217 = vmatprep.subr.msk.bf16.mxu0 %vm242_vm1, %v1463_v61  ;;  %3263 = vrot.lane.b32.xlu0 %v7767_v17, %s7683_s10  ;;  %v1458_v0 = vpop.permute.xlu0 %1457  ;;  %v1485_v22 = vsel %vm242_vm1, %v1466_v20, 0 }
  0xd3   : > { %3265 = vrot.lane.b32.xlu1 %v7773_v18, %s7683_s10  ;;  %v1467_v10 = vsel %vm1461_vm7, %v1456_v62, %v1458_v0  ;;  %s7691_s10 = smov 54  }
  0xd4   : > { %7212 = vmatmul.mubr.msk.bf16.vlgmr.msra.gmra.mrb[32].mxu1 %vm238_vm2, %v7208_v57  ;;  %v1460_v3 = vpop.permute.xlu1 %1459 }
  0xd5   : > { %7473 = vmatpush3.bf16.msra.mxu1 %v1233_v63  ;;  %7474 = vmatprep.mubr.msk.bf16.mxu1 %vm7679_vm3, %v7678_v35  ;;  %v1468_v23 = vsel %vm1461_vm7, %v1458_v0, %v1460_v3  ;;  %vm4815_vm7 = vcmask 457728  }
  0xd6   : > { %7219 = vmatprep.subr.msk.bf16.mxu1 %vm242_vm1, %v1465_v2  ;;  %3509 = vrot.lane.b32.xlu0 %v7741_v8, %s7684_s15  ;;  %v1704_v7 = vpop.permute.xlu0 %1703 }
  0xd7   : > { %3511 = vrot.lane.b32.xlu1 %v7750_v12, %s7684_s15 }
  0xd8   : > { %7214 = vmatmul.mubr.msk.bf16.vlgmr.msra.gmra.mrb[36].mxu0 %vm238_vm2, %v7208_v57  ;;  %v1706_v15 = vpop.permute.xlu1 %1705 }
  0xd9   : > { %1494 = vmatpush1.bf16.msra.mxu0 %v1473_v4  ;;  %1525 = vmatprep.mubr.bf16.mxu0 %v7669_v6  ;;  %v7232_v4 = vld [vmem:[%s9068_s0 + $0x1c] sm:$0xf] }
  0xda   : > { %7221 = vmatprep.subr.msk.bf16.mxu0 %vm242_vm1, %v1467_v10  ;;  %3513 = vrot.lane.b32.xlu0 %v7746_v11, %s7684_s15  ;;  %v1708_v8 = vpop.permute.xlu0 %1707 }
  0xdb   : > { %3515 = vrot.lane.b32.xlu1 %v7755_v13, %s7684_s15  ;;  %v3727_v13 = vld [vmem:[%s7736_s17] sm:$0xff]  ;;  %v1721_v24 = vsel %vm1719_vm8, %v1706_v15, %v1708_v8 }
  0xdc   : > { %7475 = vmatmul.mubr.msk.bf16.vlgmr.msra.gmra.mrb[36].mxu1 %vm238_vm2, %v7208_v57  ;;  %v1710_v12 = vpop.permute.xlu1 %1709  ;;  %v8074_v26 = vrot.slane %v3727_v13, %v7729_v5  ;;  %v3733_v27 = vcombine.high %v3727_v13, %v3727_v13 }
  0xdd   : > { %1535 = vmatpush1.bf16.msra.mxu1 %v1479_v19  ;;  %1566 = vmatprep.mubr.bf16.mxu1 %v7669_v6  ;;  %v1722_v34 = vsel %vm1719_vm8, %v1708_v8, %v1710_v12 }
  0xde   : > { %7478 = vmatprep.subr.bf16.mxu1 %v7678_v35  ;;  %3517 = vrot.lane.b32.xlu0 %v7758_v14, %s7684_s15  ;;  %v1712_v11 = vpop.permute.xlu0 %1711  ;;  %v1491_v14 = vsel %vm242_vm1, %v1468_v23, 0  ;;  %v8086_v30 = vcombine.high %v8074_v26, %v8074_v26  ;;  %v1737_v41 = vsel %vm242_vm1, %v1722_v34, 0 }
  0xdf   : > { %3519 = vrot.lane.b32.xlu1 %v7764_v16, %s7684_s15  ;;  %v1720_v16 = vsel %vm1719_vm8, %v1704_v7, %v1706_v15  ;;  %v1723_v29 = vsel %vm1719_vm8, %v1710_v12, %v1712_v11 }
  0xe0   : > { %7218 = vmatmul.mubr.msk.bf16.vlgmr.msra.gmra.mrb[40].mxu0 %vm238_vm2, %v7216_v21  ;;  %v1714_v25 = vpop.permute.xlu1 %1713  ;;  %v1731_v32 = vsel %vm242_vm1, %v1720_v16, 0  ;;  %v7240_v16 = vld [vmem:[%s9068_s0 + $0x20] sm:$0xf] }
  0xe1   : > { %1576 = vmatpush1.bf16.msra.mxu0 %v1485_v22  ;;  %1607 = vmatprep.mubr.bf16.mxu0 %v7669_v6  ;;  %v1724_v43 = vsel %vm1719_vm8, %v1712_v11, %v1714_v25 }
  0xe2   : > { %7225 = vmatprep.subr.msk.bf16.mxu0 %vm242_vm1, %v1721_v24  ;;  %3521 = vrot.lane.b32.xlu0 %v7767_v17, %s7684_s15  ;;  %v1716_v28 = vpop.permute.xlu0 %1715  ;;  %v8092_v17 = vrot.slane %v3733_v27, %v7729_v5  ;;  %v1743_v48 = vsel %vm242_vm1, %v1724_v43, 0 }
  0xe3   : > { %3523 = vrot.lane.b32.xlu1 %v7773_v18, %s7684_s15  ;;  %v1725_v36 = vsel %vm1719_vm8, %v1714_v25, %v1716_v28  ;;  %s7692_s15 = smov 46  }
  0xe4   : > { %7220 = vmatmul.mubr.msk.bf16.vlgmr.msra.gmra.mrb[40].mxu1 %vm238_vm2, %v7216_v21  ;;  %v1718_v31 = vpop.permute.xlu1 %1717  ;;  %v8105_v37 = vcombine.high %v8092_v17, %v8092_v17 }
  0xe5   : > { %7479 = vmatpush3.bf16.msra.mxu1 %v1491_v14  ;;  %7480 = vmatprep.mubr.msk.bf16.mxu1 %vm7679_vm3, %v7678_v35  ;;  %v1726_v50 = vsel %vm1719_vm8, %v1716_v28, %v1718_v31  ;;  %vm5073_vm8 = vcmask 449536  }
  0xe6   : > { %7227 = vmatprep.subr.msk.bf16.mxu1 %vm242_vm1, %v1723_v29  ;;  %3767 = vrot.lane.b32.xlu0 %v8074_v26, %s7685_s19  ;;  %v1962_v18 = vpop.permute.xlu0 %1961  ;;  %v1749_v54 = vsel %vm242_vm1, %v1726_v50, 0 }
  0xe7   : > { %3769 = vrot.lane.b32.xlu1 %v8086_v30, %s7685_s19 }
  0xe8   : > { %7222 = vmatmul.mubr.msk.bf16.vlgmr.msra.gmra.mrb[44].mxu0 %vm238_vm2, %v7216_v21  ;;  %v1964_v38 = vpop.permute.xlu1 %1963 }
  0xe9   : > { %1752 = vmatpush1.bf16.msra.mxu0 %v1731_v32  ;;  %1783 = vmatprep.mubr.bf16.mxu0 %v7669_v6  ;;  %v1978_v56 = vsel %vm1977_vm9, %v1962_v18, %v1964_v38 }
  0xea   : > { %7229 = vmatprep.subr.msk.bf16.mxu0 %vm242_vm1, %v1725_v36  ;;  %3771 = vrot.lane.b32.xlu0 %v8092_v17, %s7685_s19  ;;  %v1966_v42 = vpop.permute.xlu0 %1965  ;;  %v1989_v59 = vsel %vm242_vm1, %v1978_v56, 0 }
  0xeb   : > { %3773 = vrot.lane.b32.xlu1 %v8105_v37, %s7685_s19  ;;  %v1979_v51 = vsel %vm1977_vm9, %v1964_v38, %v1966_v42 }
  0xec   : > { %7481 = vmatmul.mubr.msk.bf16.vlgmr.msra.gmra.mrb[44].mxu1 %vm238_vm2, %v7216_v21  ;;  %v1968_v45 = vpop.permute.xlu1 %1967 }
  0xed   : > { %1793 = vmatpush1.bf16.msra.mxu1 %v1737_v41  ;;  %1824 = vmatprep.mubr.bf16.mxu1 %v7669_v6  ;;  %v1980_v61 = vsel %vm1977_vm9, %v1966_v42, %v1968_v45 }
  0xee   : > { %7484 = vmatprep.subr.bf16.mxu1 %v7678_v35  ;;  %3775 = vrot.lane.b32.xlu0 %v8110_v39, %s7685_s19  ;;  %v1970_v49 = vpop.permute.xlu0 %1969  ;;  %v1995_v0 = vsel %vm242_vm1, %v1980_v61, 0 }
  0xef   : > { %3777 = vrot.lane.b32.xlu1 %v8121_v44, %s7685_s19  ;;  %v1981_v57 = vsel %vm1977_vm9, %v1968_v45, %v1970_v49 }
  0xf0   : > { %7226 = vmatmul.mubr.msk.bf16.vlgmr.msra.gmra.mrb[48].mxu0 %vm238_vm2, %v7224_v46  ;;  %v1972_v53 = vpop.permute.xlu1 %1971 }
  0xf1   : > { %1834 = vmatpush1.bf16.msra.mxu0 %v1743_v48  ;;  %1865 = vmatprep.mubr.bf16.mxu0 %v7669_v6  ;;  %v1982_v2 = vsel %vm1977_vm9, %v1970_v49, %v1972_v53 }
  0xf2   : > { %7233 = vmatprep.subr.msk.bf16.mxu0 %vm242_vm1, %v1979_v51  ;;  %3779 = vrot.lane.b32.xlu0 %v8129_v47, %s7685_s19  ;;  %v1974_v55 = vpop.permute.xlu0 %1973  ;;  %v2001_v7 = vsel %vm242_vm1, %v1982_v2, 0  ;;  %v7248_v51 = vld [vmem:[%s9068_s0 + $0x24] sm:$0xf] }
  0xf3   : > { %3781 = vrot.lane.b32.xlu1 %v8141_v52, %s7685_s19  ;;  %v1983_v62 = vsel %vm1977_vm9, %v1972_v53, %v1974_v55  ;;  %s7693_s19 = smov 45  }
  0xf4   : > { %7228 = vmatmul.mubr.msk.bf16.vlgmr.msra.gmra.mrb[48].mxu1 %vm238_vm2, %v7224_v46  ;;  %v1976_v58 = vpop.permute.xlu1 %1975 }
  0xf5   : > { %7485 = vmatpush3.bf16.msra.mxu1 %v1749_v54  ;;  %7486 = vmatprep.mubr.msk.bf16.mxu1 %vm7679_vm3, %v7678_v35  ;;  %v1984_v10 = vsel %vm1977_vm9, %v1974_v55, %v1976_v58  ;;  %vm5331_vm9 = vcmask 441344  }
  0xf6   : > { %7235 = vmatprep.subr.msk.bf16.mxu1 %vm242_vm1, %v1981_v57  ;;  %4025 = vrot.lane.b32.xlu0 %v8074_v26, %s7686_s22  ;;  %v2220_v60 = vpop.permute.xlu0 %2219  ;;  %v2007_v8 = vsel %vm242_vm1, %v1984_v10, 0 }
  0xf7   : > { %4027 = vrot.lane.b32.xlu1 %v8086_v30, %s7686_s22 }
  0xf8   : > { %7230 = vmatmul.mubr.msk.bf16.vlgmr.msra.gmra.mrb[52].mxu0 %vm238_vm2, %v7224_v46  ;;  %v2222_v63 = vpop.permute.xlu1 %2221 }
  0xf9   : > { %2010 = vmatpush1.bf16.msra.mxu0 %v1989_v59  ;;  %2041 = vmatprep.mubr.bf16.mxu0 %v7669_v6  ;;  %v2236_v20 = vsel %vm2235_vm10, %v2220_v60, %v2222_v63 }
  0xfa   : > { %7237 = vmatprep.subr.msk.bf16.mxu0 %vm242_vm1, %v1983_v62  ;;  %4029 = vrot.lane.b32.xlu0 %v8092_v17, %s7686_s22  ;;  %v2224_v1 = vpop.permute.xlu0 %2223  ;;  %v2247_v11 = vsel %vm242_vm1, %v2236_v20, 0 }
  0xfb   : > { %4031 = vrot.lane.b32.xlu1 %v8105_v37, %s7686_s22  ;;  %v2237_v15 = vsel %vm2235_vm10, %v2222_v63, %v2224_v1 }
  0xfc   : > { %7487 = vmatmul.mubr.msk.bf16.vlgmr.msra.gmra.mrb[52].mxu1 %vm238_vm2, %v7224_v46  ;;  %v2226_v3 = vpop.permute.xlu1 %2225 }
  0xfd   : > { %2051 = vmatpush1.bf16.msra.mxu1 %v1995_v0  ;;  %2082 = vmatprep.mubr.bf16.mxu1 %v7669_v6  ;;  %v2238_v13 = vsel %vm2235_vm10, %v2224_v1, %v2226_v3 }
  0xfe   : > { %7490 = vmatprep.subr.bf16.mxu1 %v7678_v35  ;;  %4033 = vrot.lane.b32.xlu0 %v8110_v39, %s7686_s22  ;;  %v2228_v9 = vpop.permute.xlu0 %2227  ;;  %v2253_v27 = vsel %vm242_vm1, %v2238_v13, 0 }
  0xff   : > { %4035 = vrot.lane.b32.xlu1 %v8121_v44, %s7686_s22  ;;  %v2239_v12 = vsel %vm2235_vm10, %v2226_v3, %v2228_v9 }
 0x100   : > { %7234 = vmatmul.mubr.msk.bf16.vlgmr.msra.gmra.mrb[56].mxu0 %vm238_vm2, %v7232_v4  ;;  %v2230_v19 = vpop.permute.xlu1 %2229 }
 0x101   : > { %2092 = vmatpush1.bf16.msra.mxu0 %v2001_v7  ;;  %2123 = vmatprep.mubr.bf16.mxu0 %v7669_v6  ;;  %v2240_v14 = vsel %vm2235_vm10, %v2228_v9, %v2230_v19 }
 0x102   : > { %7241 = vmatprep.subr.msk.bf16.mxu0 %vm242_vm1, %v2237_v15  ;;  %4037 = vrot.lane.b32.xlu0 %v8129_v47, %s7686_s22  ;;  %v2259_v31 = vsel %vm242_vm1, %v2240_v14, 0 }
 0x103   : > { %4039 = vrot.lane.b32.xlu1 %v8141_v52, %s7686_s22  ;;  %s7694_s22 = smov 44  }
 0x104   : > { %7236 = vmatmul.mubr.msk.bf16.vlgmr.msra.gmra.mrb[56].mxu1 %vm238_vm2, %v7232_v4  ;;  %v2232_v21 = vpop.permute.xlu0 %2231 }
 0x105   : > { %7491 = vmatpush3.bf16.msra.mxu1 %v2007_v8  ;;  %7492 = vmatprep.mubr.msk.bf16.mxu1 %vm7679_vm3, %v7678_v35  ;;  %v2234_v22 = vpop.permute.xlu1 %2233  ;;  %v2241_v23 = vsel %vm2235_vm10, %v2230_v19, %v2232_v21 }
 0x106   : > { %7243 = vmatprep.subr.msk.bf16.mxu1 %vm242_vm1, %v2239_v12  ;;  %4283 = vrot.lane.b32.xlu0 %v8074_v26, %s7687_s25  ;;  %v2242_v32 = vsel %vm2235_vm10, %v2232_v21, %v2234_v22  ;;  %v7256_v12 = vld [vmem:[%s9068_s0 + $0x28] sm:$0xf]  ;;  %vm5589_vm10 = vcmask 375808  }
 0x107   : > { %4285 = vrot.lane.b32.xlu1 %v8086_v30, %s7687_s25  ;;  %v2265_v36 = vsel %vm242_vm1, %v2242_v32, 0 }
 0x108   : > { %7238 = vmatmul.mubr.msk.bf16.vlgmr.msra.gmra.mrb[60].mxu0 %vm238_vm2, %v7232_v4  ;;  %v2478_v24 = vpop.permute.xlu0 %2477 }
 0x109   : > { %2268 = vmatpush1.bf16.msra.mxu0 %v2247_v11  ;;  %2299 = vmatprep.mubr.bf16.mxu0 %v7669_v6  ;;  %v2480_v25 = vpop.permute.xlu1 %2479 }
 0x10a   : > { %7245 = vmatprep.subr.msk.bf16.mxu0 %vm242_vm1, %v2241_v23  ;;  %4287 = vrot.lane.b32.xlu0 %v8092_v17, %s7687_s25  ;;  %v2494_v38 = vsel %vm2493_vm11, %v2478_v24, %v2480_v25 }
 0x10b   : > { %4289 = vrot.lane.b32.xlu1 %v8105_v37, %s7687_s25  ;;  %v2505_v43 = vsel %vm242_vm1, %v2494_v38, 0 }
 0x10c   : > { %7493 = vmatmul.mubr.msk.bf16.vlgmr.msra.gmra.mrb[60].mxu1 %vm238_vm2, %v7232_v4  ;;  %v2482_v28 = vpop.permute.xlu0 %2481 }
 0x10d   : > { %2309 = vmatpush1.bf16.msra.mxu1 %v2253_v27  ;;  %2340 = vmatprep.mubr.bf16.mxu1 %v7669_v6  ;;  %v2484_v29 = vpop.permute.xlu1 %2483  ;;  %v2495_v18 = vsel %vm2493_vm11, %v2480_v25, %v2482_v28 }
 0x10e   : > { %7496 = vmatprep.subr.bf16.mxu1 %v7678_v35  ;;  %4291 = vrot.lane.b32.xlu0 %v8110_v39, %s7687_s25  ;;  %v2496_v45 = vsel %vm2493_vm11, %v2482_v28, %v2484_v29 }
 0x10f   : > { %4293 = vrot.lane.b32.xlu1 %v8121_v44, %s7687_s25  ;;  %v2511_v50 = vsel %vm242_vm1, %v2496_v45, 0 }
 0x110   : > { %7242 = vmatmul.mubr.msk.bf16.vlgmr.msra.gmra.mrb[64].mxu0 %vm238_vm2, %v7240_v16  ;;  %v2486_v33 = vpop.permute.xlu0 %2485 }
 0x111   : > { %2350 = vmatpush1.bf16.msra.mxu0 %v2259_v31  ;;  %2381 = vmatprep.mubr.bf16.mxu0 %v7669_v6  ;;  %v2488_v34 = vpop.permute.xlu1 %2487  ;;  %v2497_v40 = vsel %vm2493_vm11, %v2484_v29, %v2486_v33 }
 0x112   : > { %7249 = vmatprep.subr.msk.bf16.mxu0 %vm242_vm1, %v2495_v18  ;;  %4295 = vrot.lane.b32.xlu0 %v8129_v47, %s7687_s25 }
 0x113   : > { %4297 = vrot.lane.b32.xlu1 %v8141_v52, %s7687_s25  ;;  %s7695_s25 = smov 36  }
 0x114   : > { %7244 = vmatmul.mubr.msk.bf16.vlgmr.msra.gmra.mrb[64].mxu1 %vm238_vm2, %v7240_v16  ;;  %v2490_v41 = vpop.permute.xlu0 %2489 }
 0x115   : > { %7497 = vmatpush3.bf16.msra.mxu1 %v2265_v36  ;;  %7498 = vmatprep.mubr.msk.bf16.mxu1 %vm7679_vm3, %v7678_v35  ;;  %v2492_v42 = vpop.permute.xlu1 %2491  ;;  %v2499_v46 = vsel %vm2493_vm11, %v2488_v34, %v2490_v41 }
 0x116   : > { %7251 = vmatprep.subr.msk.bf16.mxu1 %vm242_vm1, %v2497_v40  ;;  %4541 = vrot.lane.b32.xlu0 %v8074_v26, %s7688_s28  ;;  %v2498_v26 = vsel %vm2493_vm11, %v2486_v33, %v2488_v34 }
 0x117   : > { %4543 = vrot.lane.b32.xlu1 %v8086_v30, %s7688_s28  ;;  %v2517_v54 = vsel %vm242_vm1, %v2498_v26, 0 }
 0x118   : > { %7246 = vmatmul.mubr.msk.bf16.vlgmr.msra.gmra.mrb[68].mxu0 %vm238_vm2, %v7240_v16  ;;  %v2736_v48 = vpop.permute.xlu0 %2735 }
 0x119   : > { %2526 = vmatpush1.bf16.msra.mxu0 %v2505_v43  ;;  %2557 = vmatprep.mubr.bf16.mxu0 %v7669_v6  ;;  %v2738_v49 = vpop.permute.xlu1 %2737 }
 0x11a   : > { %7253 = vmatprep.subr.msk.bf16.mxu0 %vm242_vm1, %v2499_v46  ;;  %4545 = vrot.lane.b32.xlu0 %v8092_v17, %s7688_s28  ;;  %v4759_v17 = vld [vmem:[%s7736_s17 + $0x2] sm:$0xff] }
 0x11b   : > { %4547 = vrot.lane.b32.xlu1 %v8105_v37, %s7688_s28  ;;  %v2500_v37 = vsel %vm2493_vm11, %v2490_v41, %v2492_v42  ;;  %v8276_v58 = vrot.slane %v4759_v17, %v7729_v5  ;;  %v4765_v59 = vcombine.high %v4759_v17, %v4759_v17  ;;  %v7264_v42 = vld [vmem:[%s9068_s0 + $0x2c] sm:$0xf]  ;;  %vm5847_vm11 = vcmask 367616  }
 0x11c   : > { %7499 = vmatmul.mubr.msk.bf16.vlgmr.msra.gmra.mrb[68].mxu1 %vm238_vm2, %v7240_v16  ;;  %v2740_v30 = vpop.permute.xlu0 %2739 }
 0x11d   : > { %2567 = vmatpush1.bf16.msra.mxu1 %v2511_v50  ;;  %2598 = vmatprep.mubr.bf16.mxu1 %v7669_v6  ;;  %v2742_v53 = vpop.permute.xlu1 %2741  ;;  %v2753_v55 = vsel %vm2751_vm12, %v2738_v49, %v2740_v30  ;;  %v8288_v61 = vcombine.high %v8276_v58, %v8276_v58 }
 0x11e   : > { %7502 = vmatprep.subr.bf16.mxu1 %v7678_v35  ;;  %4549 = vrot.lane.b32.xlu0 %v8110_v39, %s7688_s28  ;;  %v2523_v39 = vsel %vm242_vm1, %v2500_v37, 0  ;;  %v2754_v1 = vsel %vm2751_vm12, %v2740_v30, %v2742_v53 }
 0x11f   : > { %4551 = vrot.lane.b32.xlu1 %v8121_v44, %s7688_s28  ;;  %v2752_v44 = vsel %vm2751_vm12, %v2736_v48, %v2738_v49  ;;  %v2769_v15 = vsel %vm242_vm1, %v2754_v1, 0 }
 0x120   : > { %7250 = vmatmul.mubr.msk.bf16.vlgmr.msra.gmra.mrb[72].mxu0 %vm238_vm2, %v7248_v51  ;;  %v2744_v56 = vpop.permute.xlu0 %2743  ;;  %v2763_v0 = vsel %vm242_vm1, %v2752_v44, 0 }
 0x121   : > { %2608 = vmatpush1.bf16.msra.mxu0 %v2517_v54  ;;  %2639 = vmatprep.mubr.bf16.mxu0 %v7669_v6  ;;  %v2746_v57 = vpop.permute.xlu1 %2745  ;;  %v2755_v60 = vsel %vm2751_vm12, %v2742_v53, %v2744_v56 }
 0x122   : > { %7257 = vmatprep.subr.msk.bf16.mxu0 %vm242_vm1, %v2753_v55  ;;  %4553 = vrot.lane.b32.xlu0 %v8129_v47, %s7688_s28  ;;  %v8294_v47 = vrot.slane %v4765_v59, %v7729_v5  ;;  %v2756_v19 = vsel %vm2751_vm12, %v2744_v56, %v2746_v57 }
 0x123   : > { %4555 = vrot.lane.b32.xlu1 %v8141_v52, %s7688_s28  ;;  %v4760_v52 = vld [vmem:[%s7736_s17 + $0xa] sm:$0xff]  ;;  %v2775_v11 = vsel %vm242_vm1, %v2756_v19, 0  ;;  %s7696_s28 = smov 35  }
 0x124   : > { %7252 = vmatmul.mubr.msk.bf16.vlgmr.msra.gmra.mrb[72].mxu1 %vm238_vm2, %v7248_v51  ;;  %v2748_v62 = vpop.permute.xlu0 %2747  ;;  %v8307_v3 = vcombine.high %v8294_v47, %v8294_v47  ;;  %v8312_v9 = vrot.slane %v4760_v52, %v7729_v5  ;;  %v4782_v10 = vcombine.high %v4760_v52, %v4760_v52 }
 0x125   : > { %7503 = vmatpush3.bf16.msra.mxu1 %v2523_v39  ;;  %7504 = vmatprep.mubr.msk.bf16.mxu1 %vm7679_vm3, %v7678_v35  ;;  %v2750_v63 = vpop.permute.xlu1 %2749  ;;  %v2757_v2 = vsel %vm2751_vm12, %v2746_v57, %v2748_v62 }
 0x126   : > { %7259 = vmatprep.subr.msk.bf16.mxu1 %vm242_vm1, %v2755_v60  ;;  %4799 = vrot.lane.b32.xlu0 %v8276_v58, %s7689_s4  ;;  %v8323_v8 = vcombine.high %v8312_v9, %v8312_v9  ;;  %v8331_v22 = vrot.slane %v4782_v10, %v7729_v5  ;;  %v2758_v13 = vsel %vm2751_vm12, %v2748_v62, %v2750_v63  ;;  %v7272_v60 = vld [vmem:[%s9068_s0 + $0x30] sm:$0xf]  ;;  %vm6105_vm12 = vcmask 359424  }
 0x127   : > { %4801 = vrot.lane.b32.xlu1 %v8288_v61, %s7689_s4  ;;  %v2781_v14 = vsel %vm242_vm1, %v2758_v13, 0 }
 0x128   : > { %7254 = vmatmul.mubr.msk.bf16.vlgmr.msra.gmra.mrb[76].mxu0 %vm238_vm2, %v7248_v51  ;;  %v2994_v4 = vpop.permute.xlu0 %2993  ;;  %v8343_v24 = vcombine.high %v8331_v22, %v8331_v22 }
 0x129   : > { %2784 = vmatpush1.bf16.msra.mxu0 %v2763_v0  ;;  %2815 = vmatprep.mubr.bf16.mxu0 %v7669_v6  ;;  %v2996_v7 = vpop.permute.xlu1 %2995 }
 0x12a   : > { %7261 = vmatprep.subr.msk.bf16.mxu0 %vm242_vm1, %v2757_v2  ;;  %4803 = vrot.lane.b32.xlu0 %v8294_v47, %s7689_s4  ;;  %v3010_v28 = vsel %vm3009_vm13, %v2994_v4, %v2996_v7 }
 0x12b   : > { %4805 = vrot.lane.b32.xlu1 %v8307_v3, %s7689_s4  ;;  %v3021_v32 = vsel %vm242_vm1, %v3010_v28, 0 }
 0x12c   : > { %7505 = vmatmul.mubr.msk.bf16.vlgmr.msra.gmra.mrb[76].mxu1 %vm238_vm2, %v7248_v51  ;;  %v2998_v20 = vpop.permute.xlu0 %2997 }
 0x12d   : > { %2825 = vmatpush1.bf16.msra.mxu1 %v2769_v15  ;;  %2856 = vmatprep.mubr.bf16.mxu1 %v7669_v6  ;;  %v3000_v21 = vpop.permute.xlu1 %2999  ;;  %v3011_v23 = vsel %vm3009_vm13, %v2996_v7, %v2998_v20 }
 0x12e   : > { %7508 = vmatprep.subr.bf16.mxu1 %v7678_v35  ;;  %4807 = vrot.lane.b32.xlu0 %v8312_v9, %s7689_s4  ;;  %v3012_v18 = vsel %vm3009_vm13, %v2998_v20, %v3000_v21 }
 0x12f   : > { %4809 = vrot.lane.b32.xlu1 %v8323_v8, %s7689_s4  ;;  %v3027_v38 = vsel %vm242_vm1, %v3012_v18, 0 }
 0x130   : > { %7258 = vmatmul.mubr.msk.bf16.vlgmr.msra.gmra.mrb[80].mxu0 %vm238_vm2, %v7256_v12  ;;  %v3002_v25 = vpop.permute.xlu0 %3001 }
 0x131   : > { %2866 = vmatpush1.bf16.msra.mxu0 %v2775_v11  ;;  %2897 = vmatprep.mubr.bf16.mxu0 %v7669_v6  ;;  %v3004_v27 = vpop.permute.xlu1 %3003  ;;  %v3013_v16 = vsel %vm3009_vm13, %v3000_v21, %v3002_v25 }
 0x132   : > { %7265 = vmatprep.subr.msk.bf16.mxu0 %vm242_vm1, %v3011_v23  ;;  %4811 = vrot.lane.b32.xlu0 %v8331_v22, %s7689_s4  ;;  %v3014_v40 = vsel %vm3009_vm13, %v3002_v25, %v3004_v27 }
 0x133   : > { %4813 = vrot.lane.b32.xlu1 %v8343_v24, %s7689_s4  ;;  %v3033_v45 = vsel %vm242_vm1, %v3014_v40, 0  ;;  %s7697_s4 = smov 34  }
 0x134   : > { %7260 = vmatmul.mubr.msk.bf16.vlgmr.msra.gmra.mrb[80].mxu1 %vm238_vm2, %v7256_v12  ;;  %v3006_v29 = vpop.permute.xlu0 %3005 }
 0x135   : > { %7509 = vmatpush3.bf16.msra.mxu1 %v2781_v14  ;;  %7510 = vmatprep.mubr.msk.bf16.mxu1 %vm7679_vm3, %v7678_v35  ;;  %v3008_v31 = vpop.permute.xlu1 %3007  ;;  %v3015_v33 = vsel %vm3009_vm13, %v3004_v27, %v3006_v29  ;;  %v7280_v14 = vld [vmem:[%s9068_s0 + $0x34] sm:$0xf] }
 0x136   : > { %7267 = vmatprep.subr.msk.bf16.mxu1 %vm242_vm1, %v3013_v16  ;;  %5057 = vrot.lane.b32.xlu0 %v8276_v58, %s7690_s7  ;;  %v3016_v46 = vsel %vm3009_vm13, %v3006_v29, %v3008_v31  ;;  %vm6363_vm13 = vcmask 293888  }
 0x137   : > { %5059 = vrot.lane.b32.xlu1 %v8288_v61, %s7690_s7  ;;  %v3039_v26 = vsel %vm242_vm1, %v3016_v46, 0 }
 0x138   : > { %7262 = vmatmul.mubr.msk.bf16.vlgmr.msra.gmra.mrb[84].mxu0 %vm238_vm2, %v7256_v12  ;;  %v3252_v34 = vpop.permute.xlu0 %3251 }
 0x139   : > { %3042 = vmatpush1.bf16.msra.mxu0 %v3021_v32  ;;  %3073 = vmatprep.mubr.bf16.mxu0 %v7669_v6  ;;  %v3254_v36 = vpop.permute.xlu1 %3253 }
 0x13a   : > { %7269 = vmatprep.subr.msk.bf16.mxu0 %vm242_vm1, %v3015_v33  ;;  %5061 = vrot.lane.b32.xlu0 %v8294_v47, %s7690_s7  ;;  %v3268_v30 = vsel %vm3267_vm14, %v3252_v34, %v3254_v36 }
 0x13b   : > { %5063 = vrot.lane.b32.xlu1 %v8307_v3, %s7690_s7  ;;  %v3279_v17 = vsel %vm242_vm1, %v3268_v30, 0 }
 0x13c   : > { %7511 = vmatmul.mubr.msk.bf16.vlgmr.msra.gmra.mrb[84].mxu1 %vm238_vm2, %v7256_v12  ;;  %v3256_v41 = vpop.permute.xlu0 %3255 }
 0x13d   : > { %3083 = vmatpush1.bf16.msra.mxu1 %v3027_v38  ;;  %3114 = vmatprep.mubr.bf16.mxu1 %v7669_v6  ;;  %v3258_v43 = vpop.permute.xlu1 %3257  ;;  %v3269_v48 = vsel %vm3267_vm14, %v3254_v36, %v3256_v41 }
 0x13e   : > { %7514 = vmatprep.subr.bf16.mxu1 %v7678_v35  ;;  %5065 = vrot.lane.b32.xlu0 %v8312_v9, %s7690_s7  ;;  %v3270_v37 = vsel %vm3267_vm14, %v3256_v41, %v3258_v43 }
 0x13f   : > { %5067 = vrot.lane.b32.xlu1 %v8323_v8, %s7690_s7  ;;  %v3285_v59 = vsel %vm242_vm1, %v3270_v37, 0 }
 0x140   : > { %7266 = vmatmul.mubr.msk.bf16.vlgmr.msra.gmra.mrb[88].mxu0 %vm238_vm2, %v7264_v42  ;;  %v3260_v49 = vpop.permute.xlu0 %3259 }
 0x141   : > { %3124 = vmatpush1.bf16.msra.mxu0 %v3033_v45  ;;  %3155 = vmatprep.mubr.bf16.mxu0 %v7669_v6  ;;  %v3262_v50 = vpop.permute.xlu1 %3261  ;;  %v3271_v51 = vsel %vm3267_vm14, %v3258_v43, %v3260_v49 }
 0x142   : > { %7273 = vmatprep.subr.msk.bf16.mxu0 %vm242_vm1, %v3269_v48  ;;  %5069 = vrot.lane.b32.xlu0 %v8331_v22, %s7690_s7  ;;  %v3272_v39 = vsel %vm3267_vm14, %v3260_v49, %v3262_v50 }
 0x143   : > { %5071 = vrot.lane.b32.xlu1 %v8343_v24, %s7690_s7  ;;  %v3291_v63 = vsel %vm242_vm1, %v3272_v39, 0  ;;  %v7288_v39 = vld [vmem:[%s9068_s0 + $0x38] sm:$0xf] }
 0x144   : > { %7268 = vmatmul.mubr.msk.bf16.vlgmr.msra.gmra.mrb[88].mxu1 %vm238_vm2, %v7264_v42  ;;  %v3264_v53 = vpop.permute.xlu0 %3263 }
 0x145   : > { %7515 = vmatpush3.bf16.msra.mxu1 %v3039_v26  ;;  %7516 = vmatprep.mubr.msk.bf16.mxu1 %vm7679_vm3, %v7678_v35  ;;  %v3266_v54 = vpop.permute.xlu1 %3265  ;;  %v3273_v55 = vsel %vm3267_vm14, %v3262_v50, %v3264_v53 }
 0x146   : > { %7275 = vmatprep.subr.msk.bf16.mxu1 %vm242_vm1, %v3271_v51  ;;  %5315 = vrot.lane.b32.xlu0 %v8276_v58, %s7691_s10  ;;  %v3274_v0 = vsel %vm3267_vm14, %v3264_v53, %v3266_v54  ;;  %vm6621_vm14 = vcmask 285696  }
 0x147   : > { %5317 = vrot.lane.b32.xlu1 %v8288_v61, %s7691_s10  ;;  %v3297_v4 = vsel %vm242_vm1, %v3274_v0, 0 }
 0x148   : > { %7270 = vmatmul.mubr.msk.bf16.vlgmr.msra.gmra.mrb[92].mxu0 %vm238_vm2, %v7264_v42  ;;  %v3510_v56 = vpop.permute.xlu0 %3509 }
 0x149   : > { %3300 = vmatpush1.bf16.msra.mxu0 %v3279_v17  ;;  %3331 = vmatprep.mubr.bf16.mxu0 %v7669_v6  ;;  %v3512_v57 = vpop.permute.xlu1 %3511 }
 0x14a   : > { %7277 = vmatprep.subr.msk.bf16.mxu0 %vm242_vm1, %v3273_v55  ;;  %5319 = vrot.lane.b32.xlu0 %v8294_v47, %s7691_s10  ;;  %v3526_v7 = vsel %vm3525_vm15, %v3510_v56, %v3512_v57 }
 0x14b   : > { %5321 = vrot.lane.b32.xlu1 %v8307_v3, %s7691_s10  ;;  %v3537_v20 = vsel %vm242_vm1, %v3526_v7, 0 }
 0x14c   : > { %7517 = vmatmul.mubr.msk.bf16.vlgmr.msra.gmra.mrb[92].mxu1 %vm238_vm2, %v7264_v42  ;;  %v3514_v44 = vpop.permute.xlu0 %3513 }
 0x14d   : > { %3341 = vmatpush1.bf16.msra.mxu1 %v3285_v59  ;;  %3372 = vmatprep.mubr.bf16.mxu1 %v7669_v6  ;;  %v3516_v62 = vpop.permute.xlu1 %3515  ;;  %v3527_v52 = vsel %vm3525_vm15, %v3512_v57, %v3514_v44 }
 0x14e   : > { %7520 = vmatprep.subr.bf16.mxu1 %v7678_v35  ;;  %5323 = vrot.lane.b32.xlu0 %v8312_v9, %s7691_s10  ;;  %v3528_v12 = vsel %vm3525_vm15, %v3514_v44, %v3516_v62 }
 0x14f   : > { %5325 = vrot.lane.b32.xlu1 %v8323_v8, %s7691_s10  ;;  %v3543_v23 = vsel %vm242_vm1, %v3528_v12, 0 }
 0x150   : > { %7274 = vmatmul.mubr.msk.bf16.vlgmr.msra.gmra.mrb[96].mxu0 %vm238_vm2, %v7272_v60  ;;  %v3518_v1 = vpop.permute.xlu0 %3517 }
 0x151   : > { %3382 = vmatpush1.bf16.msra.mxu0 %v3291_v63  ;;  %3413 = vmatprep.mubr.bf16.mxu0 %v7669_v6  ;;  %v3520_v2 = vpop.permute.xlu1 %3519  ;;  %v3529_v10 = vsel %vm3525_vm15, %v3516_v62, %v3518_v1 }
 0x152   : > { %7281 = vmatprep.subr.msk.bf16.mxu0 %vm242_vm1, %v3527_v52  ;;  %5327 = vrot.lane.b32.xlu0 %v8331_v22, %s7691_s10  ;;  %v3530_v25 = vsel %vm3525_vm15, %v3518_v1, %v3520_v2 }
 0x153   : > { %5329 = vrot.lane.b32.xlu1 %v8343_v24, %s7691_s10  ;;  %v3549_v16 = vsel %vm242_vm1, %v3530_v25, 0 }
 0x154   : > { %7276 = vmatmul.mubr.msk.bf16.vlgmr.msra.gmra.mrb[96].mxu1 %vm238_vm2, %v7272_v60  ;;  %v3522_v15 = vpop.permute.xlu0 %3521 }
 0x155   : > { %7521 = vmatpush3.bf16.msra.mxu1 %v3297_v4  ;;  %7522 = vmatprep.mubr.msk.bf16.mxu1 %vm7679_vm3, %v7678_v35  ;;  %v3524_v19 = vpop.permute.xlu1 %3523  ;;  %v3531_v21 = vsel %vm3525_vm15, %v3520_v2, %v3522_v15 }
 0x156   : > { %7283 = vmatprep.subr.msk.bf16.mxu1 %vm242_vm1, %v3529_v10  ;;  %5573 = vrot.lane.b32.xlu0 %v8276_v58, %s7692_s15  ;;  %v3532_v29 = vsel %vm3525_vm15, %v3522_v15, %v3524_v19  ;;  %vm6879_vm15 = vcmask 277504  }
 0x157   : > { %5575 = vrot.lane.b32.xlu1 %v8288_v61, %s7692_s15  ;;  %v3555_v33 = vsel %vm242_vm1, %v3532_v29, 0 }
 0x158   : > { %7278 = vmatmul.mubr.msk.bf16.vlgmr.msra.gmra.mrb[100].mxu0 %vm238_vm2, %v7272_v60  ;;  %v3768_v11 = vpop.permute.xlu0 %3767 }
 0x159   : > { %3558 = vmatpush1.bf16.msra.mxu0 %v3537_v20  ;;  %3589 = vmatprep.mubr.bf16.mxu0 %v7669_v6  ;;  %v3770_v13 = vpop.permute.xlu1 %3769 }
 0x15a   : > { %7285 = vmatprep.subr.msk.bf16.mxu0 %vm242_vm1, %v3531_v21  ;;  %5577 = vrot.lane.b32.xlu0 %v8294_v47, %s7692_s15  ;;  %v3784_v34 = vsel %vm3783_vm0, %v3768_v11, %v3770_v13 }
 0x15b   : > { %5579 = vrot.lane.b32.xlu1 %v8307_v3, %s7692_s15  ;;  %v3795_v45 = vsel %vm242_vm1, %v3784_v34, 0 }
 0x15c   : > { %7523 = vmatmul.mubr.msk.bf16.vlgmr.msra.gmra.mrb[100].mxu1 %vm238_vm2, %v7272_v60  ;;  %v3772_v27 = vpop.permute.xlu0 %3771 }
 0x15d   : > { %3599 = vmatpush1.bf16.msra.mxu1 %v3543_v23  ;;  %3630 = vmatprep.mubr.bf16.mxu1 %v7669_v6  ;;  %v3774_v28 = vpop.permute.xlu1 %3773  ;;  %v3785_v31 = vsel %vm3783_vm0, %v3770_v13, %v3772_v27 }
 0x15e   : > { %7526 = vmatprep.subr.bf16.mxu1 %v7678_v35  ;;  %5581 = vrot.lane.b32.xlu0 %v8312_v9, %s7692_s15  ;;  %v3786_v49 = vsel %vm3783_vm0, %v3772_v27, %v3774_v28 }
 0x15f   : > { %5583 = vrot.lane.b32.xlu1 %v8323_v8, %s7692_s15  ;;  %v3801_v17 = vsel %vm242_vm1, %v3786_v49, 0 }
 0x160   : > { %7282 = vmatmul.mubr.msk.bf16.vlgmr.msra.gmra.mrb[104].mxu0 %vm238_vm2, %v7280_v14  ;;  %v3776_v32 = vpop.permute.xlu0 %3775 }
 0x161   : > { %3640 = vmatpush1.bf16.msra.mxu0 %v3549_v16  ;;  %3671 = vmatprep.mubr.bf16.mxu0 %v7669_v6  ;;  %v3778_v18 = vpop.permute.xlu1 %3777  ;;  %v3787_v38 = vsel %vm3783_vm0, %v3774_v28, %v3776_v32 }
 0x162   : > { %7289 = vmatprep.subr.msk.bf16.mxu0 %vm242_vm1, %v3785_v31  ;;  %5585 = vrot.lane.b32.xlu0 %v8331_v22, %s7692_s15  ;;  %v3788_v37 = vsel %vm3783_vm0, %v3776_v32, %v3778_v18 }
 0x163   : > { %v8481_v36 = vpop.f32.mrb[0].mxu0  ;;  %5587 = vrot.lane.b32.xlu1 %v8343_v24, %s7692_s15  ;;  %v3807_v60 = vsel %vm242_vm1, %v3788_v37, 0 }
 0x164   : > { %7284 = vmatmul.mubr.msk.bf16.vlgmr.msra.gmra.mrb[104].mxu1 %vm238_vm2, %v7280_v14  ;;  %v8487_v40 = vpop.f32.mrb[1].mxu0  ;;  %v3780_v41 = vpop.permute.xlu0 %3779 }
 0x165   : > { %7527 = vmatpush3.bf16.msra.mxu1 %v3555_v33  ;;  %v302_v42 = vpop.f32.mrb[2].mxu0  ;;  %7528 = vmatprep.mubr.msk.bf16.mxu1 %vm7679_vm3, %v7678_v35  ;;  %v3782_v43 = vpop.permute.xlu1 %3781  ;;  %v3789_v50 = vsel %vm3783_vm0, %v3778_v18, %v3780_v41 }
 0x166   : > { %v303_v46 = vpop.f32.mrb[3].mxu0  ;;  %7291 = vmatprep.subr.msk.bf16.mxu1 %vm242_vm1, %v3787_v38  ;;  %5831 = vrot.lane.b32.xlu0 %v8276_v58, %s7693_s19  ;;  %v3790_v0 = vsel %vm3783_vm0, %v3780_v41, %v3782_v43 }
 0x167   : > { %v8495_v48 = vpop.f32.mrb[0].mxu1  ;;  %5833 = vrot.lane.b32.xlu1 %v8288_v61, %s7693_s19  ;;  %v3813_v10 = vsel %vm242_vm1, %v3790_v0, 0 }
 0x168   : > { %v8501_v26 = vpop.f32.mrb[1].mxu1  ;;  %7286 = vmatmul.mubr.msk.bf16.vlgmr.msra.gmra.mrb[108].mxu0 %vm238_vm2, %v7280_v14  ;;  %v4026_v30 = vpop.permute.xlu0 %4025 }
 0x169   : > { %3816 = vmatpush1.bf16.msra.mxu0 %v3795_v45  ;;  %v343_v51 = vpop.f32.mrb[2].mxu1  ;;  %3847 = vmatprep.mubr.bf16.mxu0 %v7669_v6  ;;  %v4028_v53 = vpop.permute.xlu1 %4027 }
 0x16a   : > { %v344_v54 = vpop.f32.mrb[3].mxu1  ;;  %7293 = vmatprep.subr.msk.bf16.mxu0 %vm242_vm1, %v3789_v50  ;;  %5835 = vrot.lane.b32.xlu0 %v8294_v47, %s7693_s19  ;;  %v4042_v20 = vsel %vm4041_vm4, %v4026_v30, %v4028_v53 }
 0x16b   : > { %v8510_v55 = vpop.f32.mrb[4].mxu0  ;;  %5837 = vrot.lane.b32.xlu1 %v8307_v3, %s7693_s19 }
 0x16c   : > { %7529 = vmatmul.mubr.msk.bf16.vlgmr.msra.gmra.mrb[108].mxu1 %vm238_vm2, %v7280_v14  ;;  %v8515_v56 = vpop.f32.mrb[5].mxu0  ;;  %v4030_v57 = vpop.permute.xlu0 %4029  ;;  %v4053_v14 = vsel %vm242_vm1, %v4042_v20, 0 }
 0x16d   : > { %3857 = vmatpush1.bf16.msra.mxu1 %v3801_v17  ;;  %v384_v59 = vpop.f32.mrb[6].mxu0  ;;  %3888 = vmatprep.mubr.bf16.mxu1 %v7669_v6  ;;  %v4032_v44 = vpop.permute.xlu1 %4031  ;;  %v4043_v52 = vsel %vm4041_vm4, %v4028_v53, %v4030_v57 }
 0x16e   : > { %v385_v62 = vpop.f32.mrb[7].mxu0  ;;  %7532 = vmatprep.subr.bf16.mxu1 %v7678_v35  ;;  %5839 = vrot.lane.b32.xlu0 %v8312_v9, %s7693_s19  ;;  %v4044_v29 = vsel %vm4041_vm4, %v4030_v57, %v4032_v44 }
 0x16f   : > { %v8525_v63 = vpop.f32.mrb[4].mxu1  ;;  %5841 = vrot.lane.b32.xlu1 %v8323_v8, %s7693_s19 }
 0x170   : > { %v7452_v1 = vpop.f32.mrb[5].mxu1  ;;  %7290 = vmatmul.mubr.msk.bf16.vlgmr.msra.gmra.mrb[112].mxu0 %vm238_vm2, %v7288_v39  ;;  %v4034_v2 = vpop.permute.xlu0 %4033 }
 0x171   : > { %3898 = vmatpush1.bf16.msra.mxu0 %v3807_v60  ;;  %v424_v4 = vpop.f32.mrb[6].mxu1  ;;  %3929 = vmatprep.mubr.bf16.mxu0 %v7669_v6  ;;  %v4036_v7 = vpop.permute.xlu1 %4035  ;;  %v4045_v12 = vsel %vm4041_vm4, %v4032_v44, %v4034_v2 }
 0x172   : > { %v7453_v15 = vpop.f32.mrb[7].mxu1  ;;  %7297 = vmatprep.subr.msk.bf16.mxu0 %vm242_vm1, %v4043_v52  ;;  %5843 = vrot.lane.b32.xlu0 %v8331_v22, %s7693_s19  ;;  %v4046_v43 = vsel %vm4041_vm4, %v4034_v2, %v4036_v7 }
 0x173   : > { %v502_v19 = vpop.f32.mrb[8].mxu0  ;;  %5845 = vrot.lane.b32.xlu1 %v8343_v24, %s7693_s19  ;;  %v4065_v51 = vsel %vm242_vm1, %v4046_v43, 0 }
 0x174   : > { %v8542_v21 = vadd.f32 %v502_v19, %v8481_v36  ;;  %v504_v11 = vpop.f32.mrb[9].mxu0  ;;  %7292 = vmatmul.mubr.msk.bf16.vlgmr.msra.gmra.mrb[112].mxu1 %vm238_vm2, %v7288_v39  ;;  %v4038_v13 = vpop.permute.xlu0 %4037 }
 0x175   : > { %v8546_v23 = vadd.f32 %v504_v11, %v8487_v40  ;;  %7533 = vmatpush3.bf16.msra.mxu1 %v3813_v10  ;;  %v506_v25 = vpop.f32.mrb[10].mxu0  ;;  %7534 = vmatprep.mubr.msk.bf16.mxu1 %vm7679_vm3, %v7678_v35  ;;  %v4040_v27 = vpop.permute.xlu1 %4039  ;;  %v4047_v31 = vsel %vm4041_vm4, %v4036_v7, %v4038_v13  ;;  %v4059_v40 = vsel %vm242_vm1, %v4044_v29, 0 }
 0x176   : > { %v507_v28 = vpop.f32.mrb[11].mxu0  ;;  %7299 = vmatprep.subr.msk.bf16.mxu1 %vm242_vm1, %v4045_v12  ;;  %6089 = vrot.lane.b32.xlu0 %v8276_v58, %s7694_s22  ;;  %v4048_v17 = vsel %vm4041_vm4, %v4038_v13, %v4040_v27 }
 0x177   : > { %v543_v16 = vpop.f32.mrb[8].mxu1  ;;  %6091 = vrot.lane.b32.xlu1 %v8288_v61, %s7694_s22  ;;  %v4071_v44 = vsel %vm242_vm1, %v4048_v17, 0 }
 0x178   : > { %v8559_v32 = vadd.f32 %v543_v16, %v8495_v48  ;;  %v545_v18 = vpop.f32.mrb[9].mxu1  ;;  %7294 = vmatmul.mubr.msk.bf16.vlgmr.msra.gmra.mrb[116].mxu0 %vm238_vm2, %v7288_v39  ;;  %v4284_v33 = vpop.permute.xlu0 %4283 }
 0x179   : > { %v8563_v34 = vadd.f32 %v545_v18, %v8501_v26  ;;  %4074 = vmatpush1.bf16.msra.mxu0 %v4053_v14  ;;  %v547_v36 = vpop.f32.mrb[10].mxu1  ;;  %4105 = vmatprep.mubr.bf16.mxu0 %v7669_v6  ;;  %v4286_v38 = vpop.permute.xlu1 %4285  ;;  %v8583_v26 = vld [vmem:[%s9068_s0 + $0x3c] sm:$0xf] }
 0x17a   : > { %v548_v41 = vpop.f32.mrb[11].mxu1  ;;  %7301 = vmatprep.subr.msk.bf16.mxu0 %vm242_vm1, %v4047_v31  ;;  %6093 = vrot.lane.b32.xlu0 %v8294_v47, %s7694_s22 }
 0x17b   : > { %v584_v42 = vpop.f32.mrb[12].mxu0  ;;  %6095 = vrot.lane.b32.xlu1 %v8307_v3, %s7694_s22 }
 0x17c   : > { %v8574_v45 = vadd.f32 %v584_v42, %v8510_v55  ;;  %v586_v46 = vpop.f32.mrb[13].mxu0  ;;  %7535 = vmatmul.mubr.msk.bf16.vlgmr.msra.gmra.mrb[116].mxu1 %vm238_vm2, %v7288_v39  ;;  %v4288_v48 = vpop.permute.xlu0 %4287 }
 0x17d   : > { %v8578_v49 = vadd.f32 %v586_v46, %v8515_v56  ;;  %4115 = vmatpush1.bf16.msra.mxu1 %v4059_v40  ;;  %v588_v50 = vpop.f32.mrb[14].mxu0  ;;  %4146 = vmatprep.mubr.bf16.mxu1 %v7669_v6  ;;  %v4290_v30 = vpop.permute.xlu1 %4289  ;;  %v4301_v37 = vsel %vm4299_vm5, %v4286_v38, %v4288_v48 }
 0x17e   : > { %v589_v53 = vpop.f32.mrb[15].mxu0  ;;  %7538 = vmatprep.subr.bf16.mxu1 %v7678_v35  ;;  %6097 = vrot.lane.b32.xlu0 %v8312_v9, %s7694_s22  ;;  %v4302_v12 = vsel %vm4299_vm5, %v4288_v48, %v4290_v30 }
 0x17f   : > { %v625_v54 = vpop.f32.mrb[12].mxu1  ;;  %6099 = vrot.lane.b32.xlu1 %v8323_v8, %s7694_s22  ;;  %v4317_v28 = vsel %vm242_vm1, %v4302_v12, 0 }
 0x180   : > { %v8595_v55 = vadd.f32 %v625_v54, %v8525_v63  ;;  %v7458_v56 = vpop.f32.mrb[13].mxu1  ;;  %7298 = vmatmul.mubr.msk.bf16.vlgmr.msra.gmra.mrb[120].mxu0 %vm238_vm2, %v8583_v26  ;;  %v4292_v57 = vpop.permute.xlu0 %4291  ;;  %v4300_v63 = vsel %vm4299_vm5, %v4284_v33, %v4286_v38  ;;  %v8653_v38 = vld [vmem:[%s9068_s0 + $0x40] sm:$0xf] }
 0x181   : > { %4156 = vmatpush1.bf16.msra.mxu0 %v4065_v51  ;;  %v628_v59 = vpop.f32.mrb[14].mxu1  ;;  %4187 = vmatprep.mubr.bf16.mxu0 %v7669_v6  ;;  %v4294_v39 = vpop.permute.xlu1 %4293  ;;  %v4303_v0 = vsel %vm4299_vm5, %v4290_v30, %v4292_v57  ;;  %v4311_v15 = vsel %vm242_vm1, %v4300_v63, 0 }
 0x182   : > { %v7459_v60 = vpop.f32.mrb[15].mxu1  ;;  %7305 = vmatprep.subr.msk.bf16.mxu0 %vm242_vm1, %v4301_v37  ;;  %6101 = vrot.lane.b32.xlu0 %v8331_v22, %s7694_s22  ;;  %v4304_v31 = vsel %vm4299_vm5, %v4292_v57, %v4294_v39 }
 0x183   : > { %v753_v62 = vpop.f32.mrb[16].mxu0  ;;  %6103 = vrot.lane.b32.xlu1 %v8343_v24, %s7694_s22  ;;  %v4323_v41 = vsel %vm242_vm1, %v4304_v31, 0 }
 0x184   : > { %v8609_v52 = vadd.f32 %v753_v62, %v8542_v21  ;;  %v755_v1 = vpop.f32.mrb[17].mxu0  ;;  %7300 = vmatmul.mubr.msk.bf16.vlgmr.msra.gmra.mrb[120].mxu1 %vm238_vm2, %v8583_v26  ;;  %v4296_v2 = vpop.permute.xlu0 %4295 }
 0x185   : > { %v8614_v4 = vadd.f32 %v755_v1, %v8546_v23  ;;  %7539 = vmatpush3.bf16.msra.mxu1 %v4071_v44  ;;  %v757_v7 = vpop.f32.mrb[18].mxu0  ;;  %7540 = vmatprep.mubr.msk.bf16.mxu1 %vm7679_vm3, %v7678_v35  ;;  %v4298_v10 = vpop.permute.xlu1 %4297  ;;  %v4305_v21 = vsel %vm4299_vm5, %v4294_v39, %v4296_v2 }
 0x186   : > { %v758_v19 = vpop.f32.mrb[19].mxu0  ;;  %7307 = vmatprep.subr.msk.bf16.mxu1 %vm242_vm1, %v4303_v0  ;;  %6347 = vrot.lane.b32.xlu0 %v8276_v58, %s7695_s25 }
 0x187   : > { %v794_v20 = vpop.f32.mrb[16].mxu1  ;;  %6349 = vrot.lane.b32.xlu1 %v8288_v61, %s7695_s25 }
 0x188   : > { %v8627_v11 = vadd.f32 %v794_v20, %v8559_v32  ;;  %v796_v13 = vpop.f32.mrb[17].mxu1  ;;  %7302 = vmatmul.mubr.msk.bf16.vlgmr.msra.gmra.mrb[124].mxu0 %vm238_vm2, %v8583_v26  ;;  %v4542_v23 = vpop.permute.xlu0 %4541 }
 0x189   : > { %v8632_v25 = vadd.f32 %v796_v13, %v8563_v34  ;;  %4332 = vmatpush1.bf16.msra.mxu0 %v4311_v15  ;;  %v798_v27 = vpop.f32.mrb[18].mxu1  ;;  %4363 = vmatprep.mubr.bf16.mxu0 %v7669_v6  ;;  %v4544_v14 = vpop.permute.xlu1 %4543 }
 0x18a   : > { %v799_v16 = vpop.f32.mrb[19].mxu1  ;;  %7309 = vmatprep.subr.msk.bf16.mxu0 %vm242_vm1, %v4305_v21  ;;  %6351 = vrot.lane.b32.xlu0 %v8294_v47, %s7695_s25  ;;  %v4558_v17 = vsel %vm4557_vm6, %v4542_v23, %v4544_v14  ;;  %v8723_v23 = vld [vmem:[%s9068_s0 + $0x44] sm:$0xf] }
 0x18b   : > { %v835_v29 = vpop.f32.mrb[20].mxu0  ;;  %6353 = vrot.lane.b32.xlu1 %v8307_v3, %s7695_s25  ;;  %v4569_v60 = vsel %vm242_vm1, %v4558_v17, 0 }
 0x18c   : > { %v8643_v32 = vadd.f32 %v835_v29, %v8574_v45  ;;  %v837_v18 = vpop.f32.mrb[21].mxu0  ;;  %7541 = vmatmul.mubr.msk.bf16.vlgmr.msra.gmra.mrb[124].mxu1 %vm238_vm2, %v8583_v26  ;;  %v4546_v33 = vpop.permute.xlu0 %4545  ;;  %v4306_v45 = vsel %vm4299_vm5, %v4296_v2, %v4298_v10 }
 0x18d   : > { %v8648_v34 = vadd.f32 %v837_v18, %v8578_v49  ;;  %4373 = vmatpush1.bf16.msra.mxu1 %v4317_v28  ;;  %v839_v36 = vpop.f32.mrb[22].mxu0  ;;  %4404 = vmatprep.mubr.bf16.mxu1 %v7669_v6  ;;  %v4548_v40 = vpop.permute.xlu1 %4547  ;;  %v4559_v46 = vsel %vm4557_vm6, %v4544_v14, %v4546_v33  ;;  %v4329_v51 = vsel %vm242_vm1, %v4306_v45, 0  ;;  %v6823_v14 = vld [vmem:[%s7736_s17 + $0x2] sm:$0xff] }
 0x18e   : > { %v840_v42 = vpop.f32.mrb[23].mxu0  ;;  %7544 = vmatprep.subr.bf16.mxu1 %v7678_v35  ;;  %6355 = vrot.lane.b32.xlu0 %v8312_v9, %s7695_s25  ;;  %v4560_v0 = vsel %vm4557_vm6, %v4546_v33, %v4548_v40  ;;  %v6829_v36 = vcombine.high %v6823_v14, %v6823_v14 }
 0x18f   : > { %v876_v43 = vpop.f32.mrb[20].mxu1  ;;  %6357 = vrot.lane.b32.xlu1 %v8323_v8, %s7695_s25  ;;  %v4575_v15 = vsel %vm242_vm1, %v4560_v0, 0 }
 0x190   : > { %v8665_v48 = vadd.f32 %v876_v43, %v8595_v55  ;;  %v7464_v49 = vpop.f32.mrb[21].mxu1  ;;  %7306 = vmatmul.mubr.msk.bf16.vlgmr.msra.gmra.mrb[128].mxu0 %vm238_vm2, %v8653_v38  ;;  %v4550_v50 = vpop.permute.xlu0 %4549 }
 0x191   : > { %4414 = vmatpush1.bf16.msra.mxu0 %v4323_v41  ;;  %v879_v26 = vpop.f32.mrb[22].mxu1  ;;  %4445 = vmatprep.mubr.bf16.mxu0 %v7669_v6  ;;  %v4552_v30 = vpop.permute.xlu1 %4551  ;;  %v4561_v37 = vsel %vm4557_vm6, %v4548_v40, %v4550_v50 }
 0x192   : > { %v7465_v53 = vpop.f32.mrb[23].mxu1  ;;  %7313 = vmatprep.subr.msk.bf16.mxu0 %vm242_vm1, %v4559_v46  ;;  %6359 = vrot.lane.b32.xlu0 %v8331_v22, %s7695_s25  ;;  %v4562_v20 = vsel %vm4557_vm6, %v4550_v50, %v4552_v30 }
 0x193   : > { %v1011_v54 = vpop.f32.mrb[24].mxu0  ;;  %6361 = vrot.lane.b32.xlu1 %v8343_v24, %s7695_s25 }
 0x194   : > { %v8679_v55 = vadd.f32 %v1011_v54, %v8609_v52  ;;  %v1013_v56 = vpop.f32.mrb[25].mxu0  ;;  %7308 = vmatmul.mubr.msk.bf16.vlgmr.msra.gmra.mrb[128].mxu1 %vm238_vm2, %v8653_v38  ;;  %v4554_v57 = vpop.permute.xlu0 %4553 }
 0x195   : > { %v8684_v59 = vadd.f32 %v1013_v56, %v8614_v4  ;;  %7545 = vmatpush3.bf16.msra.mxu1 %v4329_v51  ;;  %v1015_v39 = vpop.f32.mrb[26].mxu0  ;;  %7546 = vmatprep.mubr.msk.bf16.mxu1 %vm7679_vm3, %v7678_v35  ;;  %v4556_v44 = vpop.permute.xlu1 %4555  ;;  %v4563_v52 = vsel %vm4557_vm6, %v4552_v30, %v4554_v57  ;;  %v6824_v51 = vld [vmem:[%s7736_s17 + $0xa] sm:$0xff] }
 0x196   : > { %v1016_v62 = vpop.f32.mrb[27].mxu0  ;;  %7315 = vmatprep.subr.msk.bf16.mxu1 %vm242_vm1, %v4561_v37  ;;  %6605 = vrot.lane.b32.xlu0 %v8276_v58, %s7696_s28  ;;  %v4564_v16 = vsel %vm4557_vm6, %v4554_v57, %v4556_v44 }
 0x197   : > { %v1052_v63 = vpop.f32.mrb[24].mxu1  ;;  %6607 = vrot.lane.b32.xlu1 %v8288_v61, %s7696_s28  ;;  %v6846_v62 = vcombine.high %v6824_v51, %v6824_v51 }
 0x198   : > { %v8697_v1 = vadd.f32 %v1052_v63, %v8627_v11  ;;  %v1054_v2 = vpop.f32.mrb[25].mxu1  ;;  %7310 = vmatmul.mubr.msk.bf16.vlgmr.msra.gmra.mrb[132].mxu0 %vm238_vm2, %v8653_v38  ;;  %v4800_v4 = vpop.permute.xlu0 %4799 }
 0x199   : > { %v8702_v7 = vadd.f32 %v1054_v2, %v8632_v25  ;;  %4590 = vmatpush1.bf16.msra.mxu0 %v4569_v60  ;;  %v1056_v58 = vpop.f32.mrb[26].mxu1  ;;  %4621 = vmatprep.mubr.bf16.mxu0 %v7669_v6  ;;  %v4802_v10 = vpop.permute.xlu1 %4801  ;;  %v4581_v25 = vsel %vm242_vm1, %v4562_v20, 0  ;;  %v6853_v60 = vrot.slane %v6824_v51, %v7729_v5  ;;  %v6860_v20 = vrot.slane %v6846_v62, %v7729_v5 }
 0x19a   : > { %v1057_v19 = vpop.f32.mrb[27].mxu1  ;;  %7317 = vmatprep.subr.msk.bf16.mxu0 %vm242_vm1, %v4563_v52  ;;  %6609 = vrot.lane.b32.xlu0 %v8294_v47, %s7696_s28  ;;  %v4816_v41 = vsel %vm4815_vm7, %v4800_v4, %v4802_v10 }
 0x19b   : > { %v1093_v61 = vpop.f32.mrb[28].mxu0  ;;  %6611 = vrot.lane.b32.xlu1 %v8307_v3, %s7696_s28  ;;  %v4827_v26 = vsel %vm242_vm1, %v4816_v41, 0  ;;  %v6861_v2 = vcombine.high %v6853_v60, %v6853_v60  ;;  %v7320_v19 = vld [vmem:[%s9068_s0 + $0x48] sm:$0xf] }
 0x19c   : > { %v8713_v12 = vadd.f32 %v1093_v61, %v8643_v32  ;;  %v1095_v21 = vpop.f32.mrb[29].mxu0  ;;  %7547 = vmatmul.mubr.msk.bf16.vlgmr.msra.gmra.mrb[132].mxu1 %vm238_vm2, %v8653_v38  ;;  %v4804_v11 = vpop.permute.xlu0 %4803  ;;  %v4587_v38 = vsel %vm242_vm1, %v4564_v16, 0 }
 0x19d   : > { %v8718_v13 = vadd.f32 %v1095_v21, %v8648_v34  ;;  %4631 = vmatpush1.bf16.msra.mxu1 %v4575_v15  ;;  %v1097_v47 = vpop.f32.mrb[30].mxu0  ;;  %4662 = vmatprep.mubr.bf16.mxu1 %v7669_v6  ;;  %v4806_v3 = vpop.permute.xlu1 %4805  ;;  %v4817_v29 = vsel %vm4815_vm7, %v4802_v10, %v4804_v11  ;;  %v6836_v34 = vrot.slane %v6823_v14, %v7729_v5 }
 0x19e   : > { %v1098_v27 = vpop.f32.mrb[31].mxu0  ;;  %7550 = vmatprep.subr.bf16.mxu1 %v7678_v35  ;;  %6613 = vrot.lane.b32.xlu0 %v8312_v9, %s7696_s28  ;;  %v4818_v54 = vsel %vm4815_vm7, %v4804_v11, %v4806_v3 }
 0x19f   : > { %v1134_v28 = vpop.f32.mrb[28].mxu1  ;;  %6615 = vrot.lane.b32.xlu1 %v8323_v8, %s7696_s28  ;;  %v6844_v43 = vcombine.high %v6836_v34, %v6836_v34  ;;  %v4833_v63 = vsel %vm242_vm1, %v4818_v54, 0 }
 0x1a0   : > { %v8736_v31 = vadd.f32 %v1134_v28, %v8665_v48  ;;  %v7470_v32 = vpop.f32.mrb[29].mxu1  ;;  %7314 = vmatmul.mubr.msk.bf16.vlgmr.msra.gmra.mrb[136].mxu0 %vm238_vm2, %v8723_v23  ;;  %v4808_v18 = vpop.permute.xlu0 %4807 }
 0x1a1   : > { %4672 = vmatpush1.bf16.msra.mxu0 %v4581_v25  ;;  %v1137_v33 = vpop.f32.mrb[30].mxu1  ;;  %4703 = vmatprep.mubr.bf16.mxu0 %v7669_v6  ;;  %v4810_v9 = vpop.permute.xlu1 %4809  ;;  %v4819_v42 = vsel %vm4815_vm7, %v4806_v3, %v4808_v18 }
 0x1a2   : > { %v7471_v40 = vpop.f32.mrb[31].mxu1  ;;  %7321 = vmatprep.subr.msk.bf16.mxu0 %vm242_vm1, %v4817_v29  ;;  %6617 = vrot.lane.b32.xlu0 %v8331_v22, %s7696_s28 }
 0x1a3   : > { %v1269_v8 = vpop.f32.mrb[32].mxu0  ;;  %6619 = vrot.lane.b32.xlu1 %v8343_v24, %s7696_s28  ;;  %v6843_v24 = vrot.slane %v6829_v36, %v7729_v5 }
 0x1a4   : > { %v8751_v45 = vadd.f32 %v1269_v8, %v8679_v55  ;;  %v1271_v46 = vpop.f32.mrb[33].mxu0  ;;  %7316 = vmatmul.mubr.msk.bf16.vlgmr.msra.gmra.mrb[136].mxu1 %vm238_vm2, %v8723_v23  ;;  %v4812_v48 = vpop.permute.xlu0 %4811 }
 0x1a5   : > { %v8756_v22 = vadd.f32 %v1271_v46, %v8684_v59  ;;  %7551 = vmatpush3.bf16.msra.mxu1 %v4587_v38  ;;  %v1273_v49 = vpop.f32.mrb[34].mxu0  ;;  %7552 = vmatprep.mubr.msk.bf16.mxu1 %vm7679_vm3, %v7678_v35  ;;  %v4814_v50 = vpop.permute.xlu1 %4813  ;;  %v4821_v17 = vsel %vm4815_vm7, %v4810_v9, %v4812_v48  ;;  %v6845_v37 = vcombine.high %v6843_v24, %v6843_v24 }
 0x1a6   : > { %v1274_v30 = vpop.f32.mrb[35].mxu0  ;;  %7323 = vmatprep.subr.msk.bf16.mxu1 %vm242_vm1, %v4819_v42  ;;  %6863 = vrot.lane.b32.xlu0 %v6836_v34, %s7697_s4 }
 0x1a7   : > { %v1310_v53 = vpop.f32.mrb[32].mxu1  ;;  %6865 = vrot.lane.b32.xlu1 %v6844_v43, %s7697_s4 }
 0x1a8   : > { %v8769_v55 = vadd.f32 %v1310_v53, %v8697_v1  ;;  %v1312_v56 = vpop.f32.mrb[33].mxu1  ;;  %7318 = vmatmul.mubr.msk.bf16.vlgmr.msra.gmra.mrb[140].mxu0 %vm238_vm2, %v8723_v23  ;;  %v5058_v57 = vpop.permute.xlu0 %5057  ;;  %v4820_v1 = vsel %vm4815_vm7, %v4808_v18, %v4810_v9 }
 0x1a9   : > { %v8774_v59 = vadd.f32 %v1312_v56, %v8702_v7  ;;  %4848 = vmatpush1.bf16.msra.mxu0 %v4827_v26  ;;  %v1314_v39 = vpop.f32.mrb[34].mxu1  ;;  %4879 = vmatprep.mubr.bf16.mxu0 %v7669_v6  ;;  %v5060_v44 = vpop.permute.xlu1 %5059  ;;  %v7328_v56 = vld [vmem:[%s9068_s0 + $0x4c] sm:$0xf] }
 0x1aa   : > { %v1315_v0 = vpop.f32.mrb[35].mxu1  ;;  %7325 = vmatprep.subr.msk.bf16.mxu0 %vm242_vm1, %v4821_v17  ;;  %6867 = vrot.lane.b32.xlu0 %v6843_v24, %s7697_s4 }
 0x1ab   : > { %v1351_v52 = vpop.f32.mrb[36].mxu0  ;;  %6869 = vrot.lane.b32.xlu1 %v6845_v37, %s7697_s4 }
 0x1ac   : > { %v8784_v4 = vadd.f32 %v1351_v52, %v8713_v12  ;;  %v1353_v7 = vpop.f32.mrb[37].mxu0  ;;  %7553 = vmatmul.mubr.msk.bf16.vlgmr.msra.gmra.mrb[140].mxu1 %vm238_vm2, %v8723_v23  ;;  %v5062_v58 = vpop.permute.xlu0 %5061  ;;  %v4839_v12 = vsel %vm242_vm1, %v4820_v1, 0  ;;  %v6862_v23 = vcombine.high %v6860_v20, %v6860_v20 }
 0x1ad   : > { %v8789_v10 = vadd.f32 %v1353_v7, %v8718_v13  ;;  %4889 = vmatpush1.bf16.msra.mxu1 %v4833_v63  ;;  %v1355_v15 = vpop.f32.mrb[38].mxu0  ;;  %4920 = vmatprep.mubr.bf16.mxu1 %v7669_v6  ;;  %v5064_v61 = vpop.permute.xlu1 %5063  ;;  %v4822_v13 = vsel %vm4815_vm7, %v4812_v48, %v4814_v50  ;;  %v5075_v47 = vsel %vm5073_vm8, %v5060_v44, %v5062_v58 }
 0x1ae   : > { %v1356_v21 = vpop.f32.mrb[39].mxu0  ;;  %7556 = vmatprep.subr.bf16.mxu1 %v7678_v35  ;;  %6871 = vrot.lane.b32.xlu0 %v6853_v60, %s7697_s4  ;;  %v4845_v28 = vsel %vm242_vm1, %v4822_v13, 0  ;;  %v5076_v42 = vsel %vm5073_vm8, %v5062_v58, %v5064_v61 }
 0x1af   : > { %v1392_v11 = vpop.f32.mrb[36].mxu1  ;;  %6873 = vrot.lane.b32.xlu1 %v6861_v2, %s7697_s4  ;;  %v5091_v24 = vsel %vm242_vm1, %v5076_v42, 0 }
 0x1b0   : > { %v8803_v3 = vadd.f32 %v1392_v11, %v8736_v31  ;;  %v7476_v25 = vpop.f32.mrb[37].mxu1  ;;  %7322 = vmatmul.mubr.msk.bf16.vlgmr.msra.gmra.mrb[144].mxu0 %vm238_vm2, %v7320_v19  ;;  %v5066_v5 = vpop.permute.xlu0 %5065  ;;  %v5074_v31 = vsel %vm5073_vm8, %v5058_v57, %v5060_v44 }
 0x1b1   : > { %4930 = vmatpush1.bf16.msra.mxu0 %v4839_v12  ;;  %v1395_v27 = vpop.f32.mrb[38].mxu1  ;;  %4961 = vmatprep.mubr.bf16.mxu0 %v7669_v6  ;;  %v5068_v14 = vpop.permute.xlu1 %5067  ;;  %v5077_v32 = vsel %vm5073_vm8, %v5064_v61, %v5066_v5  ;;  %v5085_v40 = vsel %vm242_vm1, %v5074_v31, 0 }
 0x1b2   : > { %v7477_v16 = vpop.f32.mrb[39].mxu1  ;;  %7329 = vmatprep.subr.msk.bf16.mxu0 %vm242_vm1, %v5075_v47  ;;  %6875 = vrot.lane.b32.xlu0 %v6860_v20, %s7697_s4  ;;  %v5078_v51 = vsel %vm5073_vm8, %v5066_v5, %v5068_v14 }
 0x1b3   : > { %v1527_v29 = vpop.f32.mrb[40].mxu0  ;;  %6877 = vrot.lane.b32.xlu1 %v6862_v23, %s7697_s4 }
 0x1b4   : > { %v1656_v18 = vadd.f32 %v1527_v29, %v8751_v45  ;;  %v1529_v33 = vpop.f32.mrb[41].mxu0  ;;  %7324 = vmatmul.mubr.msk.bf16.vlgmr.msra.gmra.mrb[144].mxu1 %vm238_vm2, %v7320_v19  ;;  %v5070_v9 = vpop.permute.xlu0 %5069 }
 0x1b5   : > { %v1657_v34 = vadd.f32 %v1529_v33, %v8756_v22  ;;  %7557 = vmatpush3.bf16.msra.mxu1 %v4845_v28  ;;  %v1531_v36 = vpop.f32.mrb[42].mxu0  ;;  %7558 = vmatprep.mubr.msk.bf16.mxu1 %vm7679_vm3, %v7678_v35  ;;  %v5072_v38 = vpop.permute.xlu1 %5071  ;;  %v5079_v43 = vsel %vm5073_vm8, %v5068_v14, %v5070_v9 }
 0x1b6   : > { %v1532_v8 = vpop.f32.mrb[43].mxu0  ;;  %7331 = vmatprep.subr.msk.bf16.mxu1 %vm242_vm1, %v5077_v32  ;;  %v5080_v60 = vsel %vm5073_vm8, %v5070_v9, %v5072_v38 }
 0x1b7   : > { %v1568_v41 = vpop.f32.mrb[40].mxu1  ;;  %v7336_v8 = vld [vmem:[%s9068_s0 + $0x50] sm:$0xf] }
 0x1b8   : > { %v1658_v45 = vadd.f32 %v1568_v41, %v8769_v55  ;;  %v1570_v46 = vpop.f32.mrb[41].mxu1  ;;  %7326 = vmatmul.mubr.msk.bf16.vlgmr.msra.gmra.mrb[148].mxu0 %vm238_vm2, %v7320_v19  ;;  %v5316_v48 = vpop.permute.xlu0 %5315 }
 0x1b9   : > { %v1659_v22 = vadd.f32 %v1570_v46, %v8774_v59  ;;  %5106 = vmatpush1.bf16.msra.mxu0 %v5085_v40  ;;  %v1572_v49 = vpop.f32.mrb[42].mxu1  ;;  %5137 = vmatprep.mubr.bf16.mxu0 %v7669_v6  ;;  %v5318_v50 = vpop.permute.xlu1 %5317  ;;  %v5097_v59 = vsel %vm242_vm1, %v5078_v51, 0 }
 0x1ba   : > { %v1573_v26 = vpop.f32.mrb[43].mxu1  ;;  %7333 = vmatprep.subr.msk.bf16.mxu0 %vm242_vm1, %v5079_v43 }
 0x1bb   : > { %v1609_v30 = vpop.f32.mrb[44].mxu0 }
 0x1bc   : > { %v1660_v53 = vadd.f32 %v1609_v30, %v8784_v4  ;;  %v1611_v54 = vpop.f32.mrb[45].mxu0  ;;  %7559 = vmatmul.mubr.msk.bf16.vlgmr.msra.gmra.mrb[148].mxu1 %vm238_vm2, %v7320_v19  ;;  %v5320_v17 = vpop.permute.xlu0 %5319  ;;  %v5103_v4 = vsel %vm242_vm1, %v5080_v60, 0 }
 0x1bd   : > { %v1661_v37 = vadd.f32 %v1611_v54, %v8789_v10  ;;  %5147 = vmatpush1.bf16.msra.mxu1 %v5091_v24  ;;  %v1613_v55 = vpop.f32.mrb[46].mxu0  ;;  %5178 = vmatprep.mubr.bf16.mxu1 %v7669_v6  ;;  %v5322_v57 = vpop.permute.xlu1 %5321  ;;  %v5333_v62 = vsel %vm5331_vm9, %v5318_v50, %v5320_v17  ;;  %v5332_v10 = vsel %vm5331_vm9, %v5316_v48, %v5318_v50 }
 0x1be   : > { %v1614_v39 = vpop.f32.mrb[47].mxu0  ;;  %7562 = vmatprep.subr.bf16.mxu1 %v7678_v35  ;;  %v5343_v13 = vsel %vm242_vm1, %v5332_v10, 0 }
 0x1bf   : > { %v1650_v44 = vpop.f32.mrb[44].mxu1 }
 0x1c0   : > { %v1662_v63 = vadd.f32 %v1650_v44, %v8803_v3  ;;  %v7482_v0 = vpop.f32.mrb[45].mxu1  ;;  %7330 = vmatmul.mubr.msk.bf16.vlgmr.msra.gmra.mrb[152].mxu0 %vm238_vm2, %v7328_v56  ;;  %v5324_v52 = vpop.permute.xlu0 %5323  ;;  %v5334_v3 = vsel %vm5331_vm9, %v5320_v17, %v5322_v57 }
 0x1c1   : > { %5188 = vmatpush1.bf16.msra.mxu0 %v5097_v59  ;;  %v1653_v1 = vpop.f32.mrb[46].mxu1  ;;  %5219 = vmatprep.mubr.bf16.mxu0 %v7669_v6  ;;  %v5326_v2 = vpop.permute.xlu1 %5325  ;;  %v5335_v15 = vsel %vm5331_vm9, %v5322_v57, %v5324_v52  ;;  %v5349_v31 = vsel %vm242_vm1, %v5334_v3, 0 }
 0x1c2   : > { %v7483_v7 = vpop.f32.mrb[47].mxu1  ;;  %7337 = vmatprep.subr.msk.bf16.mxu0 %vm242_vm1, %v5333_v62  ;;  %v5336_v33 = vsel %vm5331_vm9, %v5324_v52, %v5326_v2 }
 0x1c3   : > { %v1785_v58 = vpop.f32.mrb[48].mxu0  ;;  %v5355_v42 = vsel %vm242_vm1, %v5336_v33, 0 }
 0x1c4   : > { %v1914_v19 = vadd.f32 %v1785_v58, %v1656_v18  ;;  %v1787_v61 = vpop.f32.mrb[49].mxu0  ;;  %7332 = vmatmul.mubr.msk.bf16.vlgmr.msra.gmra.mrb[152].mxu1 %vm238_vm2, %v7328_v56  ;;  %v5328_v20 = vpop.permute.xlu0 %5327 }
 0x1c5   : > { %v1915_v12 = vadd.f32 %v1787_v61, %v1657_v34  ;;  %7563 = vmatpush3.bf16.msra.mxu1 %v5103_v4  ;;  %v1789_v21 = vpop.f32.mrb[50].mxu0  ;;  %7564 = vmatprep.mubr.msk.bf16.mxu1 %vm7679_vm3, %v7678_v35  ;;  %v5330_v11 = vpop.permute.xlu1 %5329  ;;  %v5337_v25 = vsel %vm5331_vm9, %v5326_v2, %v5328_v20 }
 0x1c6   : > { %v1790_v47 = vpop.f32.mrb[51].mxu0  ;;  %7339 = vmatprep.subr.msk.bf16.mxu1 %vm242_vm1, %v5335_v15  ;;  %v5338_v46 = vsel %vm5331_vm9, %v5328_v20, %v5330_v11 }
 0x1c7   : > { %v1826_v23 = vpop.f32.mrb[48].mxu1  ;;  %v5361_v30 = vsel %vm242_vm1, %v5338_v46, 0  ;;  %v7344_v47 = vld [vmem:[%s9068_s0 + $0x54] sm:$0xf] }
 0x1c8   : > { %v1916_v5 = vadd.f32 %v1826_v23, %v1658_v45  ;;  %v1828_v27 = vpop.f32.mrb[49].mxu1  ;;  %7334 = vmatmul.mubr.msk.bf16.vlgmr.msra.gmra.mrb[156].mxu0 %vm238_vm2, %v7328_v56  ;;  %v5574_v14 = vpop.permute.xlu0 %5573 }
 0x1c9   : > { %v1917_v28 = vadd.f32 %v1828_v27, %v1659_v22  ;;  %5364 = vmatpush1.bf16.msra.mxu0 %v5343_v13  ;;  %v1830_v16 = vpop.f32.mrb[50].mxu1  ;;  %5395 = vmatprep.mubr.bf16.mxu0 %v7669_v6  ;;  %v5576_v29 = vpop.permute.xlu1 %5575 }
 0x1ca   : > { %v1831_v32 = vpop.f32.mrb[51].mxu1  ;;  %7341 = vmatprep.subr.msk.bf16.mxu0 %vm242_vm1, %v5337_v25  ;;  %v5590_v54 = vsel %vm5589_vm10, %v5574_v14, %v5576_v29 }
 0x1cb   : > { %v1867_v18 = vpop.f32.mrb[52].mxu0  ;;  %v5601_v44 = vsel %vm242_vm1, %v5590_v54, 0 }
 0x1cc   : > { %v1918_v9 = vadd.f32 %v1867_v18, %v1660_v53  ;;  %v1869_v34 = vpop.f32.mrb[53].mxu0  ;;  %7565 = vmatmul.mubr.msk.bf16.vlgmr.msra.gmra.mrb[156].mxu1 %vm238_vm2, %v7328_v56  ;;  %v5578_v36 = vpop.permute.xlu0 %5577 }
 0x1cd   : > { %v1919_v38 = vadd.f32 %v1869_v34, %v1661_v37  ;;  %5405 = vmatpush1.bf16.msra.mxu1 %v5349_v31  ;;  %v1871_v40 = vpop.f32.mrb[54].mxu0  ;;  %5436 = vmatprep.mubr.bf16.mxu1 %v7669_v6  ;;  %v5580_v41 = vpop.permute.xlu1 %5579  ;;  %v5591_v48 = vsel %vm5589_vm10, %v5576_v29, %v5578_v36 }
 0x1ce   : > { %v1872_v43 = vpop.f32.mrb[55].mxu0  ;;  %7568 = vmatprep.subr.bf16.mxu1 %v7678_v35 }
 0x1cf   : > { %v1908_v45 = vpop.f32.mrb[52].mxu1 }
 0x1d0   : > { %v1920_v22 = vadd.f32 %v1908_v45, %v1662_v63  ;;  %v7488_v49 = vpop.f32.mrb[53].mxu1  ;;  %7338 = vmatmul.mubr.msk.bf16.vlgmr.msra.gmra.mrb[160].mxu0 %vm238_vm2, %v7336_v8  ;;  %v5582_v50 = vpop.permute.xlu0 %5581  ;;  %v5592_v63 = vsel %vm5589_vm10, %v5578_v36, %v5580_v41 }
 0x1d1   : > { %5446 = vmatpush1.bf16.msra.mxu0 %v5355_v42  ;;  %v1911_v24 = vpop.f32.mrb[54].mxu1  ;;  %5477 = vmatprep.mubr.bf16.mxu0 %v7669_v6  ;;  %v5584_v26 = vpop.permute.xlu1 %5583  ;;  %v5593_v17 = vsel %vm5589_vm10, %v5580_v41, %v5582_v50  ;;  %v5607_v10 = vsel %vm242_vm1, %v5592_v63, 0 }
 0x1d2   : > { %v7489_v51 = vpop.f32.mrb[55].mxu1  ;;  %7345 = vmatprep.subr.msk.bf16.mxu0 %vm242_vm1, %v5591_v48  ;;  %v5594_v61 = vsel %vm5589_vm10, %v5582_v50, %v5584_v26 }
 0x1d3   : > { %v2043_v53 = vpop.f32.mrb[56].mxu0  ;;  %v5613_v3 = vsel %vm242_vm1, %v5594_v61, 0 }
 0x1d4   : > { %v2172_v37 = vadd.f32 %v2043_v53, %v1914_v19  ;;  %v2045_v55 = vpop.f32.mrb[57].mxu0  ;;  %7340 = vmatmul.mubr.msk.bf16.vlgmr.msra.gmra.mrb[160].mxu1 %vm238_vm2, %v7336_v8  ;;  %v5586_v56 = vpop.permute.xlu0 %5585 }
 0x1d5   : > { %v2173_v57 = vadd.f32 %v2045_v55, %v1915_v12  ;;  %7569 = vmatpush3.bf16.msra.mxu1 %v5361_v30  ;;  %v2047_v59 = vpop.f32.mrb[58].mxu0  ;;  %7570 = vmatprep.mubr.msk.bf16.mxu1 %vm7679_vm3, %v7678_v35  ;;  %v5588_v39 = vpop.permute.xlu1 %5587  ;;  %v5595_v0 = vsel %vm5589_vm10, %v5584_v26, %v5586_v56 }
 0x1d6   : > { %v2048_v60 = vpop.f32.mrb[59].mxu0  ;;  %7347 = vmatprep.subr.msk.bf16.mxu1 %vm242_vm1, %v5593_v17  ;;  %v5596_v27 = vsel %vm5589_vm10, %v5586_v56, %v5588_v39 }
 0x1d7   : > { %v2084_v62 = vpop.f32.mrb[56].mxu1  ;;  %v5619_v18 = vsel %vm242_vm1, %v5596_v27, 0  ;;  %v7352_v60 = vld [vmem:[%s9068_s0 + $0x58] sm:$0xf] }
 0x1d8   : > { %v2174_v52 = vadd.f32 %v2084_v62, %v1916_v5  ;;  %v2086_v1 = vpop.f32.mrb[57].mxu1  ;;  %7342 = vmatmul.mubr.msk.bf16.vlgmr.msra.gmra.mrb[164].mxu0 %vm238_vm2, %v7336_v8  ;;  %v5832_v2 = vpop.permute.xlu0 %5831 }
 0x1d9   : > { %v2175_v4 = vadd.f32 %v2086_v1, %v1917_v28  ;;  %5622 = vmatpush1.bf16.msra.mxu0 %v5601_v44  ;;  %v2088_v7 = vpop.f32.mrb[58].mxu1  ;;  %5653 = vmatprep.mubr.bf16.mxu0 %v7669_v6  ;;  %v5834_v58 = vpop.permute.xlu1 %5833 }
 0x1da   : > { %v2089_v15 = vpop.f32.mrb[59].mxu1  ;;  %7349 = vmatprep.subr.msk.bf16.mxu0 %vm242_vm1, %v5595_v0  ;;  %v5848_v34 = vsel %vm5847_vm11, %v5832_v2, %v5834_v58 }
 0x1db   : > { %v2125_v19 = vpop.f32.mrb[60].mxu0  ;;  %v5859_v45 = vsel %vm242_vm1, %v5848_v34, 0 }
 0x1dc   : > { %v2176_v20 = vadd.f32 %v2125_v19, %v1918_v9  ;;  %v2127_v12 = vpop.f32.mrb[61].mxu0  ;;  %7571 = vmatmul.mubr.msk.bf16.vlgmr.msra.gmra.mrb[164].mxu1 %vm238_vm2, %v7336_v8  ;;  %v5836_v21 = vpop.permute.xlu0 %5835 }
 0x1dd   : > { %v2177_v11 = vadd.f32 %v2127_v12, %v1919_v38  ;;  %5663 = vmatpush1.bf16.msra.mxu1 %v5607_v10  ;;  %v2129_v13 = vpop.f32.mrb[62].mxu0  ;;  %5694 = vmatprep.mubr.bf16.mxu1 %v7669_v6  ;;  %v5838_v23 = vpop.permute.xlu1 %5837  ;;  %v5849_v14 = vsel %vm5847_vm11, %v5834_v58, %v5836_v21 }
 0x1de   : > { %v2130_v25 = vpop.f32.mrb[63].mxu0  ;;  %7574 = vmatprep.subr.bf16.mxu1 %v7678_v35 }
 0x1df   : > { %v2166_v5 = vpop.f32.mrb[60].mxu1 }
 0x1e0   : > { %v2178_v28 = vadd.f32 %v2166_v5, %v1920_v22  ;;  %v7494_v16 = vpop.f32.mrb[61].mxu1  ;;  %7346 = vmatmul.mubr.msk.bf16.vlgmr.msra.gmra.mrb[168].mxu0 %vm238_vm2, %v7344_v47  ;;  %v5840_v29 = vpop.permute.xlu0 %5839  ;;  %v5850_v22 = vsel %vm5847_vm11, %v5836_v21, %v5838_v23 }
 0x1e1   : > { %5704 = vmatpush1.bf16.msra.mxu0 %v5613_v3  ;;  %v2169_v31 = vpop.f32.mrb[62].mxu1  ;;  %5735 = vmatprep.mubr.bf16.mxu0 %v7669_v6  ;;  %v5842_v32 = vpop.permute.xlu1 %5841  ;;  %v5851_v36 = vsel %vm5847_vm11, %v5838_v23, %v5840_v29  ;;  %v5865_v54 = vsel %vm242_vm1, %v5850_v22, 0 }
 0x1e2   : > { %v7495_v33 = vpop.f32.mrb[63].mxu1  ;;  %7353 = vmatprep.subr.msk.bf16.mxu0 %vm242_vm1, %v5849_v14  ;;  %v5852_v55 = vsel %vm5847_vm11, %v5840_v29, %v5842_v32 }
 0x1e3   : > { %v2301_v9 = vpop.f32.mrb[64].mxu0  ;;  %v5871_v63 = vsel %vm242_vm1, %v5852_v55, 0 }
 0x1e4   : > { %v2430_v38 = vadd.f32 %v2301_v9, %v2172_v37  ;;  %v2303_v40 = vpop.f32.mrb[65].mxu0  ;;  %7348 = vmatmul.mubr.msk.bf16.vlgmr.msra.gmra.mrb[168].mxu1 %vm238_vm2, %v7344_v47  ;;  %v5844_v8 = vpop.permute.xlu0 %5843 }
 0x1e5   : > { %v2431_v41 = vadd.f32 %v2303_v40, %v2173_v57  ;;  %7575 = vmatpush3.bf16.msra.mxu1 %v5619_v18  ;;  %v2305_v42 = vpop.f32.mrb[66].mxu0  ;;  %7576 = vmatprep.mubr.msk.bf16.mxu1 %vm7679_vm3, %v7678_v35  ;;  %v5846_v43 = vpop.permute.xlu1 %5845  ;;  %v5853_v49 = vsel %vm5847_vm11, %v5842_v32, %v5844_v8 }
 0x1e6   : > { %v2306_v46 = vpop.f32.mrb[67].mxu0  ;;  %7355 = vmatprep.subr.msk.bf16.mxu1 %vm242_vm1, %v5851_v36  ;;  %v5854_v1 = vsel %vm5847_vm11, %v5844_v8, %v5846_v43 }
 0x1e7   : > { %v2342_v48 = vpop.f32.mrb[64].mxu1  ;;  %v5877_v19 = vsel %vm242_vm1, %v5854_v1, 0  ;;  %v7360_v46 = vld [vmem:[%s9068_s0 + $0x5c] sm:$0xf] }
 0x1e8   : > { %v2432_v50 = vadd.f32 %v2342_v48, %v2174_v52  ;;  %v2344_v24 = vpop.f32.mrb[65].mxu1  ;;  %7350 = vmatmul.mubr.msk.bf16.vlgmr.msra.gmra.mrb[172].mxu0 %vm238_vm2, %v7344_v47  ;;  %v6090_v26 = vpop.permute.xlu0 %6089 }
 0x1e9   : > { %v2433_v30 = vadd.f32 %v2344_v24, %v2175_v4  ;;  %5880 = vmatpush1.bf16.msra.mxu0 %v5859_v45  ;;  %v2346_v51 = vpop.f32.mrb[66].mxu1  ;;  %5911 = vmatprep.mubr.bf16.mxu0 %v7669_v6  ;;  %v6092_v53 = vpop.permute.xlu1 %6091 }
 0x1ea   : > { %v2347_v17 = vpop.f32.mrb[67].mxu1  ;;  %7357 = vmatprep.subr.msk.bf16.mxu0 %vm242_vm1, %v5853_v49  ;;  %v6106_v12 = vsel %vm6105_vm12, %v6090_v26, %v6092_v53 }
 0x1eb   : > { %v2383_v37 = vpop.f32.mrb[68].mxu0  ;;  %v6117_v5 = vsel %vm242_vm1, %v6106_v12, 0 }
 0x1ec   : > { %v2434_v56 = vadd.f32 %v2383_v37, %v2176_v20  ;;  %v2385_v57 = vpop.f32.mrb[69].mxu0  ;;  %7577 = vmatmul.mubr.msk.bf16.vlgmr.msra.gmra.mrb[172].mxu1 %vm238_vm2, %v7344_v47  ;;  %v6094_v59 = vpop.permute.xlu0 %6093 }
 0x1ed   : > { %v2435_v39 = vadd.f32 %v2385_v57, %v2177_v11  ;;  %5921 = vmatpush1.bf16.msra.mxu1 %v5865_v54  ;;  %v2387_v44 = vpop.f32.mrb[70].mxu0  ;;  %5952 = vmatprep.mubr.bf16.mxu1 %v7669_v6  ;;  %v6096_v62 = vpop.permute.xlu1 %6095  ;;  %v6107_v2 = vsel %vm6105_vm12, %v6092_v53, %v6094_v59 }
 0x1ee   : > { %v2388_v0 = vpop.f32.mrb[71].mxu0  ;;  %7580 = vmatprep.subr.bf16.mxu1 %v7678_v35 }
 0x1ef   : > { %v2424_v52 = vpop.f32.mrb[68].mxu1 }
 0x1f0   : > { %v2436_v4 = vadd.f32 %v2424_v52, %v2178_v28  ;;  %v7500_v7 = vpop.f32.mrb[69].mxu1  ;;  %7354 = vmatmul.mubr.msk.bf16.vlgmr.msra.gmra.mrb[176].mxu0 %vm238_vm2, %v7352_v60  ;;  %v6098_v58 = vpop.permute.xlu0 %6097  ;;  %v6108_v28 = vsel %vm6105_vm12, %v6094_v59, %v6096_v62  ;;  %v7081_v52 = vld [vmem:[%s9069_s1] sm:$0xff] }
 0x1f1   : > { %5962 = vmatpush1.bf16.msra.mxu0 %v5871_v63  ;;  %v2427_v10 = vpop.f32.mrb[70].mxu1  ;;  %5993 = vmatprep.mubr.bf16.mxu0 %v7669_v6  ;;  %v6100_v15 = vpop.permute.xlu1 %6099  ;;  %v6109_v21 = vsel %vm6105_vm12, %v6096_v62, %v6098_v58  ;;  %v6123_v34 = vsel %vm242_vm1, %v6108_v28, 0 }
 0x1f2   : > { %v7501_v61 = vpop.f32.mrb[71].mxu1  ;;  %7361 = vmatprep.subr.msk.bf16.mxu0 %vm242_vm1, %v6107_v2  ;;  %v6110_v40 = vsel %vm6105_vm12, %v6098_v58, %v6100_v15  ;;  %7084 = vperm.xlu0 %7650, %v7081_v52  }
 0x1f3   : > { %v2559_v20 = vpop.f32.mrb[72].mxu0  ;;  %v6129_v22 = vsel %vm242_vm1, %v6110_v40, 0 }
 0x1f4   : > { %v2688_v11 = vadd.f32 %v2559_v20, %v2430_v38  ;;  %v2561_v13 = vpop.f32.mrb[73].mxu0  ;;  %7356 = vmatmul.mubr.msk.bf16.vlgmr.msra.gmra.mrb[176].mxu1 %vm238_vm2, %v7352_v60  ;;  %v6102_v47 = vpop.permute.xlu0 %6101 }
 0x1f5   : > { %v2689_v23 = vadd.f32 %v2561_v13, %v2431_v41  ;;  %7581 = vmatpush3.bf16.msra.mxu1 %v5877_v19  ;;  %v2563_v3 = vpop.f32.mrb[74].mxu0  ;;  %7582 = vmatprep.mubr.msk.bf16.mxu1 %vm7679_vm3, %v7678_v35  ;;  %v6104_v25 = vpop.permute.xlu1 %6103  ;;  %v6111_v16 = vsel %vm6105_vm12, %v6100_v15, %v6102_v47 }
 0x1f6   : > { %v2564_v27 = vpop.f32.mrb[75].mxu0  ;;  %7363 = vmatprep.subr.msk.bf16.mxu1 %vm242_vm1, %v6109_v21  ;;  %v6112_v24 = vsel %vm6105_vm12, %v6102_v47, %v6104_v25 }
 0x1f7   : > { %v2600_v14 = vpop.f32.mrb[72].mxu1  ;;  %v6135_v37 = vsel %vm242_vm1, %v6112_v24, 0 }
 0x1f8   : > { %v8935_v29 = vadd.f32 %v2600_v14, %v2432_v50  ;;  %v2602_v31 = vpop.f32.mrb[73].mxu1  ;;  %7358 = vmatmul.mubr.msk.bf16.vlgmr.msra.gmra.mrb[180].mxu0 %vm238_vm2, %v7352_v60  ;;  %v6348_v32 = vpop.permute.xlu0 %6347  ;;  %v7368_v14 = vld [vmem:[%s9068_s0 + $0x60] sm:$0xf] }
 0x1f9   : > { %v2691_v18 = vadd.f32 %v2602_v31, %v2433_v30  ;;  %6138 = vmatpush1.bf16.msra.mxu0 %v6117_v5  ;;  %v2604_v33 = vpop.f32.mrb[74].mxu1  ;;  %6169 = vmatprep.mubr.bf16.mxu0 %v7669_v6  ;;  %v6350_v9 = vpop.permute.xlu1 %6349 }
 0x1fa   : > { %v2605_v36 = vpop.f32.mrb[75].mxu1  ;;  %7365 = vmatprep.subr.msk.bf16.mxu0 %vm242_vm1, %v6111_v16  ;;  %v6364_v57 = vsel %vm6363_vm13, %v6348_v32, %v6350_v9 }
 0x1fb   : > { %v2641_v38 = vpop.f32.mrb[76].mxu0  ;;  %v6375_v1 = vsel %vm242_vm1, %v6364_v57, 0 }
 0x1fc   : > { %v8942_v8 = vadd.f32 %v2641_v38, %v2434_v56  ;;  %v2643_v41 = vpop.f32.mrb[77].mxu0  ;;  %7583 = vmatmul.mubr.msk.bf16.vlgmr.msra.gmra.mrb[180].mxu1 %vm238_vm2, %v7352_v60  ;;  %v6352_v42 = vpop.permute.xlu0 %6351 }
 0x1fd   : > { %v2693_v43 = vadd.f32 %v2643_v41, %v2435_v39  ;;  %6179 = vmatpush1.bf16.msra.mxu1 %v6123_v34  ;;  %v2645_v45 = vpop.f32.mrb[78].mxu0  ;;  %6210 = vmatprep.mubr.bf16.mxu1 %v7669_v6  ;;  %v6354_v48 = vpop.permute.xlu1 %6353  ;;  %v6365_v26 = vsel %vm6363_vm13, %v6350_v9, %v6352_v42 }
 0x1fe   : > { %v2646_v49 = vpop.f32.mrb[79].mxu0  ;;  %7586 = vmatprep.subr.bf16.mxu1 %v7678_v35  ;;  %v6366_v7 = vsel %vm6363_vm13, %v6352_v42, %v6354_v48 }
 0x1ff   : > { %v2682_v50 = vpop.f32.mrb[76].mxu1  ;;  %v6381_v21 = vsel %vm242_vm1, %v6366_v7, 0 }
 0x200   : > { %v8953_v30 = vadd.f32 %v2682_v50, %v2436_v4  ;;  %v7506_v51 = vpop.f32.mrb[77].mxu1  ;;  %7362 = vmatmul.mubr.msk.bf16.vlgmr.msra.gmra.mrb[184].mxu0 %vm238_vm2, %v7360_v46  ;;  %v6356_v53 = vpop.permute.xlu0 %6355 }
 0x201   : > { %6220 = vmatpush1.bf16.msra.mxu0 %v6129_v22  ;;  %v2685_v54 = vpop.f32.mrb[78].mxu1  ;;  %6251 = vmatprep.mubr.bf16.mxu0 %v7669_v6  ;;  %v6358_v17 = vpop.permute.xlu1 %6357  ;;  %v6367_v59 = vsel %vm6363_vm13, %v6354_v48, %v6356_v53 }
 0x202   : > { %v7507_v55 = vpop.f32.mrb[79].mxu1  ;;  %7369 = vmatprep.subr.msk.bf16.mxu0 %vm242_vm1, %v6365_v26  ;;  %v6368_v47 = vsel %vm6363_vm13, %v6356_v53, %v6358_v17 }
 0x203   : > { %v2817_v56 = vpop.f32.mrb[80].mxu0  ;;  %v6387_v16 = vsel %vm242_vm1, %v6368_v47, 0 }
 0x204   : > { %v8961_v39 = vadd.f32 %v2817_v56, %v2688_v11  ;;  %v2819_v44 = vpop.f32.mrb[81].mxu0  ;;  %7364 = vmatmul.mubr.msk.bf16.vlgmr.msra.gmra.mrb[184].mxu1 %vm238_vm2, %v7360_v46  ;;  %v6360_v60 = vpop.permute.xlu0 %6359 }
 0x205   : > { %v2947_v62 = vadd.f32 %v2819_v44, %v2689_v23  ;;  %7587 = vmatpush3.bf16.msra.mxu1 %v6135_v37  ;;  %v2821_v63 = vpop.f32.mrb[82].mxu0  ;;  %7588 = vmatprep.mubr.msk.bf16.mxu1 %vm7679_vm3, %v7678_v35  ;;  %v6362_v0 = vpop.permute.xlu1 %6361  ;;  %v6369_v58 = vsel %vm6363_vm13, %v6358_v17, %v6360_v60 }
 0x206   : > { %v2822_v2 = vpop.f32.mrb[83].mxu0  ;;  %7371 = vmatprep.subr.msk.bf16.mxu1 %vm242_vm1, %v6367_v59  ;;  %v6370_v32 = vsel %vm6363_vm13, %v6360_v60, %v6362_v0 }
 0x207   : > { %v2858_v4 = vpop.f32.mrb[80].mxu1  ;;  %v6393_v40 = vsel %vm242_vm1, %v6370_v32, 0  ;;  %v7376_v2 = vld [vmem:[%s9068_s0 + $0x64] sm:$0xf] }
 0x208   : > { %v2948_v10 = vadd.f32 %v2858_v4, %v8935_v29  ;;  %v2860_v15 = vpop.f32.mrb[81].mxu1  ;;  %7366 = vmatmul.mubr.msk.bf16.vlgmr.msra.gmra.mrb[188].mxu0 %vm238_vm2, %v7360_v46  ;;  %v6606_v19 = vpop.permute.xlu0 %6605 }
 0x209   : > { %v2949_v61 = vadd.f32 %v2860_v15, %v2691_v18  ;;  %6396 = vmatpush1.bf16.msra.mxu0 %v6375_v1  ;;  %v2862_v20 = vpop.f32.mrb[82].mxu1  ;;  %6427 = vmatprep.mubr.bf16.mxu0 %v7669_v6  ;;  %v6608_v12 = vpop.permute.xlu1 %6607 }
 0x20a   : > { %v2863_v11 = vpop.f32.mrb[83].mxu1  ;;  %7373 = vmatprep.subr.msk.bf16.mxu0 %vm242_vm1, %v6369_v58  ;;  %v6622_v42 = vsel %vm6621_vm14, %v6606_v19, %v6608_v12 }
 0x20b   : > { %v2899_v13 = vpop.f32.mrb[84].mxu0  ;;  %v6633_v24 = vsel %vm242_vm1, %v6622_v42, 0 }
 0x20c   : > { %v2950_v23 = vadd.f32 %v2899_v13, %v8942_v8  ;;  %v2901_v3 = vpop.f32.mrb[85].mxu0  ;;  %7589 = vmatmul.mubr.msk.bf16.vlgmr.msra.gmra.mrb[188].mxu1 %vm238_vm2, %v7360_v46  ;;  %v6610_v25 = vpop.permute.xlu0 %6609 }
 0x20d   : > { %v2951_v5 = vadd.f32 %v2901_v3, %v2693_v43  ;;  %6437 = vmatpush1.bf16.msra.mxu1 %v6381_v21  ;;  %v2903_v27 = vpop.f32.mrb[86].mxu0  ;;  %6468 = vmatprep.mubr.bf16.mxu1 %v7669_v6  ;;  %v6612_v28 = vpop.permute.xlu1 %6611  ;;  %v6623_v18 = vsel %vm6621_vm14, %v6608_v12, %v6610_v25 }
 0x20e   : > { %v2904_v29 = vpop.f32.mrb[87].mxu0  ;;  %7592 = vmatprep.subr.bf16.mxu1 %v7678_v35  ;;  %v6624_v51 = vsel %vm6621_vm14, %v6610_v25, %v6612_v28 }
 0x20f   : > { %v2940_v31 = vpop.f32.mrb[84].mxu1  ;;  %v6639_v59 = vsel %vm242_vm1, %v6624_v51, 0 }
 0x210   : > { %v2952_v33 = vadd.f32 %v2940_v31, %v8953_v30  ;;  %v7512_v9 = vpop.f32.mrb[85].mxu1  ;;  %7370 = vmatmul.mubr.msk.bf16.vlgmr.msra.gmra.mrb[192].mxu0 %vm238_vm2, %v7368_v14  ;;  %v6614_v34 = vpop.permute.xlu0 %6613 }
 0x211   : > { %6478 = vmatpush1.bf16.msra.mxu0 %v6387_v16  ;;  %v2943_v36 = vpop.f32.mrb[86].mxu1  ;;  %6509 = vmatprep.mubr.bf16.mxu0 %v7669_v6  ;;  %v6616_v38 = vpop.permute.xlu1 %6615  ;;  %v6625_v43 = vsel %vm6621_vm14, %v6612_v28, %v6614_v34 }
 0x212   : > { %v7513_v8 = vpop.f32.mrb[87].mxu1  ;;  %7377 = vmatprep.subr.msk.bf16.mxu0 %vm242_vm1, %v6623_v18  ;;  %v6626_v60 = vsel %vm6621_vm14, %v6614_v34, %v6616_v38 }
 0x213   : > { %v3075_v41 = vpop.f32.mrb[88].mxu0  ;;  %v6645_v7 = vsel %vm242_vm1, %v6626_v60, 0 }
 0x214   : > { %v3204_v45 = vadd.f32 %v3075_v41, %v8961_v39  ;;  %v3077_v46 = vpop.f32.mrb[89].mxu0  ;;  %7372 = vmatmul.mubr.msk.bf16.vlgmr.msra.gmra.mrb[192].mxu1 %vm238_vm2, %v7368_v14  ;;  %v6618_v48 = vpop.permute.xlu0 %6617 }
 0x215   : > { %v3205_v22 = vadd.f32 %v3077_v46, %v2947_v62  ;;  %7593 = vmatpush3.bf16.msra.mxu1 %v6393_v40  ;;  %v3079_v49 = vpop.f32.mrb[90].mxu0  ;;  %7594 = vmatprep.mubr.msk.bf16.mxu1 %vm7679_vm3, %v7678_v35  ;;  %v6620_v50 = vpop.permute.xlu1 %6619  ;;  %v6627_v53 = vsel %vm6621_vm14, %v6616_v38, %v6618_v48 }
 0x216   : > { %v3080_v26 = vpop.f32.mrb[91].mxu0  ;;  %7379 = vmatprep.subr.msk.bf16.mxu1 %vm242_vm1, %v6625_v43  ;;  %v6628_v15 = vsel %vm6621_vm14, %v6618_v48, %v6620_v50  ;;  %v7384_v49 = vld [vmem:[%s9068_s0 + $0x68] sm:$0xf] }
 0x217   : > { %v3116_v30 = vpop.f32.mrb[88].mxu1  ;;  %v6651_v11 = vsel %vm242_vm1, %v6628_v15, 0 }
 0x218   : > { %v3206_v54 = vadd.f32 %v3116_v30, %v2948_v10  ;;  %v3118_v17 = vpop.f32.mrb[89].mxu1  ;;  %7374 = vmatmul.mubr.msk.bf16.vlgmr.msra.gmra.mrb[196].mxu0 %vm238_vm2, %v7368_v14  ;;  %v6864_v37 = vpop.permute.xlu0 %6863 }
 0x219   : > { %v3207_v55 = vadd.f32 %v3118_v17, %v2949_v61  ;;  %6654 = vmatpush1.bf16.msra.mxu0 %v6633_v24  ;;  %v3120_v56 = vpop.f32.mrb[90].mxu1  ;;  %6685 = vmatprep.mubr.bf16.mxu0 %v7669_v6  ;;  %v6866_v57 = vpop.permute.xlu1 %6865 }
 0x21a   : > { %v3121_v39 = vpop.f32.mrb[91].mxu1  ;;  %7381 = vmatprep.subr.msk.bf16.mxu0 %vm242_vm1, %v6627_v53 }
 0x21b   : > { %v3157_v44 = vpop.f32.mrb[92].mxu0 }
 0x21c   : > { %v3208_v62 = vadd.f32 %v3157_v44, %v2950_v23  ;;  %v3159_v63 = vpop.f32.mrb[93].mxu0  ;;  %7595 = vmatmul.mubr.msk.bf16.vlgmr.msra.gmra.mrb[196].mxu1 %vm238_vm2, %v7368_v14  ;;  %v6868_v0 = vpop.permute.xlu0 %6867  ;;  %v6880_v23 = vsel %vm6879_vm15, %v6864_v37, %v6866_v57 }
 0x21d   : > { %v3209_v52 = vadd.f32 %v3159_v63, %v2951_v5  ;;  %6695 = vmatpush1.bf16.msra.mxu1 %v6639_v59  ;;  %v3161_v1 = vpop.f32.mrb[94].mxu0  ;;  %6726 = vmatprep.mubr.bf16.mxu1 %v7669_v6  ;;  %v6870_v4 = vpop.permute.xlu1 %6869  ;;  %v6881_v19 = vsel %vm6879_vm15, %v6866_v57, %v6868_v0  ;;  %v6891_v29 = vsel %vm242_vm1, %v6880_v23, 0 }
 0x21e   : > { %v3162_v58 = vpop.f32.mrb[95].mxu0  ;;  %7598 = vmatprep.subr.bf16.mxu1 %v7678_v35  ;;  %v6882_v18 = vsel %vm6879_vm15, %v6868_v0, %v6870_v4 }
 0x21f   : > { %v3198_v10 = vpop.f32.mrb[92].mxu1  ;;  %v6897_v40 = vsel %vm242_vm1, %v6882_v18, 0 }
 0x220   : > { %v3210_v61 = vadd.f32 %v3198_v10, %v2952_v33  ;;  %v7518_v20 = vpop.f32.mrb[93].mxu1  ;;  %7378 = vmatmul.mubr.msk.bf16.vlgmr.msra.gmra.mrb[200].mxu0 %vm238_vm2, %v7376_v2  ;;  %v6872_v12 = vpop.permute.xlu0 %6871 }
 0x221   : > { %6736 = vmatpush1.bf16.msra.mxu0 %v6645_v7  ;;  %v3201_v21 = vpop.f32.mrb[94].mxu1  ;;  %6767 = vmatprep.mubr.bf16.mxu0 %v7669_v6  ;;  %v6883_v3 = vsel %vm6879_vm15, %v6870_v4, %v6872_v12  ;;  %v6874_v25 = vpop.permute.xlu1 %6873 }
 0x222   : > { %v7519_v13 = vpop.f32.mrb[95].mxu1  ;;  %7385 = vmatprep.subr.msk.bf16.mxu0 %vm242_vm1, %v6881_v19  ;;  %v6884_v42 = vsel %vm6879_vm15, %v6872_v12, %v6874_v25 }
 0x223   : > { %v3333_v47 = vpop.f32.mrb[96].mxu0  ;;  %v6903_v50 = vsel %vm242_vm1, %v6884_v42, 0 }
 0x224   : > { %v3462_v5 = vadd.f32 %v3333_v47, %v3204_v45  ;;  %v3335_v27 = vpop.f32.mrb[97].mxu0  ;;  %7380 = vmatmul.mubr.msk.bf16.vlgmr.msra.gmra.mrb[200].mxu1 %vm238_vm2, %v7376_v2  ;;  %v6876_v14 = vpop.permute.xlu0 %6875 }
 0x225   : > { %v3463_v28 = vadd.f32 %v3335_v27, %v3205_v22  ;;  %7599 = vmatpush3.bf16.msra.mxu1 %v6651_v11  ;;  %v3337_v16 = vpop.f32.mrb[98].mxu0  ;;  %7600 = vmatprep.mubr.msk.bf16.mxu1 %vm7679_vm3, %v7678_v35  ;;  %v6885_v33 = vsel %vm6879_vm15, %v6874_v25, %v6876_v14  ;;  %v6878_v46 = vpop.permute.xlu1 %6877 }
 0x226   : > { %v3338_v31 = vpop.f32.mrb[99].mxu0  ;;  %7387 = vmatprep.subr.msk.bf16.mxu1 %vm242_vm1, %v6883_v3  ;;  %v6886_v30 = vsel %vm6879_vm15, %v6876_v14, %v6878_v46 }
 0x227   : > { %v3374_v32 = vpop.f32.mrb[96].mxu1  ;;  %v6909_v37 = vsel %vm242_vm1, %v6886_v30, 0 }
 0x228   : > { %v3464_v9 = vadd.f32 %v3374_v32, %v3206_v54  ;;  %v3376_v34 = vpop.f32.mrb[97].mxu1  ;;  %7382 = vmatmul.mubr.msk.bf16.vlgmr.msra.gmra.mrb[204].mxu0 %vm238_vm2, %v7376_v2 }
 0x229   : > { %v3465_v36 = vadd.f32 %v3376_v34, %v3207_v55  ;;  %6912 = vmatpush1.bf16.msra.mxu0 %v6891_v29  ;;  %v3378_v38 = vpop.f32.mrb[98].mxu1  ;;  %6943 = vmatprep.mubr.bf16.mxu0 %v7669_v6 }
 0x22a   : > { %v3379_v8 = vpop.f32.mrb[99].mxu1  ;;  %7389 = vmatprep.subr.msk.bf16.mxu0 %vm242_vm1, %v6885_v33 }
 0x22b   : > { %v3415_v41 = vpop.f32.mrb[100].mxu0 }
 0x22c   : > { %v3466_v43 = vadd.f32 %v3415_v41, %v3208_v62  ;;  %v3417_v45 = vpop.f32.mrb[101].mxu0  ;;  %7601 = vmatmul.mubr.msk.bf16.vlgmr.msra.gmra.mrb[204].mxu1 %vm238_vm2, %v7376_v2 }
 0x22d   : > { %v3467_v48 = vadd.f32 %v3417_v45, %v3209_v52  ;;  %6953 = vmatpush1.bf16.msra.mxu1 %v6897_v40  ;;  %v3419_v22 = vpop.f32.mrb[102].mxu0  ;;  %6984 = vmatprep.mubr.bf16.mxu1 %v7669_v6 }
 0x22e   : > { %v3420_v24 = vpop.f32.mrb[103].mxu0  ;;  %7604 = vmatprep.subr.bf16.mxu1 %v7678_v35 }
 0x22f   : > { %v3456_v26 = vpop.f32.mrb[100].mxu1 }
 0x230   : > { %v3468_v51 = vadd.f32 %v3456_v26, %v3210_v61  ;;  %v7524_v53 = vpop.f32.mrb[101].mxu1  ;;  %7386 = vmatmul.mubr.msk.bf16.vlgmr.msra.gmra.mrb[208].mxu0 %vm238_vm2, %v7384_v49 }
 0x231   : > { %6994 = vmatpush1.bf16.msra.mxu0 %v6903_v50  ;;  %v3459_v54 = vpop.f32.mrb[102].mxu1  ;;  %7025 = vmatprep.mubr.bf16.mxu0 %v7669_v6 }
 0x232   : > { %v7525_v17 = vpop.f32.mrb[103].mxu1 }
 0x233   : > { %v3591_v55 = vpop.f32.mrb[104].mxu0 }
 0x234   : > { %v3720_v56 = vadd.f32 %v3591_v55, %v3462_v5  ;;  %v3593_v57 = vpop.f32.mrb[105].mxu0  ;;  %7388 = vmatmul.mubr.msk.bf16.vlgmr.msra.gmra.mrb[208].mxu1 %vm238_vm2, %v7384_v49 }
 0x235   : > { %v3721_v59 = vadd.f32 %v3593_v57, %v3463_v28  ;;  %7605 = vmatpush3.bf16.msra.mxu1 %v6909_v37  ;;  %v3595_v39 = vpop.f32.mrb[106].mxu0  ;;  %7606 = vmatprep.mubr.msk.bf16.mxu1 %vm7679_vm3, %v7678_v35 }
 0x236   : > { %v3596_v44 = vpop.f32.mrb[107].mxu0 }
 0x237   : > { %v3632_v60 = vpop.f32.mrb[104].mxu1 }
 0x238   : > { %v3722_v62 = vadd.f32 %v3632_v60, %v3464_v9  ;;  %v3634_v63 = vpop.f32.mrb[105].mxu1  ;;  %7390 = vmatmul.mubr.msk.bf16.vlgmr.msra.gmra.mrb[212].mxu0 %vm238_vm2, %v7384_v49 }
 0x239   : > { %v3723_v6 = vadd.f32 %v3634_v63, %v3465_v36  ;;  %v3636_v0 = vpop.f32.mrb[106].mxu1 }
 0x23a   : > { %v3637_v52 = vpop.f32.mrb[107].mxu1 }
 0x23b   : > { %v3673_v1 = vpop.f32.mrb[108].mxu0 }
 0x23c   : > { %v3724_v2 = vadd.f32 %v3673_v1, %v3466_v43  ;;  %v3675_v4 = vpop.f32.mrb[109].mxu0  ;;  %7607 = vmatmul.mubr.msk.bf16.vlgmr.msra.gmra.mrb[212].mxu1 %vm238_vm2, %v7384_v49 }
 0x23d   : > { %v3725_v7 = vadd.f32 %v3675_v4, %v3467_v48  ;;  %v3677_v58 = vpop.f32.mrb[110].mxu0 }
 0x23e   : > { %v3678_v10 = vpop.f32.mrb[111].mxu0 }
 0x23f   : > { %v3714_v15 = vpop.f32.mrb[108].mxu1 }
 0x240   : > { %v3726_v19 = vadd.f32 %v3714_v15, %v3468_v51  ;;  %v7530_v35 = vpop.f32.mrb[109].mxu1 }
 0x241   : > { %v3717_v61 = vpop.f32.mrb[110].mxu1 }
 0x242   : > { %v7531_v20 = vpop.f32.mrb[111].mxu1 }
 0x243   : > { %v3849_v12 = vpop.f32.mrb[112].mxu0 }
 0x244   : > { %v3978_v21 = vadd.f32 %v3849_v12, %v3720_v56  ;;  %v3851_v11 = vpop.f32.mrb[113].mxu0 }
 0x245   : > { %v3979_v13 = vadd.f32 %v3851_v11, %v3721_v59  ;;  %v3853_v47 = vpop.f32.mrb[114].mxu0 }
 0x246   : > { %v3854_v23 = vpop.f32.mrb[115].mxu0 }
 0x247   : > { %v3890_v3 = vpop.f32.mrb[112].mxu1 }
 0x248   : > { %v3980_v25 = vadd.f32 %v3890_v3, %v3722_v62  ;;  %v3892_v5 = vpop.f32.mrb[113].mxu1 }
 0x249   : > { %v3981_v27 = vadd.f32 %v3892_v5, %v3723_v6  ;;  %v3894_v14 = vpop.f32.mrb[114].mxu1 }
 0x24a   : > { %v3895_v28 = vpop.f32.mrb[115].mxu1 }
 0x24b   : > { %v3931_v16 = vpop.f32.mrb[116].mxu0 }
 0x24c   : > { %v3982_v29 = vadd.f32 %v3931_v16, %v3724_v2  ;;  %v3933_v31 = vpop.f32.mrb[117].mxu0 }
 0x24d   : > { %v3983_v32 = vadd.f32 %v3933_v31, %v3725_v7  ;;  %v3935_v18 = vpop.f32.mrb[118].mxu0 }
 0x24e   : > { %v3936_v33 = vpop.f32.mrb[119].mxu0 }
 0x24f   : > { %v3972_v9 = vpop.f32.mrb[116].mxu1 }
 0x250   : > { %v3984_v34 = vadd.f32 %v3972_v9, %v3726_v19  ;;  %v7536_v36 = vpop.f32.mrb[117].mxu1 }
 0x251   : > { %v3975_v38 = vpop.f32.mrb[118].mxu1 }
 0x252   : > { %v7537_v40 = vpop.f32.mrb[119].mxu1 }
 0x253   : > { %v4107_v8 = vpop.f32.mrb[120].mxu0 }
 0x254   : > { %v4236_v41 = vadd.f32 %v4107_v8, %v3978_v21  ;;  %v4109_v42 = vpop.f32.mrb[121].mxu0 }
 0x255   : > { %v4237_v43 = vadd.f32 %v4109_v42, %v3979_v13  ;;  %v4111_v45 = vpop.f32.mrb[122].mxu0 }
 0x256   : > { %v4112_v46 = vpop.f32.mrb[123].mxu0 }
 0x257   : > { %v4148_v48 = vpop.f32.mrb[120].mxu1 }
 0x258   : > { %v4238_v22 = vadd.f32 %v4148_v48, %v3980_v25  ;;  %v4150_v49 = vpop.f32.mrb[121].mxu1 }
 0x259   : > { %v4239_v50 = vadd.f32 %v4150_v49, %v3981_v27  ;;  %v4152_v24 = vpop.f32.mrb[122].mxu1 }
 0x25a   : > { %v4153_v26 = vpop.f32.mrb[123].mxu1 }
 0x25b   : > { %v4189_v30 = vpop.f32.mrb[124].mxu0 }
 0x25c   : > { %v4240_v51 = vadd.f32 %v4189_v30, %v3982_v29  ;;  %v4191_v53 = vpop.f32.mrb[125].mxu0 }
 0x25d   : > { %v4241_v54 = vadd.f32 %v4191_v53, %v3983_v32  ;;  %v4193_v17 = vpop.f32.mrb[126].mxu0 }
 0x25e   : > { %v4194_v37 = vpop.f32.mrb[127].mxu0 }
 0x25f   : > { %v4230_v55 = vpop.f32.mrb[124].mxu1 }
 0x260   : > { %v4242_v56 = vadd.f32 %v4230_v55, %v3984_v34  ;;  %v7542_v57 = vpop.f32.mrb[125].mxu1 }
 0x261   : > { %v4233_v59 = vpop.f32.mrb[126].mxu1 }
 0x262   : > { %v7543_v39 = vpop.f32.mrb[127].mxu1 }
 0x263   : > { %v4365_v44 = vpop.f32.mrb[128].mxu0 }
 0x264   : > { %v4494_v60 = vadd.f32 %v4365_v44, %v4236_v41  ;;  %v4367_v62 = vpop.f32.mrb[129].mxu0 }
 0x265   : > { %v4495_v63 = vadd.f32 %v4367_v62, %v4237_v43  ;;  %v4369_v6 = vpop.f32.mrb[130].mxu0 }
 0x266   : > { %v4370_v0 = vpop.f32.mrb[131].mxu0 }
 0x267   : > { %v4406_v52 = vpop.f32.mrb[128].mxu1 }
 0x268   : > { %v4496_v1 = vadd.f32 %v4406_v52, %v4238_v22  ;;  %v4408_v2 = vpop.f32.mrb[129].mxu1 }
 0x269   : > { %v4497_v4 = vadd.f32 %v4408_v2, %v4239_v50  ;;  %v4410_v7 = vpop.f32.mrb[130].mxu1 }
 0x26a   : > { %v4411_v58 = vpop.f32.mrb[131].mxu1 }
 0x26b   : > { %v4447_v10 = vpop.f32.mrb[132].mxu0 }
 0x26c   : > { %v4498_v15 = vadd.f32 %v4447_v10, %v4240_v51  ;;  %v4449_v19 = vpop.f32.mrb[133].mxu0 }
 0x26d   : > { %v4499_v35 = vadd.f32 %v4449_v19, %v4241_v54  ;;  %v4451_v61 = vpop.f32.mrb[134].mxu0 }
 0x26e   : > { %v4452_v20 = vpop.f32.mrb[135].mxu0 }
 0x26f   : > { %v4488_v12 = vpop.f32.mrb[132].mxu1 }
 0x270   : > { %v4500_v21 = vadd.f32 %v4488_v12, %v4242_v56  ;;  %v7548_v11 = vpop.f32.mrb[133].mxu1 }
 0x271   : > { %v4491_v13 = vpop.f32.mrb[134].mxu1 }
 0x272   : > { %v7549_v47 = vpop.f32.mrb[135].mxu1 }
 0x273   : > { %v4623_v23 = vpop.f32.mrb[136].mxu0 }
 0x274   : > { %v4752_v3 = vadd.f32 %v4623_v23, %v4494_v60  ;;  %v4625_v25 = vpop.f32.mrb[137].mxu0 }
 0x275   : > { %v4753_v5 = vadd.f32 %v4625_v25, %v4495_v63  ;;  %v4627_v27 = vpop.f32.mrb[138].mxu0 }
 0x276   : > { %v4628_v14 = vpop.f32.mrb[139].mxu0 }
 0x277   : > { %v4664_v28 = vpop.f32.mrb[136].mxu1 }
 0x278   : > { %v4754_v16 = vadd.f32 %v4664_v28, %v4496_v1  ;;  %v4666_v29 = vpop.f32.mrb[137].mxu1 }
 0x279   : > { %v4755_v31 = vadd.f32 %v4666_v29, %v4497_v4  ;;  %v4668_v32 = vpop.f32.mrb[138].mxu1 }
 0x27a   : > { %v4669_v18 = vpop.f32.mrb[139].mxu1 }
 0x27b   : > { %v4705_v33 = vpop.f32.mrb[140].mxu0 }
 0x27c   : > { %v4756_v9 = vadd.f32 %v4705_v33, %v4498_v15  ;;  %v4707_v34 = vpop.f32.mrb[141].mxu0 }
 0x27d   : > { %v4757_v36 = vadd.f32 %v4707_v34, %v4499_v35  ;;  %v4709_v38 = vpop.f32.mrb[142].mxu0 }
 0x27e   : > { %v4710_v40 = vpop.f32.mrb[143].mxu0 }
 0x27f   : > { %v4746_v8 = vpop.f32.mrb[140].mxu1 }
 0x280   : > { %v4758_v41 = vadd.f32 %v4746_v8, %v4500_v21  ;;  %v7554_v42 = vpop.f32.mrb[141].mxu1 }
 0x281   : > { %v4749_v43 = vpop.f32.mrb[142].mxu1 }
 0x282   : > { %v7555_v45 = vpop.f32.mrb[143].mxu1 }
 0x283   : > { %v4881_v46 = vpop.f32.mrb[144].mxu0 }
 0x284   : > { %v5010_v48 = vadd.f32 %v4881_v46, %v4752_v3  ;;  %v4883_v22 = vpop.f32.mrb[145].mxu0 }
 0x285   : > { %v5011_v49 = vadd.f32 %v4883_v22, %v4753_v5  ;;  %v4885_v50 = vpop.f32.mrb[146].mxu0 }
 0x286   : > { %v4886_v24 = vpop.f32.mrb[147].mxu0 }
 0x287   : > { %v4922_v26 = vpop.f32.mrb[144].mxu1 }
 0x288   : > { %v5012_v30 = vadd.f32 %v4922_v26, %v4754_v16  ;;  %v4924_v51 = vpop.f32.mrb[145].mxu1 }
 0x289   : > { %v5013_v53 = vadd.f32 %v4924_v51, %v4755_v31  ;;  %v4926_v54 = vpop.f32.mrb[146].mxu1 }
 0x28a   : > { %v4927_v17 = vpop.f32.mrb[147].mxu1 }
 0x28b   : > { %v4963_v37 = vpop.f32.mrb[148].mxu0 }
 0x28c   : > { %v5014_v55 = vadd.f32 %v4963_v37, %v4756_v9  ;;  %v4965_v56 = vpop.f32.mrb[149].mxu0 }
 0x28d   : > { %v5015_v57 = vadd.f32 %v4965_v56, %v4757_v36  ;;  %v4967_v59 = vpop.f32.mrb[150].mxu0 }
 0x28e   : > { %v4968_v39 = vpop.f32.mrb[151].mxu0 }
 0x28f   : > { %v5004_v44 = vpop.f32.mrb[148].mxu1 }
 0x290   : > { %v5016_v60 = vadd.f32 %v5004_v44, %v4758_v41  ;;  %v7560_v62 = vpop.f32.mrb[149].mxu1 }
 0x291   : > { %v5007_v63 = vpop.f32.mrb[150].mxu1 }
 0x292   : > { %v7561_v6 = vpop.f32.mrb[151].mxu1 }
 0x293   : > { %v5139_v0 = vpop.f32.mrb[152].mxu0 }
 0x294   : > { %v5268_v52 = vadd.f32 %v5139_v0, %v5010_v48  ;;  %v5141_v1 = vpop.f32.mrb[153].mxu0 }
 0x295   : > { %v5269_v2 = vadd.f32 %v5141_v1, %v5011_v49  ;;  %v5143_v4 = vpop.f32.mrb[154].mxu0 }
 0x296   : > { %v5144_v7 = vpop.f32.mrb[155].mxu0 }
 0x297   : > { %v5180_v58 = vpop.f32.mrb[152].mxu1 }
 0x298   : > { %v5270_v10 = vadd.f32 %v5180_v58, %v5012_v30  ;;  %v5182_v15 = vpop.f32.mrb[153].mxu1 }
 0x299   : > { %v5271_v19 = vadd.f32 %v5182_v15, %v5013_v53  ;;  %v5184_v35 = vpop.f32.mrb[154].mxu1 }
 0x29a   : > { %v5185_v61 = vpop.f32.mrb[155].mxu1 }
 0x29b   : > { %v5221_v20 = vpop.f32.mrb[156].mxu0 }
 0x29c   : > { %v5272_v12 = vadd.f32 %v5221_v20, %v5014_v55  ;;  %v5223_v21 = vpop.f32.mrb[157].mxu0 }
 0x29d   : > { %v5273_v11 = vadd.f32 %v5223_v21, %v5015_v57  ;;  %v5225_v13 = vpop.f32.mrb[158].mxu0 }
 0x29e   : > { %v5226_v47 = vpop.f32.mrb[159].mxu0 }
 0x29f   : > { %v5262_v23 = vpop.f32.mrb[156].mxu1 }
 0x2a0   : > { %v5274_v3 = vadd.f32 %v5262_v23, %v5016_v60  ;;  %v7566_v25 = vpop.f32.mrb[157].mxu1 }
 0x2a1   : > { %v5265_v5 = vpop.f32.mrb[158].mxu1 }
 0x2a2   : > { %v7567_v27 = vpop.f32.mrb[159].mxu1 }
 0x2a3   : > { %v5397_v14 = vpop.f32.mrb[160].mxu0 }
 0x2a4   : > { %v5526_v28 = vadd.f32 %v5397_v14, %v5268_v52  ;;  %v5399_v16 = vpop.f32.mrb[161].mxu0 }
 0x2a5   : > { %v5527_v29 = vadd.f32 %v5399_v16, %v5269_v2  ;;  %v5401_v31 = vpop.f32.mrb[162].mxu0 }
 0x2a6   : > { %v5402_v32 = vpop.f32.mrb[163].mxu0 }
 0x2a7   : > { %v5438_v18 = vpop.f32.mrb[160].mxu1 }
 0x2a8   : > { %v5528_v33 = vadd.f32 %v5438_v18, %v5270_v10  ;;  %v5440_v9 = vpop.f32.mrb[161].mxu1 }
 0x2a9   : > { %v5529_v34 = vadd.f32 %v5440_v9, %v5271_v19  ;;  %v5442_v36 = vpop.f32.mrb[162].mxu1 }
 0x2aa   : > { %v5443_v38 = vpop.f32.mrb[163].mxu1 }
 0x2ab   : > { %v5479_v40 = vpop.f32.mrb[164].mxu0 }
 0x2ac   : > { %v5530_v8 = vadd.f32 %v5479_v40, %v5272_v12  ;;  %v5481_v41 = vpop.f32.mrb[165].mxu0 }
 0x2ad   : > { %v5531_v42 = vadd.f32 %v5481_v41, %v5273_v11  ;;  %v5483_v43 = vpop.f32.mrb[166].mxu0 }
 0x2ae   : > { %v5484_v45 = vpop.f32.mrb[167].mxu0 }
 0x2af   : > { %v5520_v46 = vpop.f32.mrb[164].mxu1 }
 0x2b0   : > { %v5532_v48 = vadd.f32 %v5520_v46, %v5274_v3  ;;  %v7572_v22 = vpop.f32.mrb[165].mxu1 }
 0x2b1   : > { %v5523_v49 = vpop.f32.mrb[166].mxu1 }
 0x2b2   : > { %v7573_v50 = vpop.f32.mrb[167].mxu1 }
 0x2b3   : > { %v5655_v24 = vpop.f32.mrb[168].mxu0 }
 0x2b4   : > { %v5784_v26 = vadd.f32 %v5655_v24, %v5526_v28  ;;  %v5657_v30 = vpop.f32.mrb[169].mxu0 }
 0x2b5   : > { %v5785_v51 = vadd.f32 %v5657_v30, %v5527_v29  ;;  %v5659_v53 = vpop.f32.mrb[170].mxu0 }
 0x2b6   : > { %v5660_v54 = vpop.f32.mrb[171].mxu0 }
 0x2b7   : > { %v5696_v17 = vpop.f32.mrb[168].mxu1 }
 0x2b8   : > { %v5786_v37 = vadd.f32 %v5696_v17, %v5528_v33  ;;  %v5698_v55 = vpop.f32.mrb[169].mxu1 }
 0x2b9   : > { %v5787_v56 = vadd.f32 %v5698_v55, %v5529_v34  ;;  %v5700_v57 = vpop.f32.mrb[170].mxu1 }
 0x2ba   : > { %v5701_v59 = vpop.f32.mrb[171].mxu1 }
 0x2bb   : > { %v5737_v39 = vpop.f32.mrb[172].mxu0 }
 0x2bc   : > { %v5788_v44 = vadd.f32 %v5737_v39, %v5530_v8  ;;  %v5739_v60 = vpop.f32.mrb[173].mxu0 }
 0x2bd   : > { %v5789_v62 = vadd.f32 %v5739_v60, %v5531_v42  ;;  %v5741_v63 = vpop.f32.mrb[174].mxu0 }
 0x2be   : > { %v5742_v6 = vpop.f32.mrb[175].mxu0 }
 0x2bf   : > { %v5778_v0 = vpop.f32.mrb[172].mxu1 }
 0x2c0   : > { %v5790_v52 = vadd.f32 %v5778_v0, %v5532_v48  ;;  %v7578_v1 = vpop.f32.mrb[173].mxu1 }
 0x2c1   : > { %v5781_v2 = vpop.f32.mrb[174].mxu1 }
 0x2c2   : > { %v7579_v4 = vpop.f32.mrb[175].mxu1 }
 0x2c3   : > { %v5913_v7 = vpop.f32.mrb[176].mxu0 }
 0x2c4   : > { %v6042_v58 = vadd.f32 %v5913_v7, %v5784_v26  ;;  %v5915_v10 = vpop.f32.mrb[177].mxu0 }
 0x2c5   : > { %v6043_v15 = vadd.f32 %v5915_v10, %v5785_v51  ;;  %v5917_v19 = vpop.f32.mrb[178].mxu0 }
 0x2c6   : > { %v5918_v35 = vpop.f32.mrb[179].mxu0 }
 0x2c7   : > { %v5954_v61 = vpop.f32.mrb[176].mxu1 }
 0x2c8   : > { %v6044_v20 = vadd.f32 %v5954_v61, %v5786_v37  ;;  %v5956_v12 = vpop.f32.mrb[177].mxu1 }
 0x2c9   : > { %v6045_v21 = vadd.f32 %v5956_v12, %v5787_v56  ;;  %v5958_v11 = vpop.f32.mrb[178].mxu1 }
 0x2ca   : > { %v5959_v13 = vpop.f32.mrb[179].mxu1 }
 0x2cb   : > { %v5995_v47 = vpop.f32.mrb[180].mxu0 }
 0x2cc   : > { %v6046_v23 = vadd.f32 %v5995_v47, %v5788_v44  ;;  %v5997_v3 = vpop.f32.mrb[181].mxu0 }
 0x2cd   : > { %v6047_v25 = vadd.f32 %v5997_v3, %v5789_v62  ;;  %v5999_v5 = vpop.f32.mrb[182].mxu0 }
 0x2ce   : > { %v6000_v27 = vpop.f32.mrb[183].mxu0 }
 0x2cf   : > { %v6036_v14 = vpop.f32.mrb[180].mxu1 }
 0x2d0   : > { %v6048_v28 = vadd.f32 %v6036_v14, %v5790_v52  ;;  %v7584_v16 = vpop.f32.mrb[181].mxu1 }
 0x2d1   : > { %v6039_v29 = vpop.f32.mrb[182].mxu1 }
 0x2d2   : > { %v7585_v31 = vpop.f32.mrb[183].mxu1 }
 0x2d3   : > { %v6171_v32 = vpop.f32.mrb[184].mxu0 }
 0x2d4   : > { %v6300_v18 = vadd.f32 %v6171_v32, %v6042_v58  ;;  %v6173_v33 = vpop.f32.mrb[185].mxu0 }
 0x2d5   : > { %v6301_v9 = vadd.f32 %v6173_v33, %v6043_v15  ;;  %v6175_v34 = vpop.f32.mrb[186].mxu0 }
 0x2d6   : > { %v6176_v36 = vpop.f32.mrb[187].mxu0 }
 0x2d7   : > { %v6212_v38 = vpop.f32.mrb[184].mxu1 }
 0x2d8   : > { %v6302_v40 = vadd.f32 %v6212_v38, %v6044_v20  ;;  %v6214_v8 = vpop.f32.mrb[185].mxu1  ;;  %v7085_v38 = vpop.permute.xlu0 %7084 }
 0x2d9   : > { %v6303_v41 = vadd.f32 %v6214_v8, %v6045_v21  ;;  %v6216_v42 = vpop.f32.mrb[186].mxu1 }
 0x2da   : > { %v6217_v43 = vpop.f32.mrb[187].mxu1 }
 0x2db   : > { %v6253_v45 = vpop.f32.mrb[188].mxu0 }
 0x2dc   : > { %v6304_v46 = vadd.f32 %v6253_v45, %v6046_v23  ;;  %v6255_v48 = vpop.f32.mrb[189].mxu0 }
 0x2dd   : > { %v6305_v22 = vadd.f32 %v6255_v48, %v6047_v25  ;;  %v6257_v49 = vpop.f32.mrb[190].mxu0 }
 0x2de   : > { %v6258_v50 = vpop.f32.mrb[191].mxu0 }
 0x2df   : > { %v6294_v24 = vpop.f32.mrb[188].mxu1 }
 0x2e0   : > { %v6306_v26 = vadd.f32 %v6294_v24, %v6048_v28  ;;  %v7590_v30 = vpop.f32.mrb[189].mxu1 }
 0x2e1   : > { %v6297_v51 = vpop.f32.mrb[190].mxu1 }
 0x2e2   : > { %v7591_v53 = vpop.f32.mrb[191].mxu1 }
 0x2e3   : > { %v6429_v54 = vpop.f32.mrb[192].mxu0 }
 0x2e4   : > { %v6558_v17 = vadd.f32 %v6429_v54, %v6300_v18  ;;  %v6431_v37 = vpop.f32.mrb[193].mxu0 }
 0x2e5   : > { %v6559_v55 = vadd.f32 %v6431_v37, %v6301_v9  ;;  %v6433_v56 = vpop.f32.mrb[194].mxu0 }
 0x2e6   : > { %v6434_v57 = vpop.f32.mrb[195].mxu0 }
 0x2e7   : > { %v6470_v59 = vpop.f32.mrb[192].mxu1 }
 0x2e8   : > { %v6560_v39 = vadd.f32 %v6470_v59, %v6302_v40  ;;  %v6472_v44 = vpop.f32.mrb[193].mxu1 }
 0x2e9   : > { %v6561_v60 = vadd.f32 %v6472_v44, %v6303_v41  ;;  %v6474_v62 = vpop.f32.mrb[194].mxu1 }
 0x2ea   : > { %v6475_v63 = vpop.f32.mrb[195].mxu1 }
 0x2eb   : > { %v6511_v6 = vpop.f32.mrb[196].mxu0 }
 0x2ec   : > { %v6562_v0 = vadd.f32 %v6511_v6, %v6304_v46  ;;  %v6513_v52 = vpop.f32.mrb[197].mxu0 }
 0x2ed   : > { %v6563_v1 = vadd.f32 %v6513_v52, %v6305_v22  ;;  %v6515_v2 = vpop.f32.mrb[198].mxu0 }
 0x2ee   : > { %v6516_v4 = vpop.f32.mrb[199].mxu0 }
 0x2ef   : > { %v6552_v7 = vpop.f32.mrb[196].mxu1 }
 0x2f0   : > { %v6564_v58 = vadd.f32 %v6552_v7, %v6306_v26  ;;  %v7596_v10 = vpop.f32.mrb[197].mxu1 }
 0x2f1   : > { %v6555_v15 = vpop.f32.mrb[198].mxu1 }
 0x2f2   : > { %v7597_v19 = vpop.f32.mrb[199].mxu1 }
 0x2f3   : > { %v6687_v35 = vpop.f32.mrb[200].mxu0 }
 0x2f4   : > { %v6816_v61 = vadd.f32 %v6687_v35, %v6558_v17  ;;  %v6689_v20 = vpop.f32.mrb[201].mxu0 }
 0x2f5   : > { %v6817_v12 = vadd.f32 %v6689_v20, %v6559_v55  ;;  %v6691_v21 = vpop.f32.mrb[202].mxu0 }
 0x2f6   : > { %v6692_v11 = vpop.f32.mrb[203].mxu0 }
 0x2f7   : > { %v6728_v13 = vpop.f32.mrb[200].mxu1 }
 0x2f8   : > { %v6818_v47 = vadd.f32 %v6728_v13, %v6560_v39  ;;  %v6730_v23 = vpop.f32.mrb[201].mxu1 }
 0x2f9   : > { %v6819_v3 = vadd.f32 %v6730_v23, %v6561_v60  ;;  %v6732_v25 = vpop.f32.mrb[202].mxu1 }
 0x2fa   : > { %v6733_v5 = vpop.f32.mrb[203].mxu1 }
 0x2fb   : > { %v6769_v27 = vpop.f32.mrb[204].mxu0 }
 0x2fc   : > { %v6820_v14 = vadd.f32 %v6769_v27, %v6562_v0  ;;  %v6771_v28 = vpop.f32.mrb[205].mxu0 }
 0x2fd   : > { %v6821_v16 = vadd.f32 %v6771_v28, %v6563_v1  ;;  %v6773_v29 = vpop.f32.mrb[206].mxu0 }
 0x2fe   : > { %v6774_v31 = vpop.f32.mrb[207].mxu0 }
 0x2ff   : > { %v6810_v32 = vpop.f32.mrb[204].mxu1 }
 0x300   : > { %v6822_v18 = vadd.f32 %v6810_v32, %v6564_v58  ;;  %v7602_v33 = vpop.f32.mrb[205].mxu1 }
 0x301   : > { %v6813_v9 = vpop.f32.mrb[206].mxu1 }
 0x302   : > { %v7603_v34 = vpop.f32.mrb[207].mxu1 }
 0x303   : > { %v6945_v36 = vpop.f32.mrb[208].mxu0 }
 0x304   : > { %v7074_v40 = vadd.f32 %v6945_v36, %v6816_v61  ;;  %v6947_v8 = vpop.f32.mrb[209].mxu0 }
 0x305   : > { %v7075_v41 = vadd.f32 %v6947_v8, %v6817_v12  ;;  %v6949_v42 = vpop.f32.mrb[210].mxu0 }
 0x306   : > { %v7087_v43 = vadd.f32 %v7085_v38, %v7074_v40  ;;  %v6950_v45 = vpop.f32.mrb[211].mxu0 }
 0x307   : > { %v7088_v46 = vadd.f32 %v7085_v38, %v7075_v41  ;;  %v6986_v48 = vpop.f32.mrb[208].mxu1 }
 0x308   : > { %v7094_v22 = vmul.f32 0.01, %v7087_v43  ;;  %v7076_v49 = vadd.f32 %v6986_v48, %v6818_v47  ;;  %v6988_v50 = vpop.f32.mrb[209].mxu1 }
 0x309   : > { %v7095_v24 = vmul.f32 0.01, %v7088_v46  ;;  %v7077_v26 = vadd.f32 %v6988_v50, %v6819_v3  ;;  %v6990_v30 = vpop.f32.mrb[210].mxu1 }
 0x30a   : > { %v7101_v51 = vmax.f32 %v7087_v43, %v7094_v22  ;;  %v7089_v53 = vadd.f32 %v7085_v38, %v7076_v49  ;;  %v6991_v54 = vpop.f32.mrb[211].mxu1 }
 0x30b   : > { %v7102_v17 = vmax.f32 %v7088_v46, %v7095_v24  ;;  %v7090_v37 = vadd.f32 %v7085_v38, %v7077_v26  ;;  %v7027_v55 = vpop.f32.mrb[212].mxu0 }
 0x30c   : > { %7108 = vst [vmem:[%s9056_s30] sm:$0xff] %v7101_v51  ;;  %v7096_v56 = vmul.f32 0.01, %v7089_v53  ;;  %v7078_v57 = vadd.f32 %v7027_v55, %v6820_v14  ;;  %v7029_v59 = vpop.f32.mrb[213].mxu0 }
 0x30d   : > { %7109 = vst [vmem:[%s9056_s30 + $0x8] sm:$0xff] %v7102_v17  ;;  %v7097_v39 = vmul.f32 0.01, %v7090_v37  ;;  %v7079_v44 = vadd.f32 %v7029_v59, %v6821_v16  ;;  %v7031_v60 = vpop.f32.mrb[214].mxu0 }
 0x30e   : > { %v7103_v62 = vmax.f32 %v7089_v53, %v7096_v56  ;;  %v7091_v63 = vadd.f32 %v7085_v38, %v7078_v57  ;;  %v7032_v6 = vpop.f32.mrb[215].mxu0 }
 0x30f   : > { %v7104_v0 = vmax.f32 %v7090_v37, %v7097_v39  ;;  %v7092_v52 = vadd.f32 %v7085_v38, %v7079_v44  ;;  %v7068_v1 = vpop.f32.mrb[212].mxu1 }
 0x310   : > { %7110 = vst [vmem:[%s9056_s30 + $0x10] sm:$0xff] %v7103_v62  ;;  %v7098_v2 = vmul.f32 0.01, %v7091_v63  ;;  %v7080_v4 = vadd.f32 %v7068_v1, %v6822_v18  ;;  %v7608_v7 = vpop.f32.mrb[213].mxu1 }
 0x311   : > { %7111 = vst [vmem:[%s9056_s30 + $0x18] sm:$0xff] %v7104_v0  ;;  %v7099_v58 = vmul.f32 0.01, %v7092_v52  ;;  %v7071_v10 = vpop.f32.mrb[214].mxu1 }
 0x312   : > { %v7105_v15 = vmax.f32 %v7091_v63, %v7098_v2  ;;  %v7093_v19 = vadd.f32 %v7085_v38, %v7080_v4  ;;  %v7609_v35 = vpop.f32.mrb[215].mxu1 }
 0x313   : > { %v7106_v61 = vmax.f32 %v7092_v52, %v7099_v58 }
 0x314   : > { %7112 = vst [vmem:[%s9056_s30 + $0x20] sm:$0xff] %v7105_v15  ;;  %v7100_v20 = vmul.f32 0.01, %v7093_v19 }
 0x315   : > { %7113 = vst [vmem:[%s9056_s30 + $0x28] sm:$0xff] %v7106_v61 }
 0x316   : > { %v7107_v12 = vmax.f32 %v7093_v19, %v7100_v20 }
 0x318   : > { %7114 = vst [vmem:[%s9056_s30 + $0x30] sm:$0xff] %v7107_v12 }
 0x319 PF: > { %s13_s12 = sadd.s32 1, %s7666_s12  }
 0x31a   : > { %p10_p4 = scmp.ge.s32.totalorder %s13_s12, 4  }
 0x31c   :  { %12 = sbr.rel (!%p10_p4) target bundleno = 1 (0x1), region = 88 }

// kernel: res_block_down.3
= control target key start
LH: loop header
LB: loop body
LE: loop exit
PB: predicated region body
PF: predicated region fallthrough
CT: control target
= control target key end

     0   :  { %s2281_s18 = smov 0   ;;  %s2611_s0 = inlined_call_operand.vmem [shape: bf16[27,8,8], index: 0, kind: input, shape index: {}]   ;;  %s2612_s1 = inlined_call_operand.vmem [shape: f32[8,1], index: 1, kind: input, shape index: {}]   ;;  %s2613_s2 = inlined_call_operand.vmem [shape: bf16[8,4], index: 2, kind: input, shape index: {}]   ;;  %s2614_s3 = inlined_call_operand.vmem [shape: f32[8,1], index: 3, kind: input, shape index: {}]   ;;  %s2615_s4 = inlined_call_operand.vmem [shape: bf16[2,12,384], index: 4, kind: input, shape index: {}]   ;;  %s2616_s5 = inlined_call_operand.vmem [shape: f32[2,8,256], index: 5, kind: output, shape index: {}]  }
   0x1 LB: > { %s2073_s19 = sadd.s32 4294967295, %s2222_s18   ;;  %p2077_p0 = scmp.ge.s32.totalorder %s2222_s18, 1  ;;  %s2222_s18 = sphi %s2281_s18, %s15_s18  }
   0x2   : > { %p187_p1 = scmp.lt.s32.totalorder %s2222_s18, 3 }
   0x4   : > { %p188_p2 = pnand %p2077_p0, %p187_p1 }
   0x5   : > { %p215_p3 = scmp.lt.s32.totalorder (!%p188_p2), %s2073_s19, 1  ;;  %v2224_v0 = vmov (!%p188_p2), 0   ;;  %s2225_s24 = smov (!%p188_p2), 127   ;;  %vm252_vm0 = vcmask (!%p188_p2), 1043456   ;;  %vm248_vm1 = vcmask (!%p188_p2), 64512   ;;  %vm245_vm2 = vcmask (!%p188_p2), 1039360  }
   0x6   : > { %191 = sbr.rel (%p188_p2) target bundleno = 518 (0x206), region = 40  ;;  %291 = vmatprep.mubr.bf16.mxu0 (!%p188_p2), %v2224_v0  ;;  %341 = vmatprep.mubr.bf16.mxu1 (!%p188_p2), %v2224_v0  ;;  %s2226_s25 = smov (!%p188_p2), 126   ;;  %v227_v6 = vld [vmem:[%s2611_s0] sm:$0xf] (!%p188_p2)  ;;  %vm358_vm3 = vcmask (!%p188_p2), 1031168   ;;  %vm421_vm4 = vcmask (!%p188_p2), 998400  }
   0x7   : > { %2208 = vset.pattern.permute.xlu1 (!%p188_p2), %v2224_v0  ;;  %2209 = vset.pattern.permute.xlu0 (!%p188_p2), %v2224_v0  ;;  %s2227_s28 = smov (!%p188_p2), 122   ;;  %s2228_s29 = smov (!%p188_p2), 121   ;;  %v2081_v16 = vld [vmem:[%s2611_s0 + $0x4] sm:$0xf] (!%p188_p2)  ;;  %v2089_v25 = vld [vmem:[%s2611_s0 + $0x8] sm:$0xf] (!%p188_p2) }
   0x8   : > { %s2229_s30 = smov (!%p188_p2), 120   ;;  %s2230_s6 = smov (!%p188_p2), 116   ;;  %vm484_vm5 = vcmask (!%p188_p2), 990208   ;;  %v2092_v30 = vld [vmem:[%s2611_s0 + $0xc] sm:$0xf] (!%p188_p2)  ;;  %vm547_vm6 = vcmask (!%p188_p2), 982016  }
   0x9   : > { %s2231_s7 = smov (!%p188_p2), 115   ;;  %s2232_s8 = smov (!%p188_p2), 114   ;;  %v2095_v36 = vld [vmem:[%s2611_s0 + $0x10] sm:$0xf] (!%p188_p2)  ;;  %vm610_vm7 = vcmask (!%p188_p2), 949248   ;;  %vm673_vm8 = vcmask (!%p188_p2), 941056  }
   0xa   : > { %s2233_s9 = smov (!%p188_p2), 92   ;;  %s2234_s10 = smov (!%p188_p2), 91   ;;  %v2098_v44 = vld [vmem:[%s2611_s0 + $0x14] sm:$0xf] (!%p188_p2)  ;;  %v2101_v50 = vld [vmem:[%s2611_s0 + $0x18] sm:$0xf] (!%p188_p2) }
   0xb   : > { %s2235_s11 = smov (!%p188_p2), 90   ;;  %s2236_s12 = smov (!%p188_p2), 86   ;;  %vm736_vm9 = vcmask (!%p188_p2), 932864   ;;  %v1925_v60 = vld [vmem:[%s2612_s1] sm:$0xff] (!%p188_p2)  ;;  %v2104_v63 = vld [vmem:[%s2611_s0 + $0x1c] sm:$0xf] (!%p188_p2) }
   0xc   : > { %s2237_s13 = smov (!%p188_p2), 85   ;;  %s2238_s14 = smov (!%p188_p2), 84   ;;  %vm799_vm10 = vcmask (!%p188_p2), 752640   ;;  %vm862_vm11 = vcmask (!%p188_p2), 744448   ;;  %vm925_vm12 = vcmask (!%p188_p2), 736256   ;;  %vm988_vm13 = vcmask (!%p188_p2), 703488  }
   0xd   : > { %s2618_s19 = smov (!%p215_p3, %s2073_s19), 1  ;;  %s2239_s15 = smov 80   ;;  %vm1051_vm14 = vcmask 695296   ;;  %vm1114_vm15 = vcmask 687104  }
   0xe   : > { %s2172_s20 = smul.u32 24, %s2618_s19  ;;  %s2240_s16 = smov 79  }
   0xf   : > { %s2241_s17 = smov 78   ;;  %s2243_s21 = smov 55  }
  0x10   : > { %s2295_s23 = scalar_lea.vmem %s2615_s4, %s2172_s20  ;;  %s2242_s20 = smov 56  }
  0x11   : > { %v2300_v1 = vld [vmem:[%s2295_s23 + $0x8] ss:$0 sps:$4 sm:$0xff]   ;;  %v226_v2 = vld [vmem:[%s2295_s23] sm:$0xff]  ;;  %s2244_s22 = smov 54   ;;  %s2246_s27 = smov 49  }
  0x12   : > { %v2305_v3 = vcombine.low %v226_v2, %v226_v2  ;;  %v2307_v4 = vcombine.high %v226_v2, %v226_v2  ;;  %243 = vrot.lane.b32.xlu1 %v2300_v1, %s2225_s24  ;;  %v1937_v48 = vld [vmem:[%s2295_s23 + $0xc] sm:$0x33]  ;;  %v2215_v59 = vld [vmem:[%s2295_s23 + $0x14] ss:$0 sps:$4 sm:$0x33]  }
  0x13   : > { %v2165_v52 = vcombine.high %v1937_v48, %v1937_v48  ;;  %v2164_v53 = vcombine.low %v1937_v48, %v1937_v48  ;;  %v2125_v48 = vld [vmem:[%s2611_s0 + $0x38] sm:$0xf] }
  0x14   : > { %239 = vrot.lane.b32.xlu0 %v2305_v3, %s2225_s24  ;;  %2087 = vmatprep.subr.msk.bf16.mxu1 %vm252_vm0, %v2307_v4  ;;  %v304_v5 = vsel %vm252_vm0, %v2305_v3, 0 }
  0x15   : > { %310 = vmatpush1.bf16.msra.mxu1 %v304_v5  ;;  %v2107_v5 = vld [vmem:[%s2611_s0 + $0x20] sm:$0xf] }
  0x16   : > { %352 = vrot.lane.b32.xlu1 %v2305_v3, %s2226_s25 }
  0x18   : > { %241 = vrot.lane.b32.xlu0 %v2307_v4, %s2225_s24  ;;  %2088 = vmatmul.mubr.msk.bf16.vlgmr.msra.gmra.mrb[0].mxu1 %vm248_vm1, %v227_v6  ;;  %s2245_s24 = smov 50   ;;  %v1940_v6 = vld [vmem:[%s2614_s3] sm:$0xff] }
  0x19   : > { %465 = vmatprep.mubr.bf16.mxu1 %v2224_v0 }
  0x1a   : > { %356 = vrot.lane.b32.xlu1 %v2300_v1, %s2226_s25 }
  0x1c   : > { %354 = vrot.lane.b32.xlu0 %v2307_v4, %s2226_s25 }
  0x1e   : > { %417 = vrot.lane.b32.xlu1 %v2307_v4, %s2227_s28 }
  0x20   : > { %415 = vrot.lane.b32.xlu0 %v2305_v3, %s2227_s28 }
  0x22   : > { %478 = vrot.lane.b32.xlu1 %v2305_v3, %s2228_s29 }
  0x24   : > { %419 = vrot.lane.b32.xlu0 %v2300_v1, %s2227_s28 }
  0x26   : > { %482 = vrot.lane.b32.xlu1 %v2300_v1, %s2228_s29 }
  0x28   : > { %480 = vrot.lane.b32.xlu0 %v2307_v4, %s2228_s29 }
  0x2a   : > { %543 = vrot.lane.b32.xlu1 %v2307_v4, %s2229_s30 }
  0x2c   : > { %541 = vrot.lane.b32.xlu0 %v2305_v3, %s2229_s30 }
  0x2e   : > { %604 = vrot.lane.b32.xlu1 %v2305_v3, %s2230_s6 }
  0x30   : > { %545 = vrot.lane.b32.xlu0 %v2300_v1, %s2229_s30  ;;  %s2247_s30 = smov 48  }
  0x32   : > { %608 = vrot.lane.b32.xlu1 %v2300_v1, %s2230_s6 }
  0x34   : > { %606 = vrot.lane.b32.xlu0 %v2307_v4, %s2230_s6 }
  0x36   : > { %669 = vrot.lane.b32.xlu1 %v2307_v4, %s2231_s7 }
  0x38   : > { %667 = vrot.lane.b32.xlu0 %v2305_v3, %s2231_s7 }
  0x3a   : > { %730 = vrot.lane.b32.xlu1 %v2305_v3, %s2232_s8 }
  0x3c   : > { %671 = vrot.lane.b32.xlu0 %v2300_v1, %s2231_s7 }
  0x3e   : > { %734 = vrot.lane.b32.xlu1 %v2300_v1, %s2232_s8 }
  0x40   : > { %732 = vrot.lane.b32.xlu0 %v2307_v4, %s2232_s8  ;;  %s2248_s8 = smov 44  }
  0x42   : > { %795 = vrot.lane.b32.xlu1 %v2307_v4, %s2233_s9 }
  0x44   : > { %793 = vrot.lane.b32.xlu0 %v2305_v3, %s2233_s9 }
  0x46   : > { %856 = vrot.lane.b32.xlu1 %v2305_v3, %s2234_s10 }
  0x48   : > { %797 = vrot.lane.b32.xlu0 %v2300_v1, %s2233_s9 }
  0x4a   : > { %860 = vrot.lane.b32.xlu1 %v2300_v1, %s2234_s10 }
  0x4c   : > { %858 = vrot.lane.b32.xlu0 %v2307_v4, %s2234_s10 }
  0x4e   : > { %921 = vrot.lane.b32.xlu1 %v2307_v4, %s2235_s11 }
  0x50   : > { %919 = vrot.lane.b32.xlu0 %v2305_v3, %s2235_s11 }
  0x52   : > { %982 = vrot.lane.b32.xlu1 %v2305_v3, %s2236_s12 }
  0x54   : > { %923 = vrot.lane.b32.xlu0 %v2300_v1, %s2235_s11  ;;  %s2249_s11 = smov 43  }
  0x56   : > { %986 = vrot.lane.b32.xlu1 %v2300_v1, %s2236_s12 }
  0x58   : > { %984 = vrot.lane.b32.xlu0 %v2307_v4, %s2236_s12 }
  0x5a   : > { %1047 = vrot.lane.b32.xlu1 %v2307_v4, %s2237_s13 }
  0x5c   : > { %1045 = vrot.lane.b32.xlu0 %v2305_v3, %s2237_s13 }
  0x5e   : > { %1108 = vrot.lane.b32.xlu1 %v2305_v3, %s2238_s14 }
  0x60   : > { %1049 = vrot.lane.b32.xlu0 %v2300_v1, %s2237_s13 }
  0x62   : > { %1112 = vrot.lane.b32.xlu1 %v2300_v1, %s2238_s14 }
  0x64   : > { %1110 = vrot.lane.b32.xlu0 %v2307_v4, %s2238_s14 }
  0x66   : > { %1173 = vrot.lane.b32.xlu1 %v2307_v4, %s2239_s15 }
  0x68   : > { %1171 = vrot.lane.b32.xlu0 %v2305_v3, %s2239_s15 }
  0x6a   : > { %1234 = vrot.lane.b32.xlu1 %v2305_v3, %s2240_s16 }
  0x6c   : > { %1175 = vrot.lane.b32.xlu0 %v2300_v1, %s2239_s15  ;;  %s2250_s15 = smov 42  }
  0x6e   : > { %1238 = vrot.lane.b32.xlu1 %v2300_v1, %s2240_s16 }
  0x70   : > { %1236 = vrot.lane.b32.xlu0 %v2307_v4, %s2240_s16 }
  0x72   : > { %1299 = vrot.lane.b32.xlu1 %v2307_v4, %s2241_s17 }
  0x74   : > { %1297 = vrot.lane.b32.xlu0 %v2305_v3, %s2241_s17 }
  0x76   : > { %1360 = vrot.lane.b32.xlu1 %v2305_v3, %s2242_s20 }
  0x78   : > { %1301 = vrot.lane.b32.xlu0 %v2300_v1, %s2241_s17 }
  0x7a   : > { %1364 = vrot.lane.b32.xlu1 %v2300_v1, %s2242_s20 }
  0x7c   : > { %1362 = vrot.lane.b32.xlu0 %v2307_v4, %s2242_s20  ;;  %s2171_s20 = sshll.u32 %s2618_s19, 4 }
  0x7e   : > { %1425 = vrot.lane.b32.xlu1 %v2307_v4, %s2243_s21 }
  0x80   : > { %1423 = vrot.lane.b32.xlu0 %v2305_v3, %s2243_s21 }
  0x82   : > { %1486 = vrot.lane.b32.xlu1 %v2305_v3, %s2244_s22 }
  0x84   : > { %1427 = vrot.lane.b32.xlu0 %v2300_v1, %s2243_s21  ;;  %v244_v7 = vpop.permute.xlu1 %243 }
  0x86   : > { %v240_v8 = vpop.permute.xlu0 %239  ;;  %1490 = vrot.lane.b32.xlu1 %v2300_v1, %s2244_s22 }
  0x88   : > { %1488 = vrot.lane.b32.xlu0 %v2307_v4, %s2244_s22  ;;  %v353_v9 = vpop.permute.xlu1 %352 }
  0x8a   : > { %v242_v10 = vpop.permute.xlu0 %241  ;;  %1551 = vrot.lane.b32.xlu1 %v2307_v4, %s2245_s24 }
  0x8b   : > { %v247_v11 = vsel %vm245_vm2, %v242_v10, %v244_v7  ;;  %v246_v12 = vsel %vm245_vm2, %v240_v8, %v242_v10  ;;  %vm1177_vm2 = vcmask 654336  }
  0x8c   : > { %1549 = vrot.lane.b32.xlu0 %v2305_v3, %s2245_s24  ;;  %2085 = vmatprep.subr.msk.bf16.mxu0 %vm252_vm0, %v247_v11  ;;  %v254_v13 = vsel %vm252_vm0, %v246_v12, 0  ;;  %v357_v14 = vpop.permute.xlu1 %356 }
  0x8d   : > { %260 = vmatpush1.bf16.msra.mxu0 %v254_v13 }
  0x8e   : > { %v355_v15 = vpop.permute.xlu0 %354  ;;  %1612 = vrot.lane.b32.xlu1 %v2305_v3, %s2246_s27 }
  0x8f   : > { %v359_v17 = vsel %vm358_vm3, %v353_v9, %v355_v15  ;;  %v360_v18 = vsel %vm358_vm3, %v355_v15, %v357_v14  ;;  %v2110_v14 = vld [vmem:[%s2611_s0 + $0x24] sm:$0xf]  ;;  %vm1240_vm3 = vcmask 646144  }
  0x90   : > { %v365_v19 = vsel %vm252_vm0, %v359_v17, 0  ;;  %1553 = vrot.lane.b32.xlu0 %v2300_v1, %s2245_s24  ;;  %2090 = vmatprep.subr.msk.bf16.mxu0 %vm252_vm0, %v360_v18  ;;  %v418_v20 = vpop.permute.xlu1 %417  ;;  %s224_s24 = scalar_lea.vmem %s2616_s5, %s2171_s20 }
  0x91   : > { %2086 = vmatmul.mubr.msk.bf16.vlgmr.msra.gmra.mrb[0].mxu0 %vm248_vm1, %v2081_v16 }
  0x92   : > { %371 = vmatpush1.bf16.msra.mxu0 %v365_v19  ;;  %v416_v21 = vpop.permute.xlu0 %415  ;;  %402 = vmatprep.mubr.bf16.mxu0 %v2224_v0 }
  0x93   : > { %1616 = vrot.lane.b32.xlu1 %v2300_v1, %s2246_s27  ;;  %v422_v22 = vsel %vm421_vm4, %v416_v21, %v418_v20 }
  0x94   : > { %1614 = vrot.lane.b32.xlu0 %v2307_v4, %s2246_s27  ;;  %v479_v23 = vpop.permute.xlu1 %478  ;;  %v428_v27 = vsel %vm252_vm0, %v422_v22, 0 }
  0x96   : > { %v420_v24 = vpop.permute.xlu0 %419 }
  0x97   : > { %v423_v26 = vsel %vm421_vm4, %v418_v20, %v420_v24  ;;  %1677 = vrot.lane.b32.xlu1 %v2307_v4, %s2247_s30  ;;  %v2113_v20 = vld [vmem:[%s2611_s0 + $0x28] sm:$0xf]  ;;  %vm1303_vm4 = vcmask 637952  }
  0x98   : > { %1675 = vrot.lane.b32.xlu0 %v2305_v3, %s2247_s30  ;;  %2093 = vmatprep.subr.msk.bf16.mxu1 %vm252_vm0, %v423_v26  ;;  %v483_v28 = vpop.permute.xlu1 %482 }
  0x99   : > { %434 = vmatpush1.bf16.msra.mxu1 %v428_v27  ;;  %2091 = vmatmul.mubr.msk.bf16.vlgmr.msra.gmra.mrb[4].mxu0 %vm248_vm1, %v2089_v25 }
  0x9a   : > { %v481_v29 = vpop.permute.xlu0 %480  ;;  %528 = vmatprep.mubr.bf16.mxu0 %v2224_v0 }
  0x9b   : > { %v485_v31 = vsel %vm484_vm5, %v479_v23, %v481_v29  ;;  %v486_v32 = vsel %vm484_vm5, %v481_v29, %v483_v28  ;;  %1738 = vrot.lane.b32.xlu1 %v2305_v3, %s2248_s8  ;;  %v2116_v28 = vld [vmem:[%s2611_s0 + $0x2c] sm:$0xf]  ;;  %vm1366_vm5 = vcmask 457728  }
  0x9c   : > { %v491_v33 = vsel %vm252_vm0, %v485_v31, 0  ;;  %1679 = vrot.lane.b32.xlu0 %v2300_v1, %s2247_s30  ;;  %2096 = vmatprep.subr.msk.bf16.mxu0 %vm252_vm0, %v486_v32  ;;  %v544_v34 = vpop.permute.xlu1 %543 }
  0x9d   : > { %497 = vmatpush1.bf16.msra.mxu0 %v491_v33  ;;  %2094 = vmatmul.mubr.msk.bf16.vlgmr.msra.gmra.mrb[4].mxu1 %vm248_vm1, %v2092_v30 }
  0x9e   : > { %v542_v35 = vpop.permute.xlu0 %541  ;;  %591 = vmatprep.mubr.bf16.mxu1 %v2224_v0 }
  0x9f   : > { %1742 = vrot.lane.b32.xlu1 %v2300_v1, %s2248_s8  ;;  %v548_v37 = vsel %vm547_vm6, %v542_v35, %v544_v34 }
  0xa0   : > { %1740 = vrot.lane.b32.xlu0 %v2307_v4, %s2248_s8  ;;  %v605_v38 = vpop.permute.xlu1 %604  ;;  %v554_v41 = vsel %vm252_vm0, %v548_v37, 0 }
  0xa1   : > { %2097 = vmatmul.mubr.msk.bf16.vlgmr.msra.gmra.mrb[8].mxu0 %vm248_vm1, %v2095_v36 }
  0xa2   : > { %v546_v39 = vpop.permute.xlu0 %545  ;;  %654 = vmatprep.mubr.bf16.mxu0 %v2224_v0 }
  0xa3   : > { %v549_v40 = vsel %vm547_vm6, %v544_v34, %v546_v39  ;;  %1803 = vrot.lane.b32.xlu1 %v2307_v4, %s2249_s11  ;;  %v2119_v34 = vld [vmem:[%s2611_s0 + $0x30] sm:$0xf]  ;;  %vm1429_vm6 = vcmask 449536  }
  0xa4   : > { %1801 = vrot.lane.b32.xlu0 %v2305_v3, %s2249_s11  ;;  %2099 = vmatprep.subr.msk.bf16.mxu1 %vm252_vm0, %v549_v40  ;;  %v609_v42 = vpop.permute.xlu1 %608 }
  0xa5   : > { %560 = vmatpush1.bf16.msra.mxu1 %v554_v41 }
  0xa6   : > { %v607_v43 = vpop.permute.xlu0 %606 }
  0xa7   : > { %v611_v45 = vsel %vm610_vm7, %v605_v38, %v607_v43  ;;  %v612_v46 = vsel %vm610_vm7, %v607_v43, %v609_v42  ;;  %1864 = vrot.lane.b32.xlu1 %v2305_v3, %s2250_s15  ;;  %v2122_v42 = vld [vmem:[%s2611_s0 + $0x34] sm:$0xf]  ;;  %vm1492_vm7 = vcmask 441344  }
  0xa8   : > { %v617_v47 = vsel %vm252_vm0, %v611_v45, 0  ;;  %1805 = vrot.lane.b32.xlu0 %v2300_v1, %s2249_s11  ;;  %2102 = vmatprep.subr.msk.bf16.mxu0 %vm252_vm0, %v612_v46  ;;  %v670_v49 = vpop.permute.xlu1 %669 }
  0xa9   : > { %623 = vmatpush1.bf16.msra.mxu0 %v617_v47  ;;  %2100 = vmatmul.mubr.msk.bf16.vlgmr.msra.gmra.mrb[8].mxu1 %vm248_vm1, %v2098_v44 }
  0xaa   : > { %v668_v51 = vpop.permute.xlu0 %667  ;;  %717 = vmatprep.mubr.bf16.mxu1 %v2224_v0 }
  0xab   : > { %1868 = vrot.lane.b32.xlu1 %v2300_v1, %s2250_s15  ;;  %v674_v54 = vsel %vm673_vm8, %v668_v51, %v670_v49 }
  0xac   : > { %1866 = vrot.lane.b32.xlu0 %v2307_v4, %s2250_s15  ;;  %2103 = vmatmul.mubr.msk.bf16.vlgmr.msra.gmra.mrb[12].mxu0 %vm248_vm1, %v2101_v50  ;;  %v731_v55 = vpop.permute.xlu1 %730  ;;  %v680_v58 = vsel %vm252_vm0, %v674_v54, 0 }
  0xad   : > { %780 = vmatprep.mubr.bf16.mxu0 %v2224_v0 }
  0xae   : > { %v672_v56 = vpop.permute.xlu0 %671 }
  0xaf   : > { %v675_v57 = vsel %vm673_vm8, %v670_v49, %v672_v56  ;;  %1956 = vrot.lane.b32.xlu1 %v2165_v52, %s2237_s13  ;;  %v2128_v56 = vld [vmem:[%s2611_s0 + $0x3c] sm:$0xf]  ;;  %vm1555_vm8 = vcmask 408576  }
  0xb0   : > { %1954 = vrot.lane.b32.xlu0 %v2164_v53, %s2237_s13  ;;  %2105 = vmatprep.subr.msk.bf16.mxu1 %vm252_vm0, %v675_v57  ;;  %v735_v61 = vpop.permute.xlu1 %734 }
  0xb1   : > { %686 = vmatpush1.bf16.msra.mxu1 %v680_v58 }
  0xb2   : > { %v733_v62 = vpop.permute.xlu0 %732 }
  0xb3   : > { %v737_v1 = vsel %vm736_vm9, %v731_v55, %v733_v62  ;;  %v738_v2 = vsel %vm736_vm9, %v733_v62, %v735_v61  ;;  %1928 = vperm.xlu1 %2208, %v1925_v60   ;;  %v2131_v62 = vld [vmem:[%s2611_s0 + $0x40] sm:$0xf]  ;;  %vm1618_vm9 = vcmask 400384  }
  0xb4   : > { %v743_v3 = vsel %vm252_vm0, %v737_v1, 0  ;;  %1958 = vrot.lane.b32.xlu0 %v2215_v59, %s2237_s13  ;;  %2108 = vmatprep.subr.msk.bf16.mxu0 %vm252_vm0, %v738_v2  ;;  %v796_v4 = vpop.permute.xlu1 %795 }
  0xb5   : > { %749 = vmatpush1.bf16.msra.mxu0 %v743_v3  ;;  %2106 = vmatmul.mubr.msk.bf16.vlgmr.msra.gmra.mrb[12].mxu1 %vm248_vm1, %v2104_v63 }
  0xb6   : > { %v794_v7 = vpop.permute.xlu0 %793  ;;  %843 = vmatprep.mubr.bf16.mxu1 %v2224_v0 }
  0xb7   : > { %v800_v8 = vsel %vm799_vm10, %v794_v7, %v796_v4 }
  0xb8   : > { %2109 = vmatmul.mubr.msk.bf16.vlgmr.msra.gmra.mrb[16].mxu0 %vm248_vm1, %v2107_v5  ;;  %1943 = vperm.xlu0 %2209, %v1940_v6   ;;  %v857_v9 = vpop.permute.xlu1 %856  ;;  %v806_v12 = vsel %vm252_vm0, %v800_v8, 0  ;;  %v2134_v8 = vld [vmem:[%s2611_s0 + $0x44] sm:$0xf] }
  0xb9   : > { %906 = vmatprep.mubr.bf16.mxu0 %v2224_v0 }
  0xba   : > { %v798_v10 = vpop.permute.xlu0 %797 }
  0xbb   : > { %v801_v11 = vsel %vm799_vm10, %v796_v4, %v798_v10  ;;  %vm1681_vm10 = vcmask 392192  }
  0xbc   : > { %2111 = vmatprep.subr.msk.bf16.mxu1 %vm252_vm0, %v801_v11  ;;  %v861_v13 = vpop.permute.xlu1 %860 }
  0xbd   : > { %812 = vmatpush1.bf16.msra.mxu1 %v806_v12 }
  0xbe   : > { %v859_v15 = vpop.permute.xlu0 %858 }
  0xbf   : > { %v863_v16 = vsel %vm862_vm11, %v857_v9, %v859_v15  ;;  %v864_v17 = vsel %vm862_vm11, %v859_v15, %v861_v13  ;;  %vm1744_vm11 = vcmask 359424  }
  0xc0   : > { %v869_v18 = vsel %vm252_vm0, %v863_v16, 0  ;;  %2114 = vmatprep.subr.msk.bf16.mxu0 %vm252_vm0, %v864_v17  ;;  %2112 = vmatmul.mubr.msk.bf16.vlgmr.msra.gmra.mrb[16].mxu1 %vm248_vm1, %v2110_v14  ;;  %v922_v19 = vpop.permute.xlu1 %921  ;;  %v2137_v17 = vld [vmem:[%s2611_s0 + $0x48] sm:$0xf] }
  0xc1   : > { %875 = vmatpush1.bf16.msra.mxu0 %v869_v18  ;;  %969 = vmatprep.mubr.bf16.mxu1 %v2224_v0 }
  0xc2   : > { %v920_v21 = vpop.permute.xlu0 %919 }
  0xc3   : > { %v926_v22 = vsel %vm925_vm12, %v920_v21, %v922_v19 }
  0xc4   : > { %2115 = vmatmul.mubr.msk.bf16.vlgmr.msra.gmra.mrb[20].mxu0 %vm248_vm1, %v2113_v20  ;;  %v983_v23 = vpop.permute.xlu1 %982  ;;  %v932_v26 = vsel %vm252_vm0, %v926_v22, 0 }
  0xc5   : > { %1032 = vmatprep.mubr.bf16.mxu0 %v2224_v0 }
  0xc6   : > { %v924_v24 = vpop.permute.xlu0 %923 }
  0xc7   : > { %v927_v25 = vsel %vm925_vm12, %v922_v19, %v924_v24  ;;  %vm1807_vm12 = vcmask 351232  }
  0xc8   : > { %2117 = vmatprep.subr.msk.bf16.mxu1 %vm252_vm0, %v927_v25  ;;  %v987_v27 = vpop.permute.xlu1 %986  ;;  %v2140_v25 = vld [vmem:[%s2611_s0 + $0x4c] sm:$0xf] }
  0xc9   : > { %938 = vmatpush1.bf16.msra.mxu1 %v932_v26 }
  0xca   : > { %v985_v29 = vpop.permute.xlu0 %984 }
  0xcb   : > { %v989_v30 = vsel %vm988_vm13, %v983_v23, %v985_v29  ;;  %v990_v31 = vsel %vm988_vm13, %v985_v29, %v987_v27  ;;  %vm1870_vm13 = vcmask 343040  }
  0xcc   : > { %v995_v32 = vsel %vm252_vm0, %v989_v30, 0  ;;  %2120 = vmatprep.subr.msk.bf16.mxu0 %vm252_vm0, %v990_v31  ;;  %2118 = vmatmul.mubr.msk.bf16.vlgmr.msra.gmra.mrb[20].mxu1 %vm248_vm1, %v2116_v28  ;;  %v1048_v33 = vpop.permute.xlu1 %1047  ;;  %v2143_v31 = vld [vmem:[%s2611_s0 + $0x50] sm:$0xf] }
  0xcd   : > { %1001 = vmatpush1.bf16.msra.mxu0 %v995_v32  ;;  %1095 = vmatprep.mubr.bf16.mxu1 %v2224_v0 }
  0xce   : > { %v1046_v35 = vpop.permute.xlu0 %1045 }
  0xcf   : > { %v1052_v36 = vsel %vm1051_vm14, %v1046_v35, %v1048_v33 }
  0xd0   : > { %2121 = vmatmul.mubr.msk.bf16.vlgmr.msra.gmra.mrb[24].mxu0 %vm248_vm1, %v2119_v34  ;;  %v1109_v37 = vpop.permute.xlu1 %1108  ;;  %v1058_v40 = vsel %vm252_vm0, %v1052_v36, 0 }
  0xd1   : > { %1158 = vmatprep.mubr.bf16.mxu0 %v2224_v0 }
  0xd2   : > { %v1050_v38 = vpop.permute.xlu0 %1049 }
  0xd3   : > { %v1053_v39 = vsel %vm1051_vm14, %v1048_v33, %v1050_v38 }
  0xd4   : > { %2123 = vmatprep.subr.msk.bf16.mxu1 %vm252_vm0, %v1053_v39  ;;  %v1113_v41 = vpop.permute.xlu1 %1112  ;;  %v2146_v39 = vld [vmem:[%s2611_s0 + $0x54] sm:$0xf] }
  0xd5   : > { %1064 = vmatpush1.bf16.msra.mxu1 %v1058_v40 }
  0xd6   : > { %v1111_v43 = vpop.permute.xlu0 %1110 }
  0xd7   : > { %v1115_v44 = vsel %vm1114_vm15, %v1109_v37, %v1111_v43  ;;  %v1116_v45 = vsel %vm1114_vm15, %v1111_v43, %v1113_v41  ;;  %vm1966_vm15 = vcmask 1041408  }
  0xd8   : > { %v1121_v46 = vsel %vm252_vm0, %v1115_v44, 0  ;;  %2126 = vmatprep.subr.msk.bf16.mxu0 %vm252_vm0, %v1116_v45  ;;  %2124 = vmatmul.mubr.msk.bf16.vlgmr.msra.gmra.mrb[24].mxu1 %vm248_vm1, %v2122_v42  ;;  %v1174_v47 = vpop.permute.xlu1 %1173  ;;  %v2149_v45 = vld [vmem:[%s2611_s0 + $0x58] sm:$0xf] }
  0xd9   : > { %1127 = vmatpush1.bf16.msra.mxu0 %v1121_v46  ;;  %1221 = vmatprep.mubr.bf16.mxu1 %v2224_v0 }
  0xda   : > { %v1172_v49 = vpop.permute.xlu0 %1171 }
  0xdb   : > { %v1178_v50 = vsel %vm1177_vm2, %v1172_v49, %v1174_v47 }
  0xdc   : > { %2127 = vmatmul.mubr.msk.bf16.vlgmr.msra.gmra.mrb[28].mxu0 %vm248_vm1, %v2125_v48  ;;  %v1235_v51 = vpop.permute.xlu1 %1234  ;;  %v1184_v54 = vsel %vm252_vm0, %v1178_v50, 0 }
  0xdd   : > { %1284 = vmatprep.mubr.bf16.mxu0 %v2224_v0 }
  0xde   : > { %v1176_v52 = vpop.permute.xlu0 %1175 }
  0xdf   : > { %v1179_v53 = vsel %vm1177_vm2, %v1174_v47, %v1176_v52 }
  0xe0   : > { %2129 = vmatprep.subr.msk.bf16.mxu1 %vm252_vm0, %v1179_v53  ;;  %v1239_v55 = vpop.permute.xlu1 %1238  ;;  %v2152_v53 = vld [vmem:[%s2611_s0 + $0x5c] sm:$0xf] }
  0xe1   : > { %1190 = vmatpush1.bf16.msra.mxu1 %v1184_v54 }
  0xe2   : > { %v1237_v57 = vpop.permute.xlu0 %1236 }
  0xe3   : > { %v1241_v58 = vsel %vm1240_vm3, %v1235_v51, %v1237_v57  ;;  %v1242_v59 = vsel %vm1240_vm3, %v1237_v57, %v1239_v55 }
  0xe4   : > { %v1247_v60 = vsel %vm252_vm0, %v1241_v58, 0  ;;  %2130 = vmatmul.mubr.msk.bf16.vlgmr.msra.gmra.mrb[28].mxu1 %vm248_vm1, %v2128_v56  ;;  %2132 = vmatprep.subr.msk.bf16.mxu0 %vm252_vm0, %v1242_v59  ;;  %v1300_v61 = vpop.permute.xlu1 %1299  ;;  %v2155_v59 = vld [vmem:[%s2611_s0 + $0x60] sm:$0xf] }
  0xe5   : > { %1253 = vmatpush1.bf16.msra.mxu0 %v1247_v60  ;;  %1347 = vmatprep.mubr.bf16.mxu1 %v2224_v0 }
  0xe6   : > { %v1298_v63 = vpop.permute.xlu0 %1297 }
  0xe7   : > { %v1304_v1 = vsel %vm1303_vm4, %v1298_v63, %v1300_v61 }
  0xe8   : > { %2133 = vmatmul.mubr.msk.bf16.vlgmr.msra.gmra.mrb[32].mxu0 %vm248_vm1, %v2131_v62  ;;  %v1361_v2 = vpop.permute.xlu1 %1360  ;;  %v1310_v5 = vsel %vm252_vm0, %v1304_v1, 0 }
  0xe9   : > { %1410 = vmatprep.mubr.bf16.mxu0 %v2224_v0 }
  0xea   : > { %v1302_v3 = vpop.permute.xlu0 %1301 }
  0xeb   : > { %v1305_v4 = vsel %vm1303_vm4, %v1300_v61, %v1302_v3  ;;  %v2526_v6 = vpop.f32.mrb[0].mxu1 }
  0xec   : > { %2135 = vmatprep.subr.msk.bf16.mxu1 %vm252_vm0, %v1305_v4  ;;  %v1365_v7 = vpop.permute.xlu1 %1364  ;;  %v2531_v9 = vpop.f32.mrb[1].mxu1  ;;  %v2158_v4 = vld [vmem:[%s2611_s0 + $0x64] sm:$0xf] }
  0xed   : > { %1316 = vmatpush1.bf16.msra.mxu1 %v1310_v5  ;;  %v347_v11 = vpop.f32.mrb[2].mxu1 }
  0xee   : > { %v1363_v10 = vpop.permute.xlu0 %1362  ;;  %v348_v14 = vpop.f32.mrb[3].mxu1  ;;  %v2161_v11 = vld [vmem:[%s2611_s0 + $0x68] sm:$0xf] }
  0xef   : > { %v1367_v12 = vsel %vm1366_vm5, %v1361_v2, %v1363_v10  ;;  %v1368_v13 = vsel %vm1366_vm5, %v1363_v10, %v1365_v7 }
  0xf0   : > { %v1373_v15 = vsel %vm252_vm0, %v1367_v12, 0  ;;  %2136 = vmatmul.mubr.msk.bf16.vlgmr.msra.gmra.mrb[32].mxu1 %vm248_vm1, %v2134_v8  ;;  %2138 = vmatprep.subr.msk.bf16.mxu0 %vm252_vm0, %v1368_v13  ;;  %v1426_v16 = vpop.permute.xlu1 %1425 }
  0xf1   : > { %1379 = vmatpush1.bf16.msra.mxu0 %v1373_v15  ;;  %1473 = vmatprep.mubr.bf16.mxu1 %v2224_v0 }
  0xf2   : > { %v1424_v18 = vpop.permute.xlu0 %1423 }
  0xf3   : > { %v1430_v19 = vsel %vm1429_vm6, %v1424_v18, %v1426_v16  ;;  %v1939_v18 = vld [vmem:[%s2613_s2] sm:$0xf] }
  0xf4   : > { %2139 = vmatmul.mubr.msk.bf16.vlgmr.msra.gmra.mrb[36].mxu0 %vm248_vm1, %v2137_v17  ;;  %v1487_v20 = vpop.permute.xlu1 %1486  ;;  %v1436_v23 = vsel %vm252_vm0, %v1430_v19, 0 }
  0xf5   : > { %1536 = vmatprep.mubr.bf16.mxu0 %v2224_v0 }
  0xf6   : > { %v1428_v21 = vpop.permute.xlu0 %1427 }
  0xf7   : > { %v1431_v22 = vsel %vm1429_vm6, %v1426_v16, %v1428_v21 }
  0xf8   : > { %2141 = vmatprep.subr.msk.bf16.mxu1 %vm252_vm0, %v1431_v22  ;;  %v1491_v24 = vpop.permute.xlu1 %1490 }
  0xf9   : > { %1442 = vmatpush1.bf16.msra.mxu1 %v1436_v23 }
  0xfa   : > { %v1489_v26 = vpop.permute.xlu0 %1488 }
  0xfb   : > { %v1493_v27 = vsel %vm1492_vm7, %v1487_v20, %v1489_v26  ;;  %v1494_v28 = vsel %vm1492_vm7, %v1489_v26, %v1491_v24 }
  0xfc   : > { %v1499_v29 = vsel %vm252_vm0, %v1493_v27, 0  ;;  %2142 = vmatmul.mubr.msk.bf16.vlgmr.msra.gmra.mrb[36].mxu1 %vm248_vm1, %v2140_v25  ;;  %2144 = vmatprep.subr.msk.bf16.mxu0 %vm252_vm0, %v1494_v28  ;;  %v1552_v30 = vpop.permute.xlu1 %1551 }
  0xfd   : > { %1505 = vmatpush1.bf16.msra.mxu0 %v1499_v29  ;;  %1599 = vmatprep.mubr.bf16.mxu1 %v2224_v0 }
  0xfe   : > { %v1550_v32 = vpop.permute.xlu0 %1549 }
  0xff   : > { %v1556_v33 = vsel %vm1555_vm8, %v1550_v32, %v1552_v30 }
 0x100   : > { %2145 = vmatmul.mubr.msk.bf16.vlgmr.msra.gmra.mrb[40].mxu0 %vm248_vm1, %v2143_v31  ;;  %v1613_v34 = vpop.permute.xlu1 %1612  ;;  %v1562_v37 = vsel %vm252_vm0, %v1556_v33, 0 }
 0x101   : > { %1662 = vmatprep.mubr.bf16.mxu0 %v2224_v0 }
 0x102   : > { %v1554_v35 = vpop.permute.xlu0 %1553 }
 0x103   : > { %v1557_v36 = vsel %vm1555_vm8, %v1552_v30, %v1554_v35 }
 0x104   : > { %2147 = vmatprep.subr.msk.bf16.mxu1 %vm252_vm0, %v1557_v36 }
 0x105   : > { %1568 = vmatpush1.bf16.msra.mxu1 %v1562_v37  ;;  %v1617_v38 = vpop.permute.xlu1 %1616 }
 0x106   : > { %v1615_v40 = vpop.permute.xlu0 %1614 }
 0x107   : > { %v1619_v41 = vsel %vm1618_vm9, %v1613_v34, %v1615_v40  ;;  %v1620_v42 = vsel %vm1618_vm9, %v1615_v40, %v1617_v38 }
 0x108   : > { %v1625_v43 = vsel %vm252_vm0, %v1619_v41, 0  ;;  %2148 = vmatmul.mubr.msk.bf16.vlgmr.msra.gmra.mrb[40].mxu1 %vm248_vm1, %v2146_v39  ;;  %2150 = vmatprep.subr.msk.bf16.mxu0 %vm252_vm0, %v1620_v42 }
 0x109   : > { %1631 = vmatpush1.bf16.msra.mxu0 %v1625_v43  ;;  %v1678_v44 = vpop.permute.xlu1 %1677  ;;  %1725 = vmatprep.mubr.bf16.mxu1 %v2224_v0 }
 0x10a   : > { %v1676_v46 = vpop.permute.xlu0 %1675 }
 0x10b   : > { %v1682_v47 = vsel %vm1681_vm10, %v1676_v46, %v1678_v44 }
 0x10c   : > { %2151 = vmatmul.mubr.msk.bf16.vlgmr.msra.gmra.mrb[44].mxu0 %vm248_vm1, %v2149_v45  ;;  %v1688_v51 = vsel %vm252_vm0, %v1682_v47, 0 }
 0x10d   : > { %v1739_v48 = vpop.permute.xlu1 %1738  ;;  %1788 = vmatprep.mubr.bf16.mxu0 %v2224_v0 }
 0x10e   : > { %v1680_v49 = vpop.permute.xlu0 %1679 }
 0x10f   : > { %v1683_v50 = vsel %vm1681_vm10, %v1678_v44, %v1680_v49 }
 0x110   : > { %2153 = vmatprep.subr.msk.bf16.mxu1 %vm252_vm0, %v1683_v50 }
 0x111   : > { %1694 = vmatpush1.bf16.msra.mxu1 %v1688_v51  ;;  %v1743_v52 = vpop.permute.xlu1 %1742 }
 0x112   : > { %v1741_v54 = vpop.permute.xlu0 %1740 }
 0x113   : > { %v1745_v55 = vsel %vm1744_vm11, %v1739_v48, %v1741_v54  ;;  %v1746_v56 = vsel %vm1744_vm11, %v1741_v54, %v1743_v52 }
 0x114   : > { %v1751_v57 = vsel %vm252_vm0, %v1745_v55, 0  ;;  %2154 = vmatmul.mubr.msk.bf16.vlgmr.msra.gmra.mrb[44].mxu1 %vm248_vm1, %v2152_v53  ;;  %2156 = vmatprep.subr.msk.bf16.mxu0 %vm252_vm0, %v1746_v56 }
 0x115   : > { %1757 = vmatpush1.bf16.msra.mxu0 %v1751_v57  ;;  %v1804_v58 = vpop.permute.xlu1 %1803  ;;  %1851 = vmatprep.mubr.bf16.mxu1 %v2224_v0 }
 0x116   : > { %v1802_v60 = vpop.permute.xlu0 %1801 }
 0x117   : > { %v1808_v61 = vsel %vm1807_vm12, %v1802_v60, %v1804_v58 }
 0x118   : > { %2157 = vmatmul.mubr.msk.bf16.vlgmr.msra.gmra.mrb[48].mxu0 %vm248_vm1, %v2155_v59  ;;  %v1814_v2 = vsel %vm252_vm0, %v1808_v61, 0 }
 0x119   : > { %v1865_v62 = vpop.permute.xlu1 %1864  ;;  %1914 = vmatprep.mubr.bf16.mxu0 %v2224_v0 }
 0x11a   : > { %v1806_v63 = vpop.permute.xlu0 %1805 }
 0x11b   : > { %v1809_v1 = vsel %vm1807_vm12, %v1804_v58, %v1806_v63 }
 0x11c   : > { %2159 = vmatprep.subr.msk.bf16.mxu1 %vm252_vm0, %v1809_v1 }
 0x11d   : > { %1820 = vmatpush1.bf16.msra.mxu1 %v1814_v2  ;;  %v1869_v3 = vpop.permute.xlu1 %1868 }
 0x11e   : > { %v1867_v5 = vpop.permute.xlu0 %1866 }
 0x11f   : > { %v1871_v7 = vsel %vm1870_vm13, %v1865_v62, %v1867_v5  ;;  %v1872_v8 = vsel %vm1870_vm13, %v1867_v5, %v1869_v3 }
 0x120   : > { %v1877_v10 = vsel %vm252_vm0, %v1871_v7, 0  ;;  %2160 = vmatmul.mubr.msk.bf16.vlgmr.msra.gmra.mrb[48].mxu1 %vm248_vm1, %v2158_v4  ;;  %2162 = vmatprep.subr.msk.bf16.mxu0 %vm252_vm0, %v1872_v8  ;;  %vm1962_vm0 = vcmask 31744  }
 0x121   : > { %1883 = vmatpush1.bf16.msra.mxu0 %v1877_v10  ;;  %2005 = vmatprep.mubr.bf16.mxu1 %v2224_v0  ;;  %v1957_v12 = vpop.permute.xlu1 %1956 }
 0x122   : > { %v1955_v13 = vpop.permute.xlu0 %1954 }
 0x123   : > { %v1960_v14 = vsel %vm1051_vm14, %v1955_v13, %v1957_v12 }
 0x124   : > { %2163 = vmatmul.mubr.msk.bf16.vlgmr.msra.gmra.mrb[52].mxu0 %vm248_vm1, %v2161_v11  ;;  %v1968_v17 = vsel %vm1966_vm15, %v1960_v14, 0 }
 0x126   : > { %v1959_v15 = vpop.permute.xlu0 %1958 }
 0x127   : > { %v1961_v16 = vsel %vm1051_vm14, %v1957_v12, %v1959_v15 }
 0x128   : > { %2167 = vmatprep.subr.msk.bf16.mxu1 %vm1966_vm15, %v1961_v16 }
 0x129   : > { %1974 = vmatpush1.bf16.msra.mxu1 %v1968_v17 }
 0x12c   : > { %2168 = vmatmul.mubr.msk.bf16.vlgmr.msra.gmra.mrb[52].mxu1 %vm1962_vm0, %v1939_v18 }
 0x164   : > { %v293_v0 = vpop.f32.mrb[0].mxu0 }
 0x165   : > { %v295_v19 = vpop.f32.mrb[1].mxu0  ;;  %v344_v20 = vadd.f32 %v2526_v6, %v293_v0 }
 0x166   : > { %v297_v21 = vpop.f32.mrb[2].mxu0  ;;  %v346_v22 = vadd.f32 %v2531_v9, %v295_v19 }
 0x167   : > { %v298_v23 = vpop.f32.mrb[3].mxu0 }
 0x16c   : > { %v404_v24 = vpop.f32.mrb[4].mxu0 }
 0x16d   : > { %v411_v25 = vadd.f32 %v404_v24, %v344_v20  ;;  %v406_v26 = vpop.f32.mrb[5].mxu0 }
 0x16e   : > { %v412_v27 = vadd.f32 %v406_v26, %v346_v22  ;;  %v408_v28 = vpop.f32.mrb[6].mxu0 }
 0x16f   : > { %v409_v29 = vpop.f32.mrb[7].mxu0 }
 0x170   : > { %v467_v30 = vpop.f32.mrb[4].mxu1 }
 0x171   : > { %v474_v31 = vadd.f32 %v467_v30, %v411_v25  ;;  %v469_v32 = vpop.f32.mrb[5].mxu1 }
 0x172   : > { %v475_v33 = vadd.f32 %v469_v32, %v412_v27  ;;  %v471_v34 = vpop.f32.mrb[6].mxu1 }
 0x173   : > { %v472_v35 = vpop.f32.mrb[7].mxu1 }
 0x174   : > { %v530_v36 = vpop.f32.mrb[8].mxu0 }
 0x175   : > { %v537_v37 = vadd.f32 %v530_v36, %v474_v31  ;;  %v532_v38 = vpop.f32.mrb[9].mxu0 }
 0x176   : > { %v538_v6 = vadd.f32 %v532_v38, %v475_v33  ;;  %v534_v39 = vpop.f32.mrb[10].mxu0 }
 0x177   : > { %v535_v40 = vpop.f32.mrb[11].mxu0 }
 0x17c   : > { %v593_v9 = vpop.f32.mrb[8].mxu1 }
 0x17d   : > { %v600_v41 = vadd.f32 %v593_v9, %v537_v37  ;;  %v595_v42 = vpop.f32.mrb[9].mxu1 }
 0x17e   : > { %v601_v43 = vadd.f32 %v595_v42, %v538_v6  ;;  %v597_v44 = vpop.f32.mrb[10].mxu1 }
 0x17f   : > { %v656_v45 = vpop.f32.mrb[12].mxu0  ;;  %v598_v46 = vpop.f32.mrb[11].mxu1 }
 0x180   : > { %v663_v47 = vadd.f32 %v656_v45, %v600_v41  ;;  %v658_v48 = vpop.f32.mrb[13].mxu0 }
 0x181   : > { %v664_v49 = vadd.f32 %v658_v48, %v601_v43  ;;  %v660_v50 = vpop.f32.mrb[14].mxu0 }
 0x182   : > { %v661_v51 = vpop.f32.mrb[15].mxu0 }
 0x188   : > { %v719_v52 = vpop.f32.mrb[12].mxu1 }
 0x189   : > { %v726_v53 = vadd.f32 %v719_v52, %v663_v47  ;;  %v721_v54 = vpop.f32.mrb[13].mxu1 }
 0x18a   : > { %v727_v55 = vadd.f32 %v721_v54, %v664_v49  ;;  %v723_v56 = vpop.f32.mrb[14].mxu1 }
 0x18b   : > { %v782_v57 = vpop.f32.mrb[16].mxu0  ;;  %v724_v58 = vpop.f32.mrb[15].mxu1 }
 0x18c   : > { %v789_v59 = vadd.f32 %v782_v57, %v726_v53  ;;  %v784_v60 = vpop.f32.mrb[17].mxu0 }
 0x18d   : > { %v790_v61 = vadd.f32 %v784_v60, %v727_v55  ;;  %v786_v62 = vpop.f32.mrb[18].mxu0 }
 0x18e   : > { %v787_v63 = vpop.f32.mrb[19].mxu0 }
 0x193   : > { %v845_v1 = vpop.f32.mrb[16].mxu1 }
 0x194   : > { %v852_v2 = vadd.f32 %v845_v1, %v789_v59  ;;  %v847_v3 = vpop.f32.mrb[17].mxu1 }
 0x195   : > { %v853_v4 = vadd.f32 %v847_v3, %v790_v61  ;;  %v849_v5 = vpop.f32.mrb[18].mxu1 }
 0x196   : > { %v850_v7 = vpop.f32.mrb[19].mxu1 }
 0x197   : > { %v908_v8 = vpop.f32.mrb[20].mxu0 }
 0x198   : > { %v915_v10 = vadd.f32 %v908_v8, %v852_v2  ;;  %v910_v11 = vpop.f32.mrb[21].mxu0 }
 0x199   : > { %v916_v12 = vadd.f32 %v910_v11, %v853_v4  ;;  %v912_v13 = vpop.f32.mrb[22].mxu0 }
 0x19a   : > { %v913_v14 = vpop.f32.mrb[23].mxu0 }
 0x19f   : > { %v971_v15 = vpop.f32.mrb[20].mxu1 }
 0x1a0   : > { %v978_v16 = vadd.f32 %v971_v15, %v915_v10  ;;  %v973_v17 = vpop.f32.mrb[21].mxu1 }
 0x1a1   : > { %v979_v18 = vadd.f32 %v973_v17, %v916_v12  ;;  %v975_v0 = vpop.f32.mrb[22].mxu1 }
 0x1a2   : > { %v976_v19 = vpop.f32.mrb[23].mxu1 }
 0x1a3   : > { %v1034_v20 = vpop.f32.mrb[24].mxu0 }
 0x1a4   : > { %v1041_v21 = vadd.f32 %v1034_v20, %v978_v16  ;;  %v1036_v22 = vpop.f32.mrb[25].mxu0 }
 0x1a5   : > { %v1042_v23 = vadd.f32 %v1036_v22, %v979_v18  ;;  %v1038_v24 = vpop.f32.mrb[26].mxu0 }
 0x1a6   : > { %v1039_v25 = vpop.f32.mrb[27].mxu0 }
 0x1ab   : > { %v1097_v26 = vpop.f32.mrb[24].mxu1 }
 0x1ac   : > { %v1104_v27 = vadd.f32 %v1097_v26, %v1041_v21  ;;  %v1099_v28 = vpop.f32.mrb[25].mxu1 }
 0x1ad   : > { %v1105_v29 = vadd.f32 %v1099_v28, %v1042_v23  ;;  %v1101_v30 = vpop.f32.mrb[26].mxu1 }
 0x1ae   : > { %v1102_v31 = vpop.f32.mrb[27].mxu1 }
 0x1af   : > { %v1160_v32 = vpop.f32.mrb[28].mxu0 }
 0x1b0   : > { %v1167_v33 = vadd.f32 %v1160_v32, %v1104_v27  ;;  %v1162_v34 = vpop.f32.mrb[29].mxu0 }
 0x1b1   : > { %v1168_v35 = vadd.f32 %v1162_v34, %v1105_v29  ;;  %v1164_v36 = vpop.f32.mrb[30].mxu0 }
 0x1b2   : > { %v1165_v37 = vpop.f32.mrb[31].mxu0 }
 0x1b7   : > { %v1223_v38 = vpop.f32.mrb[28].mxu1 }
 0x1b8   : > { %v1230_v6 = vadd.f32 %v1223_v38, %v1167_v33  ;;  %v1225_v39 = vpop.f32.mrb[29].mxu1 }
 0x1b9   : > { %v1231_v40 = vadd.f32 %v1225_v39, %v1168_v35  ;;  %v1227_v9 = vpop.f32.mrb[30].mxu1 }
 0x1ba   : > { %v1228_v41 = vpop.f32.mrb[31].mxu1 }
 0x1bb   : > { %v1286_v42 = vpop.f32.mrb[32].mxu0 }
 0x1bc   : > { %v1293_v43 = vadd.f32 %v1286_v42, %v1230_v6  ;;  %v1288_v44 = vpop.f32.mrb[33].mxu0 }
 0x1bd   : > { %v1294_v45 = vadd.f32 %v1288_v44, %v1231_v40  ;;  %v1290_v46 = vpop.f32.mrb[34].mxu0  ;;  %v1929_v40 = vpop.permute.xlu1 %1928 }
 0x1be   : > { %v1291_v47 = vpop.f32.mrb[35].mxu0 }
 0x1c3   : > { %v1349_v48 = vpop.f32.mrb[32].mxu1 }
 0x1c4   : > { %v1356_v49 = vadd.f32 %v1349_v48, %v1293_v43  ;;  %v1351_v50 = vpop.f32.mrb[33].mxu1 }
 0x1c5   : > { %v1357_v51 = vadd.f32 %v1351_v50, %v1294_v45  ;;  %v1353_v52 = vpop.f32.mrb[34].mxu1 }
 0x1c6   : > { %v1354_v53 = vpop.f32.mrb[35].mxu1 }
 0x1c7   : > { %v1412_v54 = vpop.f32.mrb[36].mxu0 }
 0x1c8   : > { %v1419_v55 = vadd.f32 %v1412_v54, %v1356_v49  ;;  %v1414_v56 = vpop.f32.mrb[37].mxu0  ;;  %v1944_v49 = vpop.permute.xlu0 %1943 }
 0x1c9   : > { %v1420_v57 = vadd.f32 %v1414_v56, %v1357_v51  ;;  %v1416_v58 = vpop.f32.mrb[38].mxu0 }
 0x1ca   : > { %v1417_v59 = vpop.f32.mrb[39].mxu0 }
 0x1cf   : > { %v1475_v60 = vpop.f32.mrb[36].mxu1 }
 0x1d0   : > { %v1482_v61 = vadd.f32 %v1475_v60, %v1419_v55  ;;  %v1477_v62 = vpop.f32.mrb[37].mxu1 }
 0x1d1   : > { %v1483_v63 = vadd.f32 %v1477_v62, %v1420_v57  ;;  %v1479_v1 = vpop.f32.mrb[38].mxu1 }
 0x1d2   : > { %v1480_v2 = vpop.f32.mrb[39].mxu1 }
 0x1d3   : > { %v1538_v3 = vpop.f32.mrb[40].mxu0 }
 0x1d4   : > { %v1545_v4 = vadd.f32 %v1538_v3, %v1482_v61  ;;  %v1540_v5 = vpop.f32.mrb[41].mxu0 }
 0x1d5   : > { %v1546_v7 = vadd.f32 %v1540_v5, %v1483_v63  ;;  %v1542_v8 = vpop.f32.mrb[42].mxu0 }
 0x1d6   : > { %v1543_v10 = vpop.f32.mrb[43].mxu0 }
 0x1db   : > { %v1601_v11 = vpop.f32.mrb[40].mxu1 }
 0x1dc   : > { %v1608_v12 = vadd.f32 %v1601_v11, %v1545_v4  ;;  %v1603_v13 = vpop.f32.mrb[41].mxu1 }
 0x1dd   : > { %v1609_v14 = vadd.f32 %v1603_v13, %v1546_v7  ;;  %v1605_v15 = vpop.f32.mrb[42].mxu1 }
 0x1de   : > { %v1606_v16 = vpop.f32.mrb[43].mxu1 }
 0x1df   : > { %v1664_v17 = vpop.f32.mrb[44].mxu0 }
 0x1e0   : > { %v1671_v18 = vadd.f32 %v1664_v17, %v1608_v12  ;;  %v1666_v0 = vpop.f32.mrb[45].mxu0 }
 0x1e1   : > { %v1672_v19 = vadd.f32 %v1666_v0, %v1609_v14  ;;  %v1668_v20 = vpop.f32.mrb[46].mxu0 }
 0x1e2   : > { %v1669_v21 = vpop.f32.mrb[47].mxu0 }
 0x1e7   : > { %v1727_v22 = vpop.f32.mrb[44].mxu1 }
 0x1e8   : > { %v1734_v23 = vadd.f32 %v1727_v22, %v1671_v18  ;;  %v1729_v24 = vpop.f32.mrb[45].mxu1 }
 0x1e9   : > { %v1735_v25 = vadd.f32 %v1729_v24, %v1672_v19  ;;  %v1731_v26 = vpop.f32.mrb[46].mxu1 }
 0x1ea   : > { %v1732_v27 = vpop.f32.mrb[47].mxu1 }
 0x1eb   : > { %v1790_v28 = vpop.f32.mrb[48].mxu0 }
 0x1ec   : > { %v1797_v29 = vadd.f32 %v1790_v28, %v1734_v23  ;;  %v1792_v30 = vpop.f32.mrb[49].mxu0 }
 0x1ed   : > { %v1798_v31 = vadd.f32 %v1792_v30, %v1735_v25  ;;  %v1794_v32 = vpop.f32.mrb[50].mxu0 }
 0x1ee   : > { %v1795_v33 = vpop.f32.mrb[51].mxu0 }
 0x1f3   : > { %v1853_v34 = vpop.f32.mrb[48].mxu1 }
 0x1f4   : > { %v1860_v35 = vadd.f32 %v1853_v34, %v1797_v29  ;;  %v1855_v36 = vpop.f32.mrb[49].mxu1 }
 0x1f5   : > { %v1861_v37 = vadd.f32 %v1855_v36, %v1798_v31  ;;  %v1857_v38 = vpop.f32.mrb[50].mxu1 }
 0x1f6   : > { %v1858_v6 = vpop.f32.mrb[51].mxu1 }
 0x1f7   : > { %v1916_v39 = vpop.f32.mrb[52].mxu0 }
 0x1f8   : > { %v1923_v9 = vadd.f32 %v1916_v39, %v1860_v35  ;;  %v1918_v41 = vpop.f32.mrb[53].mxu0 }
 0x1f9   : > { %v1924_v42 = vadd.f32 %v1918_v41, %v1861_v37  ;;  %v1920_v43 = vpop.f32.mrb[54].mxu0 }
 0x1fa   : > { %v1931_v44 = vadd.f32 %v1929_v40, %v1923_v9  ;;  %v1921_v45 = vpop.f32.mrb[55].mxu0 }
 0x1fb   : > { %v1932_v46 = vadd.f32 %v1929_v40, %v1924_v42 }
 0x1fc   : > { %v1933_v47 = vmul.f32 0.01, %v1931_v44 }
 0x1fd   : > { %v1934_v48 = vmul.f32 0.01, %v1932_v46 }
 0x1fe   : > { %v1935_v51 = vmax.f32 %v1931_v44, %v1933_v47 }
 0x1ff   : > { %v2007_v50 = vpop.f32.mrb[52].mxu1  ;;  %v1936_v54 = vmax.f32 %v1932_v46, %v1934_v48 }
 0x200   : > { %v2008_v52 = vadd.f32 %v2007_v50, %v1944_v49  ;;  %v2009_v53 = vpop.f32.mrb[53].mxu1 }
 0x201   : > { %v2010_v55 = vadd.f32 %v2009_v53, %v1944_v49  ;;  %v2011_v56 = vpop.f32.mrb[54].mxu1 }
 0x202   : > { %v2014_v57 = vadd.f32 %v2008_v52, %v1935_v51  ;;  %v2012_v58 = vpop.f32.mrb[55].mxu1 }
 0x203   : > { %v2015_v59 = vadd.f32 %v2010_v55, %v1936_v54 }
 0x204   : > { %2016 = vst [vmem:[%s224_s24] sm:$0xff] %v2014_v57 }
 0x205   : > { %2017 = vst [vmem:[%s224_s24 + $0x8] sm:$0xff] %v2015_v59 }
 0x206 PF: > { %s15_s18 = sadd.s32 1, %s2222_s18  }
 0x207   : > { %p12_p4 = scmp.ge.s32.totalorder %s15_s18, 4  }
 0x209   :  { %14 = sbr.rel (!%p12_p4) target bundleno = 1 (0x1), region = 96 }

</bundles_post_ra>
